<compile_context>
chip_gen: v7x
topology: tpu7x:2x2x1
jax: 0.10.0
libtpu: 0.0.40
codegen_flags: <defaults>
</compile_context>

<pallas_src>
import functools

import jax
import jax.numpy as jnp
from jax.experimental import pallas as pl
from jax.experimental.pallas import tpu as pltpu

LANE = 128  # vreg lane width; channel / class / K padding target


def _round_up(x, m):
    return (x + m - 1) // m * m


# ----------------------------------------------------------------------------
# Fused Pallas kernel: one batch tile (B_TILE images) per grid step
# ----------------------------------------------------------------------------
def _fused_encoder_ce_kernel(
    x_ref,    # (P1, B_TILE, LANE)  conv1 im2col input; K=(tap,cin)=36 real lanes
    w1_ref,   # (LANE, LANE)        conv1 weight (K=36 real, Cout=16 real)
    b1_ref,   # (1, LANE)
    w2_ref,   # (9, LANE, LANE)     conv2 weights per tap (Cin=16 real, Cout=32 real)
    b2_ref,   # (1, LANE)
    wf_ref,   # (LANE, LANE)        fc weight (Cin=32 real, classes real)
    bf_ref,   # (1, LANE)
    lab_ref,  # (B_TILE, LANE)      soft labels, padded classes zero
    out_ref,  # (B_TILE, LANE)      lanes[:num_classes]=logits, lane[num_classes]=CE*lambda
    h1_ref,   # VMEM scratch (ho1, wo1, B_TILE, LANE): conv1 output, fully rewritten each step
    acc_ref,  # VMEM scratch (ho2*wo2*B_TILE, LANE): conv2 accumulator
    *,
    b_tile, ho1, wo1, ho2, wo2, num_classes, lambda_ce, compute_loss,
):
    f32 = jnp.float32
    p1 = ho1 * wo1
    p2 = ho2 * wo2

    # ---- conv1 + bias + ReLU: ONE MXU matmul (taps folded into K) --------------------
    x = x_ref[...].reshape(p1 * b_tile, LANE)                      # (p1*B, LANE)
    h1 = jnp.dot(x, w1_ref[...], preferred_element_type=f32) + b1_ref[...]
    h1 = jnp.maximum(h1, 0.0)
    h1_ref[...] = h1.reshape(ho1, wo1, b_tile, LANE)               # (i, j, b, c) layout

    # ---- conv2 (3x3, stride 2, pad 1): 9 tap matmuls, batch*spatial folded into M ----
    zero_tile = jnp.zeros((b_tile, LANE), f32)
    acc_ref[...] = jnp.zeros_like(acc_ref)
    for ki in range(3):
        for kj in range(3):
            tiles = []
            for ho in range(ho2):
                r = 2 * ho + ki - 1
                for wo in range(wo2):
                    c = 2 * wo + kj - 1
                    if 0 <= r < ho1 and 0 <= c < wo1:
                        tiles.append(h1_ref[r, c])                 # (B_TILE, LANE) aligned
                    else:
                        tiles.append(zero_tile)                    # implicit zero padding
            a_tap = jnp.concatenate(tiles, axis=0)                 # (p2*B, LANE)
            acc_ref[...] += jnp.dot(a_tap, w2_ref[ki * 3 + kj],
                                    preferred_element_type=f32)
    h2 = jnp.maximum(acc_ref[...] + b2_ref[...], 0.0)              # (p2*B, LANE)

    # ---- global average pool (single leading-axis reduction) + fc head ---------------
    pooled = jnp.sum(h2.reshape(p2, b_tile, LANE), axis=0) * (1.0 / float(p2))
    logits = jnp.dot(pooled, wf_ref[...], preferred_element_type=f32) + bf_ref[...]

    class_id = jax.lax.broadcasted_iota(jnp.int32, (b_tile, LANE), 1)
    out = jnp.where(class_id < num_classes, logits, 0.0)

    if compute_loss:
        # soft-label cross entropy; padded classes masked out of the LSE
        masked = jnp.where(class_id < num_classes, logits, -1e30)
        m = jnp.max(masked, axis=-1, keepdims=True)
        lse = m + jnp.log(jnp.sum(jnp.exp(masked - m), axis=-1, keepdims=True))
        per_ex = -jnp.sum(lab_ref[...] * (logits - lse), axis=-1, keepdims=True)
        out = jnp.where(class_id == num_classes, per_ex * lambda_ce, out)

    out_ref[...] = out


# ----------------------------------------------------------------------------
# Wrapper: layout glue (im2col, padding) + pallas_call
# ----------------------------------------------------------------------------
def fused_forward(params, x_nchw, labels, *, num_classes, lambda_ce,
                  compute_loss=True, max_b_tile=32):
    assert num_classes < LANE
    N, C, H, W = x_nchw.shape
    ho1, wo1 = (H - 1) // 2 + 1, (W - 1) // 2 + 1        # conv1 out (stride2, pad1, 3x3)
    ho2, wo2 = (ho1 - 1) // 2 + 1, (wo1 - 1) // 2 + 1    # conv2 out
    p1 = ho1 * wo1
    k1 = 9 * C
    assert k1 <= LANE

    b_tile = min(max_b_tile, _round_up(N, 8))            # sublane-aligned batch tile
    n_pad = _round_up(N, b_tile)
    grid_n = n_pad // b_tile

    # conv1 im2col in the wrapper (layout plumbing, plain XLA): (N, ho1, wo1, 9*C)
    x = jnp.transpose(x_nchw.astype(jnp.float32), (0, 2, 3, 1))    # NHWC
    xp = jnp.pad(x, ((0, 0), (1, 1), (1, 1), (0, 0)))
    taps = []
    for ki in range(3):
        for kj in range(3):
            taps.append(xp[:, ki:ki + 2 * ho1 - 1:2, kj:kj + 2 * wo1 - 1:2, :])
    x_col = jnp.concatenate(taps, axis=-1)
    x_col = jnp.pad(x_col, ((0, n_pad - N), (0, 0), (0, 0), (0, LANE - k1)))
    # (pixel, batch, K) ordering so conv1's matmul output lands directly in the
    # (i, j, b, c) scratch layout used by conv2.
    x_col = x_col.reshape(n_pad, p1, LANE).transpose(1, 0, 2)      # (p1, n_pad, LANE)

    lab = jnp.zeros((n_pad, LANE), jnp.float32)
    if labels is not None:
        lab = lab.at[:N, :num_classes].set(labels.astype(jnp.float32))

    kernel = functools.partial(
        _fused_encoder_ce_kernel, b_tile=b_tile, ho1=ho1, wo1=wo1, ho2=ho2, wo2=wo2,
        num_classes=num_classes, lambda_ce=float(lambda_ce), compute_loss=compute_loss)

    grid_spec = pltpu.PrefetchScalarGridSpec(
        num_scalar_prefetch=0,
        grid=(grid_n,),
        in_specs=[
            pl.BlockSpec((p1, b_tile, LANE), lambda n: (0, n, 0)),
            pl.BlockSpec((LANE, LANE), lambda n: (0, 0)),
            pl.BlockSpec((1, LANE), lambda n: (0, 0)),
            pl.BlockSpec((9, LANE, LANE), lambda n: (0, 0, 0)),
            pl.BlockSpec((1, LANE), lambda n: (0, 0)),
            pl.BlockSpec((LANE, LANE), lambda n: (0, 0)),
            pl.BlockSpec((1, LANE), lambda n: (0, 0)),
            pl.BlockSpec((b_tile, LANE), lambda n: (n, 0)),
        ],
        out_specs=pl.BlockSpec((b_tile, LANE), lambda n: (n, 0)),
        scratch_shapes=[
            pltpu.VMEM((ho1, wo1, b_tile, LANE), jnp.float32),
            pltpu.VMEM((ho2 * wo2 * b_tile, LANE), jnp.float32),
        ],
    )

    out = pl.pallas_call(
        kernel,
        out_shape=jax.ShapeDtypeStruct((n_pad, LANE), jnp.float32),
        grid_spec=grid_spec,
        compiler_params=pltpu.CompilerParams(
            dimension_semantics=("parallel",)),      # megacore sharding over batch tiles
    )(x_col, params["w1"], params["b1"], params["w2"], params["b2"],
      params["wf"], params["bf"], lab)

    logits = out[:N, :num_classes]
    ce = jnp.mean(out[:N, num_classes]) if compute_loss else None   # mean over real batch
    return logits, ce


# ----------------------------------------------------------------------------
# Parameter packing (K / channel dims zero-padded to LANE)
# ----------------------------------------------------------------------------
def pack_params(w1, b1, w2, b2, wf, bf):
    def pack_bias(b):
        return jnp.zeros((1, LANE), jnp.float32).at[0, :b.shape[0]].set(b)

    # conv1: (Cout, Cin, 3, 3) -> (9*Cin, Cout) tap-major, padded to (LANE, LANE)
    cout1, cin1, kh, kw = w1.shape
    w1_k = jnp.transpose(w1, (2, 3, 1, 0)).reshape(kh * kw * cin1, cout1)
    w1p = jnp.zeros((LANE, LANE), jnp.float32).at[:kh * kw * cin1, :cout1].set(w1_k)

    # conv2: (Cout, Cin, 3, 3) -> per-tap (Cin, Cout), padded to (9, LANE, LANE)
    cout2, cin2, _, _ = w2.shape
    w2_t = jnp.transpose(w2, (2, 3, 1, 0)).reshape(9, cin2, cout2)
    w2p = jnp.zeros((9, LANE, LANE), jnp.float32).at[:, :cin2, :cout2].set(w2_t)

    # fc: (classes, Cin) -> (Cin, classes) padded
    wfp = jnp.zeros((LANE, LANE), jnp.float32).at[:wf.shape[1], :wf.shape[0]].set(wf.T)

    return {"w1": w1p, "b1": pack_bias(b1),
            "w2": w2p, "b2": pack_bias(b2),
            "wf": wfp, "bf": pack_bias(bf)}


def init_params(key, c_in=4, hidden1=16, hidden2=32, num_classes=10):
    k1, k2, k3 = jax.random.split(key, 3)
    w1 = jax.random.normal(k1, (hidden1, c_in, 3, 3), jnp.float32) * 0.1
    w2 = jax.random.normal(k2, (hidden2, hidden1, 3, 3), jnp.float32) * 0.1
    wf = jax.random.normal(k3, (num_classes, hidden2), jnp.float32) * 0.1
    b1 = jnp.zeros((hidden1,), jnp.float32)
    b2 = jnp.zeros((hidden2,), jnp.float32)
    bf = jnp.zeros((num_classes,), jnp.float32)
    return pack_params(w1, b1, w2, b2, wf, bf), (w1, b1, w2, b2, wf, bf)


# ----------------------------------------------------------------------------
# ClassifierModel.forward equivalent
# ----------------------------------------------------------------------------
def classifier_forward(params, data, mode, lambda_ce=1.0, num_classes=10):
    img = data["img_tensor"].astype(jnp.float32)
    if mode == "encoder":
        label = data["label"].astype(jnp.float32)          # (N, C) soft labels
        logit, ce = fused_forward(params, img, label, num_classes=num_classes,
                                  lambda_ce=lambda_ce, compute_loss=True)
        return {"CrossEntropy": ce}, logit                  # logit.squeeze() would be a no-op
    elif mode == "inference":
        # TODO(synk): netE.train()/eval() toggles have no effect (no dropout/BN here).
        logit, _ = fused_forward(params, img, None, num_classes=num_classes,
                                 lambda_ce=lambda_ce, compute_loss=False)
        return logit
    else:
        raise ValueError(mode)


# ----------------------------------------------------------------------------
# Pure-JAX reference (numerical sanity check)
# ----------------------------------------------------------------------------
def reference_forward(raw, x, label, lambda_ce):
    w1, b1, w2, b2, wf, bf = raw
    hp = jax.lax.Precision.HIGHEST

    def conv(h, w, b):
        y = jax.lax.conv_general_dilated(
            h, w, window_strides=(2, 2), padding=((1, 1), (1, 1)),
            dimension_numbers=("NCHW", "OIHW", "NCHW"), precision=hp)
        return jax.nn.relu(y + b[None, :, None, None])

    h = conv(x, w1, b1)
    h = conv(h, w2, b2)
    feat = jnp.mean(h, axis=(2, 3))
    logits = jnp.dot(feat, wf.T, precision=hp) + bf
    logp = jax.nn.log_softmax(logits, axis=-1)
    loss = -jnp.mean(jnp.sum(label * logp, axis=-1)) * lambda_ce
    return logits, loss


# ----------------------------------------------------------------------------
if __name__ == "__main__":
    key = jax.random.PRNGKey(0)
    kx, kl, kp = jax.random.split(key, 3)

    batch, c_in, hw, num_classes = 2, 4, 16, 10
    lambda_ce = 1.0
    x = jax.random.normal(kx, (batch, c_in, hw, hw), jnp.float32)
    label_idx = jax.random.randint(kl, (batch,), 0, num_classes)
    label = jax.nn.one_hot(label_idx, num_classes, dtype=jnp.float32)

    params, raw = init_params(kp, c_in=c_in, num_classes=num_classes)
    data = {"img_tensor": x, "label": label}

    # mode == 'encoder'
    e_losses, logit = classifier_forward(params, data, "encoder",
                                         lambda_ce=lambda_ce, num_classes=num_classes)
    jax.block_until_ready(e_losses["CrossEntropy"])
    jax.block_until_ready(logit)

    # mode == 'inference'
    logit_inf = classifier_forward(params, data, "inference", num_classes=num_classes)
    jax.block_until_ready(logit_inf)

    # shape + numerical checks against the pure-JAX reference
    ref_logit, ref_loss = reference_forward(raw, x, label, lambda_ce)
    assert logit.shape == (batch, num_classes)
    assert logit_inf.shape == (batch, num_classes)
    assert e_losses["CrossEntropy"].shape == ()
    assert bool(jnp.allclose(logit, ref_logit, atol=2e-2, rtol=2e-2))
    assert bool(jnp.allclose(logit_inf, ref_logit, atol=2e-2, rtol=2e-2))
    assert bool(jnp.allclose(e_losses["CrossEntropy"], ref_loss, atol=2e-2, rtol=2e-2))

    print("KERNEL_OK")
</pallas_src>

<mosaic_0001>
module attributes {stable_mosaic.version = 11 : i64} {
  func.func @_fused_encoder_ce_kernel(%arg0: i32, %arg1: memref<64x8x128xf32, #tpu.memory_space<vmem>>, %arg2: memref<128x128xf32, #tpu.memory_space<vmem>>, %arg3: memref<1x128xf32, #tpu.memory_space<vmem>>, %arg4: memref<9x128x128xf32, #tpu.memory_space<vmem>>, %arg5: memref<1x128xf32, #tpu.memory_space<vmem>>, %arg6: memref<128x128xf32, #tpu.memory_space<vmem>>, %arg7: memref<1x128xf32, #tpu.memory_space<vmem>>, %arg8: memref<8x128xf32, #tpu.memory_space<vmem>>, %arg9: memref<8x128xf32, #tpu.memory_space<vmem>>, %arg10: memref<8x8x8x128xf32, #tpu.memory_space<vmem>>, %arg11: memref<128x128xf32, #tpu.memory_space<vmem>>) attributes {dimension_semantics = [#tpu.dimension_semantics<parallel>], iteration_bounds = array<i64: 1>, scalar_prefetch = 0 : i64, scratch_operands = 2 : i64, tpu.core_type = #tpu.core_type<tc>, window_params = [{transform_indices = @transform_0, window_bounds = array<i64: 64, 8, 128>}, {pipeline_mode = #tpu.pipeline_mode<synchronous>, transform_indices = @transform_1, window_bounds = array<i64: 128, 128>}, {pipeline_mode = #tpu.pipeline_mode<synchronous>, transform_indices = @transform_2, window_bounds = array<i64: 1, 128>}, {pipeline_mode = #tpu.pipeline_mode<synchronous>, transform_indices = @transform_3, window_bounds = array<i64: 9, 128, 128>}, {pipeline_mode = #tpu.pipeline_mode<synchronous>, transform_indices = @transform_4, window_bounds = array<i64: 1, 128>}, {pipeline_mode = #tpu.pipeline_mode<synchronous>, transform_indices = @transform_5, window_bounds = array<i64: 128, 128>}, {pipeline_mode = #tpu.pipeline_mode<synchronous>, transform_indices = @transform_6, window_bounds = array<i64: 1, 128>}, {transform_indices = @transform_7, window_bounds = array<i64: 8, 128>}, {transform_indices = @transform_8, window_bounds = array<i64: 8, 128>}]} {
    %c0 = arith.constant 0 : index
    %c0_0 = arith.constant 0 : index
    %c0_1 = arith.constant 0 : index
    %0 = vector.load %arg1[%c0, %c0_0, %c0_1] : memref<64x8x128xf32, #tpu.memory_space<vmem>>, vector<64x8x128xf32>
    %1 = vector.shape_cast %0 : vector<64x8x128xf32> to vector<512x128xf32>
    %c0_2 = arith.constant 0 : index
    %c0_3 = arith.constant 0 : index
    %2 = vector.load %arg2[%c0_2, %c0_3] : memref<128x128xf32, #tpu.memory_space<vmem>>, vector<128x128xf32>
    %cst = arith.constant dense<0.000000e+00> : vector<512x128xf32>
    %3 = tpu.matmul %1, %2, %cst {dimension_numbers = #tpu.dot_dimension_numbers<[1], [0], [0], [1], [0, 0, 1, 1], [], []>} : vector<512x128xf32>, vector<128x128xf32>, vector<512x128xf32> -> vector<512x128xf32>
    %c0_4 = arith.constant 0 : index
    %c0_5 = arith.constant 0 : index
    %4 = vector.load %arg3[%c0_4, %c0_5] : memref<1x128xf32, #tpu.memory_space<vmem>>, vector<1x128xf32>
    %5 = vector.broadcast %4 : vector<1x128xf32> to vector<512x128xf32>
    %6 = arith.addf %3, %5 : vector<512x128xf32>
    %cst_6 = arith.constant 0.000000e+00 : f32
    %7 = vector.broadcast %cst_6 : f32 to vector<512x128xf32>
    %8 = arith.maximumf %6, %7 : vector<512x128xf32>
    %9 = vector.shape_cast %8 : vector<512x128xf32> to vector<8x8x8x128xf32>
    %c0_7 = arith.constant 0 : index
    %c0_8 = arith.constant 0 : index
    %c0_9 = arith.constant 0 : index
    %c0_10 = arith.constant 0 : index
    %10 = vector.load %arg10[%c0_7, %c0_8, %c0_9, %c0_10] : memref<8x8x8x128xf32, #tpu.memory_space<vmem>>, vector<8x8x8x128xf32>
    tpu.vector_store %arg10[%c0_7, %c0_8, %c0_9, %c0_10], %9 {strides = array<i32>} : memref<8x8x8x128xf32, #tpu.memory_space<vmem>>, vector<8x8x8x128xf32>,
    %cst_11 = arith.constant 0.000000e+00 : f32
    %11 = vector.broadcast %cst_11 : f32 to vector<8x128xf32>
    %cst_12 = arith.constant 0.000000e+00 : f32
    %12 = vector.broadcast %cst_12 : f32 to vector<128x128xf32>
    %c0_13 = arith.constant 0 : index
    %c0_14 = arith.constant 0 : index
    %13 = vector.load %arg11[%c0_13, %c0_14] : memref<128x128xf32, #tpu.memory_space<vmem>>, vector<128x128xf32>
    tpu.vector_store %arg11[%c0_13, %c0_14], %12 {strides = array<i32>} : memref<128x128xf32, #tpu.memory_space<vmem>>, vector<128x128xf32>,
    %c1 = arith.constant 1 : index
    %c1_15 = arith.constant 1 : index
    %c0_16 = arith.constant 0 : index
    %c0_17 = arith.constant 0 : index
    %14 = vector.load %arg10[%c1, %c1_15, %c0_16, %c0_17] : memref<8x8x8x128xf32, #tpu.memory_space<vmem>>, vector<1x1x8x128xf32>
    %15 = vector.shape_cast %14 : vector<1x1x8x128xf32> to vector<8x128xf32>
    %c1_18 = arith.constant 1 : index
    %c3 = arith.constant 3 : index
    %c0_19 = arith.constant 0 : index
    %c0_20 = arith.constant 0 : index
    %16 = vector.load %arg10[%c1_18, %c3, %c0_19, %c0_20] : memref<8x8x8x128xf32, #tpu.memory_space<vmem>>, vector<1x1x8x128xf32>
    %17 = vector.shape_cast %16 : vector<1x1x8x128xf32> to vector<8x128xf32>
    %c1_21 = arith.constant 1 : index
    %c5 = arith.constant 5 : index
    %c0_22 = arith.constant 0 : index
    %c0_23 = arith.constant 0 : index
    %18 = vector.load %arg10[%c1_21, %c5, %c0_22, %c0_23] : memref<8x8x8x128xf32, #tpu.memory_space<vmem>>, vector<1x1x8x128xf32>
    %19 = vector.shape_cast %18 : vector<1x1x8x128xf32> to vector<8x128xf32>
    %c3_24 = arith.constant 3 : index
    %c1_25 = arith.constant 1 : index
    %c0_26 = arith.constant 0 : index
    %c0_27 = arith.constant 0 : index
    %20 = vector.load %arg10[%c3_24, %c1_25, %c0_26, %c0_27] : memref<8x8x8x128xf32, #tpu.memory_space<vmem>>, vector<1x1x8x128xf32>
    %21 = vector.shape_cast %20 : vector<1x1x8x128xf32> to vector<8x128xf32>
    %c3_28 = arith.constant 3 : index
    %c3_29 = arith.constant 3 : index
    %c0_30 = arith.constant 0 : index
    %c0_31 = arith.constant 0 : index
    %22 = vector.load %arg10[%c3_28, %c3_29, %c0_30, %c0_31] : memref<8x8x8x128xf32, #tpu.memory_space<vmem>>, vector<1x1x8x128xf32>
    %23 = vector.shape_cast %22 : vector<1x1x8x128xf32> to vector<8x128xf32>
    %c3_32 = arith.constant 3 : index
    %c5_33 = arith.constant 5 : index
    %c0_34 = arith.constant 0 : index
    %c0_35 = arith.constant 0 : index
    %24 = vector.load %arg10[%c3_32, %c5_33, %c0_34, %c0_35] : memref<8x8x8x128xf32, #tpu.memory_space<vmem>>, vector<1x1x8x128xf32>
    %25 = vector.shape_cast %24 : vector<1x1x8x128xf32> to vector<8x128xf32>
    %c5_36 = arith.constant 5 : index
    %c1_37 = arith.constant 1 : index
    %c0_38 = arith.constant 0 : index
    %c0_39 = arith.constant 0 : index
    %26 = vector.load %arg10[%c5_36, %c1_37, %c0_38, %c0_39] : memref<8x8x8x128xf32, #tpu.memory_space<vmem>>, vector<1x1x8x128xf32>
    %27 = vector.shape_cast %26 : vector<1x1x8x128xf32> to vector<8x128xf32>
    %c5_40 = arith.constant 5 : index
    %c3_41 = arith.constant 3 : index
    %c0_42 = arith.constant 0 : index
    %c0_43 = arith.constant 0 : index
    %28 = vector.load %arg10[%c5_40, %c3_41, %c0_42, %c0_43] : memref<8x8x8x128xf32, #tpu.memory_space<vmem>>, vector<1x1x8x128xf32>
    %29 = vector.shape_cast %28 : vector<1x1x8x128xf32> to vector<8x128xf32>
    %c5_44 = arith.constant 5 : index
    %c5_45 = arith.constant 5 : index
    %c0_46 = arith.constant 0 : index
    %c0_47 = arith.constant 0 : index
    %30 = vector.load %arg10[%c5_44, %c5_45, %c0_46, %c0_47] : memref<8x8x8x128xf32, #tpu.memory_space<vmem>>, vector<1x1x8x128xf32>
    %31 = vector.shape_cast %30 : vector<1x1x8x128xf32> to vector<8x128xf32>
    %32 = tpu.concatenate %11, %11, %11, %11, %11, %15, %17, %19, %11, %21, %23, %25, %11, %27, %29, %31 in 0 : vector<8x128xf32>, vector<8x128xf32>, vector<8x128xf32>, vector<8x128xf32>, vector<8x128xf32>, vector<8x128xf32>, vector<8x128xf32>, vector<8x128xf32>, vector<8x128xf32>, vector<8x128xf32>, vector<8x128xf32>, vector<8x128xf32>, vector<8x128xf32>, vector<8x128xf32>, vector<8x128xf32>, vector<8x128xf32> -> vector<128x128xf32>
    %c0_48 = arith.constant 0 : index
    %c0_49 = arith.constant 0 : index
    %33 = vector.load %arg11[%c0_48, %c0_49] : memref<128x128xf32, #tpu.memory_space<vmem>>, vector<128x128xf32>
    %c0_50 = arith.constant 0 : index
    %c0_51 = arith.constant 0 : index
    %c0_52 = arith.constant 0 : index
    %34 = vector.load %arg4[%c0_50, %c0_51, %c0_52] : memref<9x128x128xf32, #tpu.memory_space<vmem>>, vector<1x128x128xf32>
    %35 = vector.shape_cast %34 : vector<1x128x128xf32> to vector<128x128xf32>
    %cst_53 = arith.constant dense<0.000000e+00> : vector<128x128xf32>
    %36 = tpu.matmul %32, %35, %cst_53 {dimension_numbers = #tpu.dot_dimension_numbers<[1], [0], [0], [1], [0, 0, 1, 1], [], []>} : vector<128x128xf32>, vector<128x128xf32>, vector<128x128xf32> -> vector<128x128xf32>
    %37 = arith.addf %33, %36 : vector<128x128xf32>
    %c0_54 = arith.constant 0 : index
    %c0_55 = arith.constant 0 : index
    %38 = vector.load %arg11[%c0_54, %c0_55] : memref<128x128xf32, #tpu.memory_space<vmem>>, vector<128x128xf32>
    tpu.vector_store %arg11[%c0_54, %c0_55], %37 {strides = array<i32>} : memref<128x128xf32, #tpu.memory_space<vmem>>, vector<128x128xf32>,
    %c1_56 = arith.constant 1 : index
    %c0_57 = arith.constant 0 : index
    %c0_58 = arith.constant 0 : index
    %c0_59 = arith.constant 0 : index
    %39 = vector.load %arg10[%c1_56, %c0_57, %c0_58, %c0_59] : memref<8x8x8x128xf32, #tpu.memory_space<vmem>>, vector<1x1x8x128xf32>
    %40 = vector.shape_cast %39 : vector<1x1x8x128xf32> to vector<8x128xf32>
    %c1_60 = arith.constant 1 : index
    %c2 = arith.constant 2 : index
    %c0_61 = arith.constant 0 : index
    %c0_62 = arith.constant 0 : index
    %41 = vector.load %arg10[%c1_60, %c2, %c0_61, %c0_62] : memref<8x8x8x128xf32, #tpu.memory_space<vmem>>, vector<1x1x8x128xf32>
    %42 = vector.shape_cast %41 : vector<1x1x8x128xf32> to vector<8x128xf32>
    %c1_63 = arith.constant 1 : index
    %c4 = arith.constant 4 : index
    %c0_64 = arith.constant 0 : index
    %c0_65 = arith.constant 0 : index
    %43 = vector.load %arg10[%c1_63, %c4, %c0_64, %c0_65] : memref<8x8x8x128xf32, #tpu.memory_space<vmem>>, vector<1x1x8x128xf32>
    %44 = vector.shape_cast %43 : vector<1x1x8x128xf32> to vector<8x128xf32>
    %c1_66 = arith.constant 1 : index
    %c6 = arith.constant 6 : index
    %c0_67 = arith.constant 0 : index
    %c0_68 = arith.constant 0 : index
    %45 = vector.load %arg10[%c1_66, %c6, %c0_67, %c0_68] : memref<8x8x8x128xf32, #tpu.memory_space<vmem>>, vector<1x1x8x128xf32>
    %46 = vector.shape_cast %45 : vector<1x1x8x128xf32> to vector<8x128xf32>
    %c3_69 = arith.constant 3 : index
    %c0_70 = arith.constant 0 : index
    %c0_71 = arith.constant 0 : index
    %c0_72 = arith.constant 0 : index
    %47 = vector.load %arg10[%c3_69, %c0_70, %c0_71, %c0_72] : memref<8x8x8x128xf32, #tpu.memory_space<vmem>>, vector<1x1x8x128xf32>
    %48 = vector.shape_cast %47 : vector<1x1x8x128xf32> to vector<8x128xf32>
    %c3_73 = arith.constant 3 : index
    %c2_74 = arith.constant 2 : index
    %c0_75 = arith.constant 0 : index
    %c0_76 = arith.constant 0 : index
    %49 = vector.load %arg10[%c3_73, %c2_74, %c0_75, %c0_76] : memref<8x8x8x128xf32, #tpu.memory_space<vmem>>, vector<1x1x8x128xf32>
    %50 = vector.shape_cast %49 : vector<1x1x8x128xf32> to vector<8x128xf32>
    %c3_77 = arith.constant 3 : index
    %c4_78 = arith.constant 4 : index
    %c0_79 = arith.constant 0 : index
    %c0_80 = arith.constant 0 : index
    %51 = vector.load %arg10[%c3_77, %c4_78, %c0_79, %c0_80] : memref<8x8x8x128xf32, #tpu.memory_space<vmem>>, vector<1x1x8x128xf32>
    %52 = vector.shape_cast %51 : vector<1x1x8x128xf32> to vector<8x128xf32>
    %c3_81 = arith.constant 3 : index
    %c6_82 = arith.constant 6 : index
    %c0_83 = arith.constant 0 : index
    %c0_84 = arith.constant 0 : index
    %53 = vector.load %arg10[%c3_81, %c6_82, %c0_83, %c0_84] : memref<8x8x8x128xf32, #tpu.memory_space<vmem>>, vector<1x1x8x128xf32>
    %54 = vector.shape_cast %53 : vector<1x1x8x128xf32> to vector<8x128xf32>
    %c5_85 = arith.constant 5 : index
    %c0_86 = arith.constant 0 : index
    %c0_87 = arith.constant 0 : index
    %c0_88 = arith.constant 0 : index
    %55 = vector.load %arg10[%c5_85, %c0_86, %c0_87, %c0_88] : memref<8x8x8x128xf32, #tpu.memory_space<vmem>>, vector<1x1x8x128xf32>
    %56 = vector.shape_cast %55 : vector<1x1x8x128xf32> to vector<8x128xf32>
    %c5_89 = arith.constant 5 : index
    %c2_90 = arith.constant 2 : index
    %c0_91 = arith.constant 0 : index
    %c0_92 = arith.constant 0 : index
    %57 = vector.load %arg10[%c5_89, %c2_90, %c0_91, %c0_92] : memref<8x8x8x128xf32, #tpu.memory_space<vmem>>, vector<1x1x8x128xf32>
    %58 = vector.shape_cast %57 : vector<1x1x8x128xf32> to vector<8x128xf32>
    %c5_93 = arith.constant 5 : index
    %c4_94 = arith.constant 4 : index
    %c0_95 = arith.constant 0 : index
    %c0_96 = arith.constant 0 : index
    %59 = vector.load %arg10[%c5_93, %c4_94, %c0_95, %c0_96] : memref<8x8x8x128xf32, #tpu.memory_space<vmem>>, vector<1x1x8x128xf32>
    %60 = vector.shape_cast %59 : vector<1x1x8x128xf32> to vector<8x128xf32>
    %c5_97 = arith.constant 5 : index
    %c6_98 = arith.constant 6 : index
    %c0_99 = arith.constant 0 : index
    %c0_100 = arith.constant 0 : index
    %61 = vector.load %arg10[%c5_97, %c6_98, %c0_99, %c0_100] : memref<8x8x8x128xf32, #tpu.memory_space<vmem>>, vector<1x1x8x128xf32>
    %62 = vector.shape_cast %61 : vector<1x1x8x128xf32> to vector<8x128xf32>
    %63 = tpu.concatenate %11, %11, %11, %11, %40, %42, %44, %46, %48, %50, %52, %54, %56, %58, %60, %62 in 0 : vector<8x128xf32>, vector<8x128xf32>, vector<8x128xf32>, vector<8x128xf32>, vector<8x128xf32>, vector<8x128xf32>, vector<8x128xf32>, vector<8x128xf32>, vector<8x128xf32>, vector<8x128xf32>, vector<8x128xf32>, vector<8x128xf32>, vector<8x128xf32>, vector<8x128xf32>, vector<8x128xf32>, vector<8x128xf32> -> vector<128x128xf32>
    %c0_101 = arith.constant 0 : index
    %c0_102 = arith.constant 0 : index
    %64 = vector.load %arg11[%c0_101, %c0_102] : memref<128x128xf32, #tpu.memory_space<vmem>>, vector<128x128xf32>
    %c1_103 = arith.constant 1 : index
    %c0_104 = arith.constant 0 : index
    %c0_105 = arith.constant 0 : index
    %65 = vector.load %arg4[%c1_103, %c0_104, %c0_105] : memref<9x128x128xf32, #tpu.memory_space<vmem>>, vector<1x128x128xf32>
    %66 = vector.shape_cast %65 : vector<1x128x128xf32> to vector<128x128xf32>
    %cst_106 = arith.constant dense<0.000000e+00> : vector<128x128xf32>
    %67 = tpu.matmul %63, %66, %cst_106 {dimension_numbers = #tpu.dot_dimension_numbers<[1], [0], [0], [1], [0, 0, 1, 1], [], []>} : vector<128x128xf32>, vector<128x128xf32>, vector<128x128xf32> -> vector<128x128xf32>
    %68 = arith.addf %64, %67 : vector<128x128xf32>
    %c0_107 = arith.constant 0 : index
    %c0_108 = arith.constant 0 : index
    %69 = vector.load %arg11[%c0_107, %c0_108] : memref<128x128xf32, #tpu.memory_space<vmem>>, vector<128x128xf32>
    tpu.vector_store %arg11[%c0_107, %c0_108], %68 {strides = array<i32>} : memref<128x128xf32, #tpu.memory_space<vmem>>, vector<128x128xf32>,
    %c1_109 = arith.constant 1 : index
    %c1_110 = arith.constant 1 : index
    %c0_111 = arith.constant 0 : index
    %c0_112 = arith.constant 0 : index
    %70 = vector.load %arg10[%c1_109, %c1_110, %c0_111, %c0_112] : memref<8x8x8x128xf32, #tpu.memory_space<vmem>>, vector<1x1x8x128xf32>
    %71 = vector.shape_cast %70 : vector<1x1x8x128xf32> to vector<8x128xf32>
    %c1_113 = arith.constant 1 : index
    %c3_114 = arith.constant 3 : index
    %c0_115 = arith.constant 0 : index
    %c0_116 = arith.constant 0 : index
    %72 = vector.load %arg10[%c1_113, %c3_114, %c0_115, %c0_116] : memref<8x8x8x128xf32, #tpu.memory_space<vmem>>, vector<1x1x8x128xf32>
    %73 = vector.shape_cast %72 : vector<1x1x8x128xf32> to vector<8x128xf32>
    %c1_117 = arith.constant 1 : index
    %c5_118 = arith.constant 5 : index
    %c0_119 = arith.constant 0 : index
    %c0_120 = arith.constant 0 : index
    %74 = vector.load %arg10[%c1_117, %c5_118, %c0_119, %c0_120] : memref<8x8x8x128xf32, #tpu.memory_space<vmem>>, vector<1x1x8x128xf32>
    %75 = vector.shape_cast %74 : vector<1x1x8x128xf32> to vector<8x128xf32>
    %c1_121 = arith.constant 1 : index
    %c7 = arith.constant 7 : index
    %c0_122 = arith.constant 0 : index
    %c0_123 = arith.constant 0 : index
    %76 = vector.load %arg10[%c1_121, %c7, %c0_122, %c0_123] : memref<8x8x8x128xf32, #tpu.memory_space<vmem>>, vector<1x1x8x128xf32>
    %77 = vector.shape_cast %76 : vector<1x1x8x128xf32> to vector<8x128xf32>
    %c3_124 = arith.constant 3 : index
    %c1_125 = arith.constant 1 : index
    %c0_126 = arith.constant 0 : index
    %c0_127 = arith.constant 0 : index
    %78 = vector.load %arg10[%c3_124, %c1_125, %c0_126, %c0_127] : memref<8x8x8x128xf32, #tpu.memory_space<vmem>>, vector<1x1x8x128xf32>
    %79 = vector.shape_cast %78 : vector<1x1x8x128xf32> to vector<8x128xf32>
    %c3_128 = arith.constant 3 : index
    %c3_129 = arith.constant 3 : index
    %c0_130 = arith.constant 0 : index
    %c0_131 = arith.constant 0 : index
    %80 = vector.load %arg10[%c3_128, %c3_129, %c0_130, %c0_131] : memref<8x8x8x128xf32, #tpu.memory_space<vmem>>, vector<1x1x8x128xf32>
    %81 = vector.shape_cast %80 : vector<1x1x8x128xf32> to vector<8x128xf32>
    %c3_132 = arith.constant 3 : index
    %c5_133 = arith.constant 5 : index
    %c0_134 = arith.constant 0 : index
    %c0_135 = arith.constant 0 : index
    %82 = vector.load %arg10[%c3_132, %c5_133, %c0_134, %c0_135] : memref<8x8x8x128xf32, #tpu.memory_space<vmem>>, vector<1x1x8x128xf32>
    %83 = vector.shape_cast %82 : vector<1x1x8x128xf32> to vector<8x128xf32>
    %c3_136 = arith.constant 3 : index
    %c7_137 = arith.constant 7 : index
    %c0_138 = arith.constant 0 : index
    %c0_139 = arith.constant 0 : index
    %84 = vector.load %arg10[%c3_136, %c7_137, %c0_138, %c0_139] : memref<8x8x8x128xf32, #tpu.memory_space<vmem>>, vector<1x1x8x128xf32>
    %85 = vector.shape_cast %84 : vector<1x1x8x128xf32> to vector<8x128xf32>
    %c5_140 = arith.constant 5 : index
    %c1_141 = arith.constant 1 : index
    %c0_142 = arith.constant 0 : index
    %c0_143 = arith.constant 0 : index
    %86 = vector.load %arg10[%c5_140, %c1_141, %c0_142, %c0_143] : memref<8x8x8x128xf32, #tpu.memory_space<vmem>>, vector<1x1x8x128xf32>
    %87 = vector.shape_cast %86 : vector<1x1x8x128xf32> to vector<8x128xf32>
    %c5_144 = arith.constant 5 : index
    %c3_145 = arith.constant 3 : index
    %c0_146 = arith.constant 0 : index
    %c0_147 = arith.constant 0 : index
    %88 = vector.load %arg10[%c5_144, %c3_145, %c0_146, %c0_147] : memref<8x8x8x128xf32, #tpu.memory_space<vmem>>, vector<1x1x8x128xf32>
    %89 = vector.shape_cast %88 : vector<1x1x8x128xf32> to vector<8x128xf32>
    %c5_148 = arith.constant 5 : index
    %c5_149 = arith.constant 5 : index
    %c0_150 = arith.constant 0 : index
    %c0_151 = arith.constant 0 : index
    %90 = vector.load %arg10[%c5_148, %c5_149, %c0_150, %c0_151] : memref<8x8x8x128xf32, #tpu.memory_space<vmem>>, vector<1x1x8x128xf32>
    %91 = vector.shape_cast %90 : vector<1x1x8x128xf32> to vector<8x128xf32>
    %c5_152 = arith.constant 5 : index
    %c7_153 = arith.constant 7 : index
    %c0_154 = arith.constant 0 : index
    %c0_155 = arith.constant 0 : index
    %92 = vector.load %arg10[%c5_152, %c7_153, %c0_154, %c0_155] : memref<8x8x8x128xf32, #tpu.memory_space<vmem>>, vector<1x1x8x128xf32>
    %93 = vector.shape_cast %92 : vector<1x1x8x128xf32> to vector<8x128xf32>
    %94 = tpu.concatenate %11, %11, %11, %11, %71, %73, %75, %77, %79, %81, %83, %85, %87, %89, %91, %93 in 0 : vector<8x128xf32>, vector<8x128xf32>, vector<8x128xf32>, vector<8x128xf32>, vector<8x128xf32>, vector<8x128xf32>, vector<8x128xf32>, vector<8x128xf32>, vector<8x128xf32>, vector<8x128xf32>, vector<8x128xf32>, vector<8x128xf32>, vector<8x128xf32>, vector<8x128xf32>, vector<8x128xf32>, vector<8x128xf32> -> vector<128x128xf32>
    %c0_156 = arith.constant 0 : index
    %c0_157 = arith.constant 0 : index
    %95 = vector.load %arg11[%c0_156, %c0_157] : memref<128x128xf32, #tpu.memory_space<vmem>>, vector<128x128xf32>
    %c2_158 = arith.constant 2 : index
    %c0_159 = arith.constant 0 : index
    %c0_160 = arith.constant 0 : index
    %96 = vector.load %arg4[%c2_158, %c0_159, %c0_160] : memref<9x128x128xf32, #tpu.memory_space<vmem>>, vector<1x128x128xf32>
    %97 = vector.shape_cast %96 : vector<1x128x128xf32> to vector<128x128xf32>
    %cst_161 = arith.constant dense<0.000000e+00> : vector<128x128xf32>
    %98 = tpu.matmul %94, %97, %cst_161 {dimension_numbers = #tpu.dot_dimension_numbers<[1], [0], [0], [1], [0, 0, 1, 1], [], []>} : vector<128x128xf32>, vector<128x128xf32>, vector<128x128xf32> -> vector<128x128xf32>
    %99 = arith.addf %95, %98 : vector<128x128xf32>
    %c0_162 = arith.constant 0 : index
    %c0_163 = arith.constant 0 : index
    %100 = vector.load %arg11[%c0_162, %c0_163] : memref<128x128xf32, #tpu.memory_space<vmem>>, vector<128x128xf32>
    tpu.vector_store %arg11[%c0_162, %c0_163], %99 {strides = array<i32>} : memref<128x128xf32, #tpu.memory_space<vmem>>, vector<128x128xf32>,
    %c0_164 = arith.constant 0 : index
    %c1_165 = arith.constant 1 : index
    %c0_166 = arith.constant 0 : index
    %c0_167 = arith.constant 0 : index
    %101 = vector.load %arg10[%c0_164, %c1_165, %c0_166, %c0_167] : memref<8x8x8x128xf32, #tpu.memory_space<vmem>>, vector<1x1x8x128xf32>
    %102 = vector.shape_cast %101 : vector<1x1x8x128xf32> to vector<8x128xf32>
    %c0_168 = arith.constant 0 : index
    %c3_169 = arith.constant 3 : index
    %c0_170 = arith.constant 0 : index
    %c0_171 = arith.constant 0 : index
    %103 = vector.load %arg10[%c0_168, %c3_169, %c0_170, %c0_171] : memref<8x8x8x128xf32, #tpu.memory_space<vmem>>, vector<1x1x8x128xf32>
    %104 = vector.shape_cast %103 : vector<1x1x8x128xf32> to vector<8x128xf32>
    %c0_172 = arith.constant 0 : index
    %c5_173 = arith.constant 5 : index
    %c0_174 = arith.constant 0 : index
    %c0_175 = arith.constant 0 : index
    %105 = vector.load %arg10[%c0_172, %c5_173, %c0_174, %c0_175] : memref<8x8x8x128xf32, #tpu.memory_space<vmem>>, vector<1x1x8x128xf32>
    %106 = vector.shape_cast %105 : vector<1x1x8x128xf32> to vector<8x128xf32>
    %c2_176 = arith.constant 2 : index
    %c1_177 = arith.constant 1 : index
    %c0_178 = arith.constant 0 : index
    %c0_179 = arith.constant 0 : index
    %107 = vector.load %arg10[%c2_176, %c1_177, %c0_178, %c0_179] : memref<8x8x8x128xf32, #tpu.memory_space<vmem>>, vector<1x1x8x128xf32>
    %108 = vector.shape_cast %107 : vector<1x1x8x128xf32> to vector<8x128xf32>
    %c2_180 = arith.constant 2 : index
    %c3_181 = arith.constant 3 : index
    %c0_182 = arith.constant 0 : index
    %c0_183 = arith.constant 0 : index
    %109 = vector.load %arg10[%c2_180, %c3_181, %c0_182, %c0_183] : memref<8x8x8x128xf32, #tpu.memory_space<vmem>>, vector<1x1x8x128xf32>
    %110 = vector.shape_cast %109 : vector<1x1x8x128xf32> to vector<8x128xf32>
    %c2_184 = arith.constant 2 : index
    %c5_185 = arith.constant 5 : index
    %c0_186 = arith.constant 0 : index
    %c0_187 = arith.constant 0 : index
    %111 = vector.load %arg10[%c2_184, %c5_185, %c0_186, %c0_187] : memref<8x8x8x128xf32, #tpu.memory_space<vmem>>, vector<1x1x8x128xf32>
    %112 = vector.shape_cast %111 : vector<1x1x8x128xf32> to vector<8x128xf32>
    %c4_188 = arith.constant 4 : index
    %c1_189 = arith.constant 1 : index
    %c0_190 = arith.constant 0 : index
    %c0_191 = arith.constant 0 : index
    %113 = vector.load %arg10[%c4_188, %c1_189, %c0_190, %c0_191] : memref<8x8x8x128xf32, #tpu.memory_space<vmem>>, vector<1x1x8x128xf32>
    %114 = vector.shape_cast %113 : vector<1x1x8x128xf32> to vector<8x128xf32>
    %c4_192 = arith.constant 4 : index
    %c3_193 = arith.constant 3 : index
    %c0_194 = arith.constant 0 : index
    %c0_195 = arith.constant 0 : index
    %115 = vector.load %arg10[%c4_192, %c3_193, %c0_194, %c0_195] : memref<8x8x8x128xf32, #tpu.memory_space<vmem>>, vector<1x1x8x128xf32>
    %116 = vector.shape_cast %115 : vector<1x1x8x128xf32> to vector<8x128xf32>
    %c4_196 = arith.constant 4 : index
    %c5_197 = arith.constant 5 : index
    %c0_198 = arith.constant 0 : index
    %c0_199 = arith.constant 0 : index
    %117 = vector.load %arg10[%c4_196, %c5_197, %c0_198, %c0_199] : memref<8x8x8x128xf32, #tpu.memory_space<vmem>>, vector<1x1x8x128xf32>
    %118 = vector.shape_cast %117 : vector<1x1x8x128xf32> to vector<8x128xf32>
    %c6_200 = arith.constant 6 : index
    %c1_201 = arith.constant 1 : index
    %c0_202 = arith.constant 0 : index
    %c0_203 = arith.constant 0 : index
    %119 = vector.load %arg10[%c6_200, %c1_201, %c0_202, %c0_203] : memref<8x8x8x128xf32, #tpu.memory_space<vmem>>, vector<1x1x8x128xf32>
    %120 = vector.shape_cast %119 : vector<1x1x8x128xf32> to vector<8x128xf32>
    %c6_204 = arith.constant 6 : index
    %c3_205 = arith.constant 3 : index
    %c0_206 = arith.constant 0 : index
    %c0_207 = arith.constant 0 : index
    %121 = vector.load %arg10[%c6_204, %c3_205, %c0_206, %c0_207] : memref<8x8x8x128xf32, #tpu.memory_space<vmem>>, vector<1x1x8x128xf32>
    %122 = vector.shape_cast %121 : vector<1x1x8x128xf32> to vector<8x128xf32>
    %c6_208 = arith.constant 6 : index
    %c5_209 = arith.constant 5 : index
    %c0_210 = arith.constant 0 : index
    %c0_211 = arith.constant 0 : index
    %123 = vector.load %arg10[%c6_208, %c5_209, %c0_210, %c0_211] : memref<8x8x8x128xf32, #tpu.memory_space<vmem>>, vector<1x1x8x128xf32>
    %124 = vector.shape_cast %123 : vector<1x1x8x128xf32> to vector<8x128xf32>
    %125 = tpu.concatenate %11, %102, %104, %106, %11, %108, %110, %112, %11, %114, %116, %118, %11, %120, %122, %124 in 0 : vector<8x128xf32>, vector<8x128xf32>, vector<8x128xf32>, vector<8x128xf32>, vector<8x128xf32>, vector<8x128xf32>, vector<8x128xf32>, vector<8x128xf32>, vector<8x128xf32>, vector<8x128xf32>, vector<8x128xf32>, vector<8x128xf32>, vector<8x128xf32>, vector<8x128xf32>, vector<8x128xf32>, vector<8x128xf32> -> vector<128x128xf32>
    %c0_212 = arith.constant 0 : index
    %c0_213 = arith.constant 0 : index
    %126 = vector.load %arg11[%c0_212, %c0_213] : memref<128x128xf32, #tpu.memory_space<vmem>>, vector<128x128xf32>
    %c3_214 = arith.constant 3 : index
    %c0_215 = arith.constant 0 : index
    %c0_216 = arith.constant 0 : index
    %127 = vector.load %arg4[%c3_214, %c0_215, %c0_216] : memref<9x128x128xf32, #tpu.memory_space<vmem>>, vector<1x128x128xf32>
    %128 = vector.shape_cast %127 : vector<1x128x128xf32> to vector<128x128xf32>
    %cst_217 = arith.constant dense<0.000000e+00> : vector<128x128xf32>
    %129 = tpu.matmul %125, %128, %cst_217 {dimension_numbers = #tpu.dot_dimension_numbers<[1], [0], [0], [1], [0, 0, 1, 1], [], []>} : vector<128x128xf32>, vector<128x128xf32>, vector<128x128xf32> -> vector<128x128xf32>
    %130 = arith.addf %126, %129 : vector<128x128xf32>
    %c0_218 = arith.constant 0 : index
    %c0_219 = arith.constant 0 : index
    %131 = vector.load %arg11[%c0_218, %c0_219] : memref<128x128xf32, #tpu.memory_space<vmem>>, vector<128x128xf32>
    tpu.vector_store %arg11[%c0_218, %c0_219], %130 {strides = array<i32>} : memref<128x128xf32, #tpu.memory_space<vmem>>, vector<128x128xf32>,
    %c0_220 = arith.constant 0 : index
    %c0_221 = arith.constant 0 : index
    %c0_222 = arith.constant 0 : index
    %c0_223 = arith.constant 0 : index
    %132 = vector.load %arg10[%c0_220, %c0_221, %c0_222, %c0_223] : memref<8x8x8x128xf32, #tpu.memory_space<vmem>>, vector<1x1x8x128xf32>
    %133 = vector.shape_cast %132 : vector<1x1x8x128xf32> to vector<8x128xf32>
    %c0_224 = arith.constant 0 : index
    %c2_225 = arith.constant 2 : index
    %c0_226 = arith.constant 0 : index
    %c0_227 = arith.constant 0 : index
    %134 = vector.load %arg10[%c0_224, %c2_225, %c0_226, %c0_227] : memref<8x8x8x128xf32, #tpu.memory_space<vmem>>, vector<1x1x8x128xf32>
    %135 = vector.shape_cast %134 : vector<1x1x8x128xf32> to vector<8x128xf32>
    %c0_228 = arith.constant 0 : index
    %c4_229 = arith.constant 4 : index
    %c0_230 = arith.constant 0 : index
    %c0_231 = arith.constant 0 : index
    %136 = vector.load %arg10[%c0_228, %c4_229, %c0_230, %c0_231] : memref<8x8x8x128xf32, #tpu.memory_space<vmem>>, vector<1x1x8x128xf32>
    %137 = vector.shape_cast %136 : vector<1x1x8x128xf32> to vector<8x128xf32>
    %c0_232 = arith.constant 0 : index
    %c6_233 = arith.constant 6 : index
    %c0_234 = arith.constant 0 : index
    %c0_235 = arith.constant 0 : index
    %138 = vector.load %arg10[%c0_232, %c6_233, %c0_234, %c0_235] : memref<8x8x8x128xf32, #tpu.memory_space<vmem>>, vector<1x1x8x128xf32>
    %139 = vector.shape_cast %138 : vector<1x1x8x128xf32> to vector<8x128xf32>
    %c2_236 = arith.constant 2 : index
    %c0_237 = arith.constant 0 : index
    %c0_238 = arith.constant 0 : index
    %c0_239 = arith.constant 0 : index
    %140 = vector.load %arg10[%c2_236, %c0_237, %c0_238, %c0_239] : memref<8x8x8x128xf32, #tpu.memory_space<vmem>>, vector<1x1x8x128xf32>
    %141 = vector.shape_cast %140 : vector<1x1x8x128xf32> to vector<8x128xf32>
    %c2_240 = arith.constant 2 : index
    %c2_241 = arith.constant 2 : index
    %c0_242 = arith.constant 0 : index
    %c0_243 = arith.constant 0 : index
    %142 = vector.load %arg10[%c2_240, %c2_241, %c0_242, %c0_243] : memref<8x8x8x128xf32, #tpu.memory_space<vmem>>, vector<1x1x8x128xf32>
    %143 = vector.shape_cast %142 : vector<1x1x8x128xf32> to vector<8x128xf32>
    %c2_244 = arith.constant 2 : index
    %c4_245 = arith.constant 4 : index
    %c0_246 = arith.constant 0 : index
    %c0_247 = arith.constant 0 : index
    %144 = vector.load %arg10[%c2_244, %c4_245, %c0_246, %c0_247] : memref<8x8x8x128xf32, #tpu.memory_space<vmem>>, vector<1x1x8x128xf32>
    %145 = vector.shape_cast %144 : vector<1x1x8x128xf32> to vector<8x128xf32>
    %c2_248 = arith.constant 2 : index
    %c6_249 = arith.constant 6 : index
    %c0_250 = arith.constant 0 : index
    %c0_251 = arith.constant 0 : index
    %146 = vector.load %arg10[%c2_248, %c6_249, %c0_250, %c0_251] : memref<8x8x8x128xf32, #tpu.memory_space<vmem>>, vector<1x1x8x128xf32>
    %147 = vector.shape_cast %146 : vector<1x1x8x128xf32> to vector<8x128xf32>
    %c4_252 = arith.constant 4 : index
    %c0_253 = arith.constant 0 : index
    %c0_254 = arith.constant 0 : index
    %c0_255 = arith.constant 0 : index
    %148 = vector.load %arg10[%c4_252, %c0_253, %c0_254, %c0_255] : memref<8x8x8x128xf32, #tpu.memory_space<vmem>>, vector<1x1x8x128xf32>
    %149 = vector.shape_cast %148 : vector<1x1x8x128xf32> to vector<8x128xf32>
    %c4_256 = arith.constant 4 : index
    %c2_257 = arith.constant 2 : index
    %c0_258 = arith.constant 0 : index
    %c0_259 = arith.constant 0 : index
    %150 = vector.load %arg10[%c4_256, %c2_257, %c0_258, %c0_259] : memref<8x8x8x128xf32, #tpu.memory_space<vmem>>, vector<1x1x8x128xf32>
    %151 = vector.shape_cast %150 : vector<1x1x8x128xf32> to vector<8x128xf32>
    %c4_260 = arith.constant 4 : index
    %c4_261 = arith.constant 4 : index
    %c0_262 = arith.constant 0 : index
    %c0_263 = arith.constant 0 : index
    %152 = vector.load %arg10[%c4_260, %c4_261, %c0_262, %c0_263] : memref<8x8x8x128xf32, #tpu.memory_space<vmem>>, vector<1x1x8x128xf32>
    %153 = vector.shape_cast %152 : vector<1x1x8x128xf32> to vector<8x128xf32>
    %c4_264 = arith.constant 4 : index
    %c6_265 = arith.constant 6 : index
    %c0_266 = arith.constant 0 : index
    %c0_267 = arith.constant 0 : index
    %154 = vector.load %arg10[%c4_264, %c6_265, %c0_266, %c0_267] : memref<8x8x8x128xf32, #tpu.memory_space<vmem>>, vector<1x1x8x128xf32>
    %155 = vector.shape_cast %154 : vector<1x1x8x128xf32> to vector<8x128xf32>
    %c6_268 = arith.constant 6 : index
    %c0_269 = arith.constant 0 : index
    %c0_270 = arith.constant 0 : index
    %c0_271 = arith.constant 0 : index
    %156 = vector.load %arg10[%c6_268, %c0_269, %c0_270, %c0_271] : memref<8x8x8x128xf32, #tpu.memory_space<vmem>>, vector<1x1x8x128xf32>
    %157 = vector.shape_cast %156 : vector<1x1x8x128xf32> to vector<8x128xf32>
    %c6_272 = arith.constant 6 : index
    %c2_273 = arith.constant 2 : index
    %c0_274 = arith.constant 0 : index
    %c0_275 = arith.constant 0 : index
    %158 = vector.load %arg10[%c6_272, %c2_273, %c0_274, %c0_275] : memref<8x8x8x128xf32, #tpu.memory_space<vmem>>, vector<1x1x8x128xf32>
    %159 = vector.shape_cast %158 : vector<1x1x8x128xf32> to vector<8x128xf32>
    %c6_276 = arith.constant 6 : index
    %c4_277 = arith.constant 4 : index
    %c0_278 = arith.constant 0 : index
    %c0_279 = arith.constant 0 : index
    %160 = vector.load %arg10[%c6_276, %c4_277, %c0_278, %c0_279] : memref<8x8x8x128xf32, #tpu.memory_space<vmem>>, vector<1x1x8x128xf32>
    %161 = vector.shape_cast %160 : vector<1x1x8x128xf32> to vector<8x128xf32>
    %c6_280 = arith.constant 6 : index
    %c6_281 = arith.constant 6 : index
    %c0_282 = arith.constant 0 : index
    %c0_283 = arith.constant 0 : index
    %162 = vector.load %arg10[%c6_280, %c6_281, %c0_282, %c0_283] : memref<8x8x8x128xf32, #tpu.memory_space<vmem>>, vector<1x1x8x128xf32>
    %163 = vector.shape_cast %162 : vector<1x1x8x128xf32> to vector<8x128xf32>
    %164 = tpu.concatenate %133, %135, %137, %139, %141, %143, %145, %147, %149, %151, %153, %155, %157, %159, %161, %163 in 0 : vector<8x128xf32>, vector<8x128xf32>, vector<8x128xf32>, vector<8x128xf32>, vector<8x128xf32>, vector<8x128xf32>, vector<8x128xf32>, vector<8x128xf32>, vector<8x128xf32>, vector<8x128xf32>, vector<8x128xf32>, vector<8x128xf32>, vector<8x128xf32>, vector<8x128xf32>, vector<8x128xf32>, vector<8x128xf32> -> vector<128x128xf32>
    %c0_284 = arith.constant 0 : index
    %c0_285 = arith.constant 0 : index
    %165 = vector.load %arg11[%c0_284, %c0_285] : memref<128x128xf32, #tpu.memory_space<vmem>>, vector<128x128xf32>
    %c4_286 = arith.constant 4 : index
    %c0_287 = arith.constant 0 : index
    %c0_288 = arith.constant 0 : index
    %166 = vector.load %arg4[%c4_286, %c0_287, %c0_288] : memref<9x128x128xf32, #tpu.memory_space<vmem>>, vector<1x128x128xf32>
    %167 = vector.shape_cast %166 : vector<1x128x128xf32> to vector<128x128xf32>
    %cst_289 = arith.constant dense<0.000000e+00> : vector<128x128xf32>
    %168 = tpu.matmul %164, %167, %cst_289 {dimension_numbers = #tpu.dot_dimension_numbers<[1], [0], [0], [1], [0, 0, 1, 1], [], []>} : vector<128x128xf32>, vector<128x128xf32>, vector<128x128xf32> -> vector<128x128xf32>
    %169 = arith.addf %165, %168 : vector<128x128xf32>
    %c0_290 = arith.constant 0 : index
    %c0_291 = arith.constant 0 : index
    %170 = vector.load %arg11[%c0_290, %c0_291] : memref<128x128xf32, #tpu.memory_space<vmem>>, vector<128x128xf32>
    tpu.vector_store %arg11[%c0_290, %c0_291], %169 {strides = array<i32>} : memref<128x128xf32, #tpu.memory_space<vmem>>, vector<128x128xf32>,
    %c0_292 = arith.constant 0 : index
    %c1_293 = arith.constant 1 : index
    %c0_294 = arith.constant 0 : index
    %c0_295 = arith.constant 0 : index
    %171 = vector.load %arg10[%c0_292, %c1_293, %c0_294, %c0_295] : memref<8x8x8x128xf32, #tpu.memory_space<vmem>>, vector<1x1x8x128xf32>
    %172 = vector.shape_cast %171 : vector<1x1x8x128xf32> to vector<8x128xf32>
    %c0_296 = arith.constant 0 : index
    %c3_297 = arith.constant 3 : index
    %c0_298 = arith.constant 0 : index
    %c0_299 = arith.constant 0 : index
    %173 = vector.load %arg10[%c0_296, %c3_297, %c0_298, %c0_299] : memref<8x8x8x128xf32, #tpu.memory_space<vmem>>, vector<1x1x8x128xf32>
    %174 = vector.shape_cast %173 : vector<1x1x8x128xf32> to vector<8x128xf32>
    %c0_300 = arith.constant 0 : index
    %c5_301 = arith.constant 5 : index
    %c0_302 = arith.constant 0 : index
    %c0_303 = arith.constant 0 : index
    %175 = vector.load %arg10[%c0_300, %c5_301, %c0_302, %c0_303] : memref<8x8x8x128xf32, #tpu.memory_space<vmem>>, vector<1x1x8x128xf32>
    %176 = vector.shape_cast %175 : vector<1x1x8x128xf32> to vector<8x128xf32>
    %c0_304 = arith.constant 0 : index
    %c7_305 = arith.constant 7 : index
    %c0_306 = arith.constant 0 : index
    %c0_307 = arith.constant 0 : index
    %177 = vector.load %arg10[%c0_304, %c7_305, %c0_306, %c0_307] : memref<8x8x8x128xf32, #tpu.memory_space<vmem>>, vector<1x1x8x128xf32>
    %178 = vector.shape_cast %177 : vector<1x1x8x128xf32> to vector<8x128xf32>
    %c2_308 = arith.constant 2 : index
    %c1_309 = arith.constant 1 : index
    %c0_310 = arith.constant 0 : index
    %c0_311 = arith.constant 0 : index
    %179 = vector.load %arg10[%c2_308, %c1_309, %c0_310, %c0_311] : memref<8x8x8x128xf32, #tpu.memory_space<vmem>>, vector<1x1x8x128xf32>
    %180 = vector.shape_cast %179 : vector<1x1x8x128xf32> to vector<8x128xf32>
    %c2_312 = arith.constant 2 : index
    %c3_313 = arith.constant 3 : index
    %c0_314 = arith.constant 0 : index
    %c0_315 = arith.constant 0 : index
    %181 = vector.load %arg10[%c2_312, %c3_313, %c0_314, %c0_315] : memref<8x8x8x128xf32, #tpu.memory_space<vmem>>, vector<1x1x8x128xf32>
    %182 = vector.shape_cast %181 : vector<1x1x8x128xf32> to vector<8x128xf32>
    %c2_316 = arith.constant 2 : index
    %c5_317 = arith.constant 5 : index
    %c0_318 = arith.constant 0 : index
    %c0_319 = arith.constant 0 : index
    %183 = vector.load %arg10[%c2_316, %c5_317, %c0_318, %c0_319] : memref<8x8x8x128xf32, #tpu.memory_space<vmem>>, vector<1x1x8x128xf32>
    %184 = vector.shape_cast %183 : vector<1x1x8x128xf32> to vector<8x128xf32>
    %c2_320 = arith.constant 2 : index
    %c7_321 = arith.constant 7 : index
    %c0_322 = arith.constant 0 : index
    %c0_323 = arith.constant 0 : index
    %185 = vector.load %arg10[%c2_320, %c7_321, %c0_322, %c0_323] : memref<8x8x8x128xf32, #tpu.memory_space<vmem>>, vector<1x1x8x128xf32>
    %186 = vector.shape_cast %185 : vector<1x1x8x128xf32> to vector<8x128xf32>
    %c4_324 = arith.constant 4 : index
    %c1_325 = arith.constant 1 : index
    %c0_326 = arith.constant 0 : index
    %c0_327 = arith.constant 0 : index
    %187 = vector.load %arg10[%c4_324, %c1_325, %c0_326, %c0_327] : memref<8x8x8x128xf32, #tpu.memory_space<vmem>>, vector<1x1x8x128xf32>
    %188 = vector.shape_cast %187 : vector<1x1x8x128xf32> to vector<8x128xf32>
    %c4_328 = arith.constant 4 : index
    %c3_329 = arith.constant 3 : index
    %c0_330 = arith.constant 0 : index
    %c0_331 = arith.constant 0 : index
    %189 = vector.load %arg10[%c4_328, %c3_329, %c0_330, %c0_331] : memref<8x8x8x128xf32, #tpu.memory_space<vmem>>, vector<1x1x8x128xf32>
    %190 = vector.shape_cast %189 : vector<1x1x8x128xf32> to vector<8x128xf32>
    %c4_332 = arith.constant 4 : index
    %c5_333 = arith.constant 5 : index
    %c0_334 = arith.constant 0 : index
    %c0_335 = arith.constant 0 : index
    %191 = vector.load %arg10[%c4_332, %c5_333, %c0_334, %c0_335] : memref<8x8x8x128xf32, #tpu.memory_space<vmem>>, vector<1x1x8x128xf32>
    %192 = vector.shape_cast %191 : vector<1x1x8x128xf32> to vector<8x128xf32>
    %c4_336 = arith.constant 4 : index
    %c7_337 = arith.constant 7 : index
    %c0_338 = arith.constant 0 : index
    %c0_339 = arith.constant 0 : index
    %193 = vector.load %arg10[%c4_336, %c7_337, %c0_338, %c0_339] : memref<8x8x8x128xf32, #tpu.memory_space<vmem>>, vector<1x1x8x128xf32>
    %194 = vector.shape_cast %193 : vector<1x1x8x128xf32> to vector<8x128xf32>
    %c6_340 = arith.constant 6 : index
    %c1_341 = arith.constant 1 : index
    %c0_342 = arith.constant 0 : index
    %c0_343 = arith.constant 0 : index
    %195 = vector.load %arg10[%c6_340, %c1_341, %c0_342, %c0_343] : memref<8x8x8x128xf32, #tpu.memory_space<vmem>>, vector<1x1x8x128xf32>
    %196 = vector.shape_cast %195 : vector<1x1x8x128xf32> to vector<8x128xf32>
    %c6_344 = arith.constant 6 : index
    %c3_345 = arith.constant 3 : index
    %c0_346 = arith.constant 0 : index
    %c0_347 = arith.constant 0 : index
    %197 = vector.load %arg10[%c6_344, %c3_345, %c0_346, %c0_347] : memref<8x8x8x128xf32, #tpu.memory_space<vmem>>, vector<1x1x8x128xf32>
    %198 = vector.shape_cast %197 : vector<1x1x8x128xf32> to vector<8x128xf32>
    %c6_348 = arith.constant 6 : index
    %c5_349 = arith.constant 5 : index
    %c0_350 = arith.constant 0 : index
    %c0_351 = arith.constant 0 : index
    %199 = vector.load %arg10[%c6_348, %c5_349, %c0_350, %c0_351] : memref<8x8x8x128xf32, #tpu.memory_space<vmem>>, vector<1x1x8x128xf32>
    %200 = vector.shape_cast %199 : vector<1x1x8x128xf32> to vector<8x128xf32>
    %c6_352 = arith.constant 6 : index
    %c7_353 = arith.constant 7 : index
    %c0_354 = arith.constant 0 : index
    %c0_355 = arith.constant 0 : index
    %201 = vector.load %arg10[%c6_352, %c7_353, %c0_354, %c0_355] : memref<8x8x8x128xf32, #tpu.memory_space<vmem>>, vector<1x1x8x128xf32>
    %202 = vector.shape_cast %201 : vector<1x1x8x128xf32> to vector<8x128xf32>
    %203 = tpu.concatenate %172, %174, %176, %178, %180, %182, %184, %186, %188, %190, %192, %194, %196, %198, %200, %202 in 0 : vector<8x128xf32>, vector<8x128xf32>, vector<8x128xf32>, vector<8x128xf32>, vector<8x128xf32>, vector<8x128xf32>, vector<8x128xf32>, vector<8x128xf32>, vector<8x128xf32>, vector<8x128xf32>, vector<8x128xf32>, vector<8x128xf32>, vector<8x128xf32>, vector<8x128xf32>, vector<8x128xf32>, vector<8x128xf32> -> vector<128x128xf32>
    %c0_356 = arith.constant 0 : index
    %c0_357 = arith.constant 0 : index
    %204 = vector.load %arg11[%c0_356, %c0_357] : memref<128x128xf32, #tpu.memory_space<vmem>>, vector<128x128xf32>
    %c5_358 = arith.constant 5 : index
    %c0_359 = arith.constant 0 : index
    %c0_360 = arith.constant 0 : index
    %205 = vector.load %arg4[%c5_358, %c0_359, %c0_360] : memref<9x128x128xf32, #tpu.memory_space<vmem>>, vector<1x128x128xf32>
    %206 = vector.shape_cast %205 : vector<1x128x128xf32> to vector<128x128xf32>
    %cst_361 = arith.constant dense<0.000000e+00> : vector<128x128xf32>
    %207 = tpu.matmul %203, %206, %cst_361 {dimension_numbers = #tpu.dot_dimension_numbers<[1], [0], [0], [1], [0, 0, 1, 1], [], []>} : vector<128x128xf32>, vector<128x128xf32>, vector<128x128xf32> -> vector<128x128xf32>
    %208 = arith.addf %204, %207 : vector<128x128xf32>
    %c0_362 = arith.constant 0 : index
    %c0_363 = arith.constant 0 : index
    %209 = vector.load %arg11[%c0_362, %c0_363] : memref<128x128xf32, #tpu.memory_space<vmem>>, vector<128x128xf32>
    tpu.vector_store %arg11[%c0_362, %c0_363], %208 {strides = array<i32>} : memref<128x128xf32, #tpu.memory_space<vmem>>, vector<128x128xf32>,
    %c1_364 = arith.constant 1 : index
    %c1_365 = arith.constant 1 : index
    %c0_366 = arith.constant 0 : index
    %c0_367 = arith.constant 0 : index
    %210 = vector.load %arg10[%c1_364, %c1_365, %c0_366, %c0_367] : memref<8x8x8x128xf32, #tpu.memory_space<vmem>>, vector<1x1x8x128xf32>
    %211 = vector.shape_cast %210 : vector<1x1x8x128xf32> to vector<8x128xf32>
    %c1_368 = arith.constant 1 : index
    %c3_369 = arith.constant 3 : index
    %c0_370 = arith.constant 0 : index
    %c0_371 = arith.constant 0 : index
    %212 = vector.load %arg10[%c1_368, %c3_369, %c0_370, %c0_371] : memref<8x8x8x128xf32, #tpu.memory_space<vmem>>, vector<1x1x8x128xf32>
    %213 = vector.shape_cast %212 : vector<1x1x8x128xf32> to vector<8x128xf32>
    %c1_372 = arith.constant 1 : index
    %c5_373 = arith.constant 5 : index
    %c0_374 = arith.constant 0 : index
    %c0_375 = arith.constant 0 : index
    %214 = vector.load %arg10[%c1_372, %c5_373, %c0_374, %c0_375] : memref<8x8x8x128xf32, #tpu.memory_space<vmem>>, vector<1x1x8x128xf32>
    %215 = vector.shape_cast %214 : vector<1x1x8x128xf32> to vector<8x128xf32>
    %c3_376 = arith.constant 3 : index
    %c1_377 = arith.constant 1 : index
    %c0_378 = arith.constant 0 : index
    %c0_379 = arith.constant 0 : index
    %216 = vector.load %arg10[%c3_376, %c1_377, %c0_378, %c0_379] : memref<8x8x8x128xf32, #tpu.memory_space<vmem>>, vector<1x1x8x128xf32>
    %217 = vector.shape_cast %216 : vector<1x1x8x128xf32> to vector<8x128xf32>
    %c3_380 = arith.constant 3 : index
    %c3_381 = arith.constant 3 : index
    %c0_382 = arith.constant 0 : index
    %c0_383 = arith.constant 0 : index
    %218 = vector.load %arg10[%c3_380, %c3_381, %c0_382, %c0_383] : memref<8x8x8x128xf32, #tpu.memory_space<vmem>>, vector<1x1x8x128xf32>
    %219 = vector.shape_cast %218 : vector<1x1x8x128xf32> to vector<8x128xf32>
    %c3_384 = arith.constant 3 : index
    %c5_385 = arith.constant 5 : index
    %c0_386 = arith.constant 0 : index
    %c0_387 = arith.constant 0 : index
    %220 = vector.load %arg10[%c3_384, %c5_385, %c0_386, %c0_387] : memref<8x8x8x128xf32, #tpu.memory_space<vmem>>, vector<1x1x8x128xf32>
    %221 = vector.shape_cast %220 : vector<1x1x8x128xf32> to vector<8x128xf32>
    %c5_388 = arith.constant 5 : index
    %c1_389 = arith.constant 1 : index
    %c0_390 = arith.constant 0 : index
    %c0_391 = arith.constant 0 : index
    %222 = vector.load %arg10[%c5_388, %c1_389, %c0_390, %c0_391] : memref<8x8x8x128xf32, #tpu.memory_space<vmem>>, vector<1x1x8x128xf32>
    %223 = vector.shape_cast %222 : vector<1x1x8x128xf32> to vector<8x128xf32>
    %c5_392 = arith.constant 5 : index
    %c3_393 = arith.constant 3 : index
    %c0_394 = arith.constant 0 : index
    %c0_395 = arith.constant 0 : index
    %224 = vector.load %arg10[%c5_392, %c3_393, %c0_394, %c0_395] : memref<8x8x8x128xf32, #tpu.memory_space<vmem>>, vector<1x1x8x128xf32>
    %225 = vector.shape_cast %224 : vector<1x1x8x128xf32> to vector<8x128xf32>
    %c5_396 = arith.constant 5 : index
    %c5_397 = arith.constant 5 : index
    %c0_398 = arith.constant 0 : index
    %c0_399 = arith.constant 0 : index
    %226 = vector.load %arg10[%c5_396, %c5_397, %c0_398, %c0_399] : memref<8x8x8x128xf32, #tpu.memory_space<vmem>>, vector<1x1x8x128xf32>
    %227 = vector.shape_cast %226 : vector<1x1x8x128xf32> to vector<8x128xf32>
    %c7_400 = arith.constant 7 : index
    %c1_401 = arith.constant 1 : index
    %c0_402 = arith.constant 0 : index
    %c0_403 = arith.constant 0 : index
    %228 = vector.load %arg10[%c7_400, %c1_401, %c0_402, %c0_403] : memref<8x8x8x128xf32, #tpu.memory_space<vmem>>, vector<1x1x8x128xf32>
    %229 = vector.shape_cast %228 : vector<1x1x8x128xf32> to vector<8x128xf32>
    %c7_404 = arith.constant 7 : index
    %c3_405 = arith.constant 3 : index
    %c0_406 = arith.constant 0 : index
    %c0_407 = arith.constant 0 : index
    %230 = vector.load %arg10[%c7_404, %c3_405, %c0_406, %c0_407] : memref<8x8x8x128xf32, #tpu.memory_space<vmem>>, vector<1x1x8x128xf32>
    %231 = vector.shape_cast %230 : vector<1x1x8x128xf32> to vector<8x128xf32>
    %c7_408 = arith.constant 7 : index
    %c5_409 = arith.constant 5 : index
    %c0_410 = arith.constant 0 : index
    %c0_411 = arith.constant 0 : index
    %232 = vector.load %arg10[%c7_408, %c5_409, %c0_410, %c0_411] : memref<8x8x8x128xf32, #tpu.memory_space<vmem>>, vector<1x1x8x128xf32>
    %233 = vector.shape_cast %232 : vector<1x1x8x128xf32> to vector<8x128xf32>
    %234 = tpu.concatenate %11, %211, %213, %215, %11, %217, %219, %221, %11, %223, %225, %227, %11, %229, %231, %233 in 0 : vector<8x128xf32>, vector<8x128xf32>, vector<8x128xf32>, vector<8x128xf32>, vector<8x128xf32>, vector<8x128xf32>, vector<8x128xf32>, vector<8x128xf32>, vector<8x128xf32>, vector<8x128xf32>, vector<8x128xf32>, vector<8x128xf32>, vector<8x128xf32>, vector<8x128xf32>, vector<8x128xf32>, vector<8x128xf32> -> vector<128x128xf32>
    %c0_412 = arith.constant 0 : index
    %c0_413 = arith.constant 0 : index
    %235 = vector.load %arg11[%c0_412, %c0_413] : memref<128x128xf32, #tpu.memory_space<vmem>>, vector<128x128xf32>
    %c6_414 = arith.constant 6 : index
    %c0_415 = arith.constant 0 : index
    %c0_416 = arith.constant 0 : index
    %236 = vector.load %arg4[%c6_414, %c0_415, %c0_416] : memref<9x128x128xf32, #tpu.memory_space<vmem>>, vector<1x128x128xf32>
    %237 = vector.shape_cast %236 : vector<1x128x128xf32> to vector<128x128xf32>
    %cst_417 = arith.constant dense<0.000000e+00> : vector<128x128xf32>
    %238 = tpu.matmul %234, %237, %cst_417 {dimension_numbers = #tpu.dot_dimension_numbers<[1], [0], [0], [1], [0, 0, 1, 1], [], []>} : vector<128x128xf32>, vector<128x128xf32>, vector<128x128xf32> -> vector<128x128xf32>
    %239 = arith.addf %235, %238 : vector<128x128xf32>
    %c0_418 = arith.constant 0 : index
    %c0_419 = arith.constant 0 : index
    %240 = vector.load %arg11[%c0_418, %c0_419] : memref<128x128xf32, #tpu.memory_space<vmem>>, vector<128x128xf32>
    tpu.vector_store %arg11[%c0_418, %c0_419], %239 {strides = array<i32>} : memref<128x128xf32, #tpu.memory_space<vmem>>, vector<128x128xf32>,
    %c1_420 = arith.constant 1 : index
    %c0_421 = arith.constant 0 : index
    %c0_422 = arith.constant 0 : index
    %c0_423 = arith.constant 0 : index
    %241 = vector.load %arg10[%c1_420, %c0_421, %c0_422, %c0_423] : memref<8x8x8x128xf32, #tpu.memory_space<vmem>>, vector<1x1x8x128xf32>
    %242 = vector.shape_cast %241 : vector<1x1x8x128xf32> to vector<8x128xf32>
    %c1_424 = arith.constant 1 : index
    %c2_425 = arith.constant 2 : index
    %c0_426 = arith.constant 0 : index
    %c0_427 = arith.constant 0 : index
    %243 = vector.load %arg10[%c1_424, %c2_425, %c0_426, %c0_427] : memref<8x8x8x128xf32, #tpu.memory_space<vmem>>, vector<1x1x8x128xf32>
    %244 = vector.shape_cast %243 : vector<1x1x8x128xf32> to vector<8x128xf32>
    %c1_428 = arith.constant 1 : index
    %c4_429 = arith.constant 4 : index
    %c0_430 = arith.constant 0 : index
    %c0_431 = arith.constant 0 : index
    %245 = vector.load %arg10[%c1_428, %c4_429, %c0_430, %c0_431] : memref<8x8x8x128xf32, #tpu.memory_space<vmem>>, vector<1x1x8x128xf32>
    %246 = vector.shape_cast %245 : vector<1x1x8x128xf32> to vector<8x128xf32>
    %c1_432 = arith.constant 1 : index
    %c6_433 = arith.constant 6 : index
    %c0_434 = arith.constant 0 : index
    %c0_435 = arith.constant 0 : index
    %247 = vector.load %arg10[%c1_432, %c6_433, %c0_434, %c0_435] : memref<8x8x8x128xf32, #tpu.memory_space<vmem>>, vector<1x1x8x128xf32>
    %248 = vector.shape_cast %247 : vector<1x1x8x128xf32> to vector<8x128xf32>
    %c3_436 = arith.constant 3 : index
    %c0_437 = arith.constant 0 : index
    %c0_438 = arith.constant 0 : index
    %c0_439 = arith.constant 0 : index
    %249 = vector.load %arg10[%c3_436, %c0_437, %c0_438, %c0_439] : memref<8x8x8x128xf32, #tpu.memory_space<vmem>>, vector<1x1x8x128xf32>
    %250 = vector.shape_cast %249 : vector<1x1x8x128xf32> to vector<8x128xf32>
    %c3_440 = arith.constant 3 : index
    %c2_441 = arith.constant 2 : index
    %c0_442 = arith.constant 0 : index
    %c0_443 = arith.constant 0 : index
    %251 = vector.load %arg10[%c3_440, %c2_441, %c0_442, %c0_443] : memref<8x8x8x128xf32, #tpu.memory_space<vmem>>, vector<1x1x8x128xf32>
    %252 = vector.shape_cast %251 : vector<1x1x8x128xf32> to vector<8x128xf32>
    %c3_444 = arith.constant 3 : index
    %c4_445 = arith.constant 4 : index
    %c0_446 = arith.constant 0 : index
    %c0_447 = arith.constant 0 : index
    %253 = vector.load %arg10[%c3_444, %c4_445, %c0_446, %c0_447] : memref<8x8x8x128xf32, #tpu.memory_space<vmem>>, vector<1x1x8x128xf32>
    %254 = vector.shape_cast %253 : vector<1x1x8x128xf32> to vector<8x128xf32>
    %c3_448 = arith.constant 3 : index
    %c6_449 = arith.constant 6 : index
    %c0_450 = arith.constant 0 : index
    %c0_451 = arith.constant 0 : index
    %255 = vector.load %arg10[%c3_448, %c6_449, %c0_450, %c0_451] : memref<8x8x8x128xf32, #tpu.memory_space<vmem>>, vector<1x1x8x128xf32>
    %256 = vector.shape_cast %255 : vector<1x1x8x128xf32> to vector<8x128xf32>
    %c5_452 = arith.constant 5 : index
    %c0_453 = arith.constant 0 : index
    %c0_454 = arith.constant 0 : index
    %c0_455 = arith.constant 0 : index
    %257 = vector.load %arg10[%c5_452, %c0_453, %c0_454, %c0_455] : memref<8x8x8x128xf32, #tpu.memory_space<vmem>>, vector<1x1x8x128xf32>
    %258 = vector.shape_cast %257 : vector<1x1x8x128xf32> to vector<8x128xf32>
    %c5_456 = arith.constant 5 : index
    %c2_457 = arith.constant 2 : index
    %c0_458 = arith.constant 0 : index
    %c0_459 = arith.constant 0 : index
    %259 = vector.load %arg10[%c5_456, %c2_457, %c0_458, %c0_459] : memref<8x8x8x128xf32, #tpu.memory_space<vmem>>, vector<1x1x8x128xf32>
    %260 = vector.shape_cast %259 : vector<1x1x8x128xf32> to vector<8x128xf32>
    %c5_460 = arith.constant 5 : index
    %c4_461 = arith.constant 4 : index
    %c0_462 = arith.constant 0 : index
    %c0_463 = arith.constant 0 : index
    %261 = vector.load %arg10[%c5_460, %c4_461, %c0_462, %c0_463] : memref<8x8x8x128xf32, #tpu.memory_space<vmem>>, vector<1x1x8x128xf32>
    %262 = vector.shape_cast %261 : vector<1x1x8x128xf32> to vector<8x128xf32>
    %c5_464 = arith.constant 5 : index
    %c6_465 = arith.constant 6 : index
    %c0_466 = arith.constant 0 : index
    %c0_467 = arith.constant 0 : index
    %263 = vector.load %arg10[%c5_464, %c6_465, %c0_466, %c0_467] : memref<8x8x8x128xf32, #tpu.memory_space<vmem>>, vector<1x1x8x128xf32>
    %264 = vector.shape_cast %263 : vector<1x1x8x128xf32> to vector<8x128xf32>
    %c7_468 = arith.constant 7 : index
    %c0_469 = arith.constant 0 : index
    %c0_470 = arith.constant 0 : index
    %c0_471 = arith.constant 0 : index
    %265 = vector.load %arg10[%c7_468, %c0_469, %c0_470, %c0_471] : memref<8x8x8x128xf32, #tpu.memory_space<vmem>>, vector<1x1x8x128xf32>
    %266 = vector.shape_cast %265 : vector<1x1x8x128xf32> to vector<8x128xf32>
    %c7_472 = arith.constant 7 : index
    %c2_473 = arith.constant 2 : index
    %c0_474 = arith.constant 0 : index
    %c0_475 = arith.constant 0 : index
    %267 = vector.load %arg10[%c7_472, %c2_473, %c0_474, %c0_475] : memref<8x8x8x128xf32, #tpu.memory_space<vmem>>, vector<1x1x8x128xf32>
    %268 = vector.shape_cast %267 : vector<1x1x8x128xf32> to vector<8x128xf32>
    %c7_476 = arith.constant 7 : index
    %c4_477 = arith.constant 4 : index
    %c0_478 = arith.constant 0 : index
    %c0_479 = arith.constant 0 : index
    %269 = vector.load %arg10[%c7_476, %c4_477, %c0_478, %c0_479] : memref<8x8x8x128xf32, #tpu.memory_space<vmem>>, vector<1x1x8x128xf32>
    %270 = vector.shape_cast %269 : vector<1x1x8x128xf32> to vector<8x128xf32>
    %c7_480 = arith.constant 7 : index
    %c6_481 = arith.constant 6 : index
    %c0_482 = arith.constant 0 : index
    %c0_483 = arith.constant 0 : index
    %271 = vector.load %arg10[%c7_480, %c6_481, %c0_482, %c0_483] : memref<8x8x8x128xf32, #tpu.memory_space<vmem>>, vector<1x1x8x128xf32>
    %272 = vector.shape_cast %271 : vector<1x1x8x128xf32> to vector<8x128xf32>
    %273 = tpu.concatenate %242, %244, %246, %248, %250, %252, %254, %256, %258, %260, %262, %264, %266, %268, %270, %272 in 0 : vector<8x128xf32>, vector<8x128xf32>, vector<8x128xf32>, vector<8x128xf32>, vector<8x128xf32>, vector<8x128xf32>, vector<8x128xf32>, vector<8x128xf32>, vector<8x128xf32>, vector<8x128xf32>, vector<8x128xf32>, vector<8x128xf32>, vector<8x128xf32>, vector<8x128xf32>, vector<8x128xf32>, vector<8x128xf32> -> vector<128x128xf32>
    %c0_484 = arith.constant 0 : index
    %c0_485 = arith.constant 0 : index
    %274 = vector.load %arg11[%c0_484, %c0_485] : memref<128x128xf32, #tpu.memory_space<vmem>>, vector<128x128xf32>
    %c7_486 = arith.constant 7 : index
    %c0_487 = arith.constant 0 : index
    %c0_488 = arith.constant 0 : index
    %275 = vector.load %arg4[%c7_486, %c0_487, %c0_488] : memref<9x128x128xf32, #tpu.memory_space<vmem>>, vector<1x128x128xf32>
    %276 = vector.shape_cast %275 : vector<1x128x128xf32> to vector<128x128xf32>
    %cst_489 = arith.constant dense<0.000000e+00> : vector<128x128xf32>
    %277 = tpu.matmul %273, %276, %cst_489 {dimension_numbers = #tpu.dot_dimension_numbers<[1], [0], [0], [1], [0, 0, 1, 1], [], []>} : vector<128x128xf32>, vector<128x128xf32>, vector<128x128xf32> -> vector<128x128xf32>
    %278 = arith.addf %274, %277 : vector<128x128xf32>
    %c0_490 = arith.constant 0 : index
    %c0_491 = arith.constant 0 : index
    %279 = vector.load %arg11[%c0_490, %c0_491] : memref<128x128xf32, #tpu.memory_space<vmem>>, vector<128x128xf32>
    tpu.vector_store %arg11[%c0_490, %c0_491], %278 {strides = array<i32>} : memref<128x128xf32, #tpu.memory_space<vmem>>, vector<128x128xf32>,
    %c1_492 = arith.constant 1 : index
    %c1_493 = arith.constant 1 : index
    %c0_494 = arith.constant 0 : index
    %c0_495 = arith.constant 0 : index
    %280 = vector.load %arg10[%c1_492, %c1_493, %c0_494, %c0_495] : memref<8x8x8x128xf32, #tpu.memory_space<vmem>>, vector<1x1x8x128xf32>
    %281 = vector.shape_cast %280 : vector<1x1x8x128xf32> to vector<8x128xf32>
    %c1_496 = arith.constant 1 : index
    %c3_497 = arith.constant 3 : index
    %c0_498 = arith.constant 0 : index
    %c0_499 = arith.constant 0 : index
    %282 = vector.load %arg10[%c1_496, %c3_497, %c0_498, %c0_499] : memref<8x8x8x128xf32, #tpu.memory_space<vmem>>, vector<1x1x8x128xf32>
    %283 = vector.shape_cast %282 : vector<1x1x8x128xf32> to vector<8x128xf32>
    %c1_500 = arith.constant 1 : index
    %c5_501 = arith.constant 5 : index
    %c0_502 = arith.constant 0 : index
    %c0_503 = arith.constant 0 : index
    %284 = vector.load %arg10[%c1_500, %c5_501, %c0_502, %c0_503] : memref<8x8x8x128xf32, #tpu.memory_space<vmem>>, vector<1x1x8x128xf32>
    %285 = vector.shape_cast %284 : vector<1x1x8x128xf32> to vector<8x128xf32>
    %c1_504 = arith.constant 1 : index
    %c7_505 = arith.constant 7 : index
    %c0_506 = arith.constant 0 : index
    %c0_507 = arith.constant 0 : index
    %286 = vector.load %arg10[%c1_504, %c7_505, %c0_506, %c0_507] : memref<8x8x8x128xf32, #tpu.memory_space<vmem>>, vector<1x1x8x128xf32>
    %287 = vector.shape_cast %286 : vector<1x1x8x128xf32> to vector<8x128xf32>
    %c3_508 = arith.constant 3 : index
    %c1_509 = arith.constant 1 : index
    %c0_510 = arith.constant 0 : index
    %c0_511 = arith.constant 0 : index
    %288 = vector.load %arg10[%c3_508, %c1_509, %c0_510, %c0_511] : memref<8x8x8x128xf32, #tpu.memory_space<vmem>>, vector<1x1x8x128xf32>
    %289 = vector.shape_cast %288 : vector<1x1x8x128xf32> to vector<8x128xf32>
    %c3_512 = arith.constant 3 : index
    %c3_513 = arith.constant 3 : index
    %c0_514 = arith.constant 0 : index
    %c0_515 = arith.constant 0 : index
    %290 = vector.load %arg10[%c3_512, %c3_513, %c0_514, %c0_515] : memref<8x8x8x128xf32, #tpu.memory_space<vmem>>, vector<1x1x8x128xf32>
    %291 = vector.shape_cast %290 : vector<1x1x8x128xf32> to vector<8x128xf32>
    %c3_516 = arith.constant 3 : index
    %c5_517 = arith.constant 5 : index
    %c0_518 = arith.constant 0 : index
    %c0_519 = arith.constant 0 : index
    %292 = vector.load %arg10[%c3_516, %c5_517, %c0_518, %c0_519] : memref<8x8x8x128xf32, #tpu.memory_space<vmem>>, vector<1x1x8x128xf32>
    %293 = vector.shape_cast %292 : vector<1x1x8x128xf32> to vector<8x128xf32>
    %c3_520 = arith.constant 3 : index
    %c7_521 = arith.constant 7 : index
    %c0_522 = arith.constant 0 : index
    %c0_523 = arith.constant 0 : index
    %294 = vector.load %arg10[%c3_520, %c7_521, %c0_522, %c0_523] : memref<8x8x8x128xf32, #tpu.memory_space<vmem>>, vector<1x1x8x128xf32>
    %295 = vector.shape_cast %294 : vector<1x1x8x128xf32> to vector<8x128xf32>
    %c5_524 = arith.constant 5 : index
    %c1_525 = arith.constant 1 : index
    %c0_526 = arith.constant 0 : index
    %c0_527 = arith.constant 0 : index
    %296 = vector.load %arg10[%c5_524, %c1_525, %c0_526, %c0_527] : memref<8x8x8x128xf32, #tpu.memory_space<vmem>>, vector<1x1x8x128xf32>
    %297 = vector.shape_cast %296 : vector<1x1x8x128xf32> to vector<8x128xf32>
    %c5_528 = arith.constant 5 : index
    %c3_529 = arith.constant 3 : index
    %c0_530 = arith.constant 0 : index
    %c0_531 = arith.constant 0 : index
    %298 = vector.load %arg10[%c5_528, %c3_529, %c0_530, %c0_531] : memref<8x8x8x128xf32, #tpu.memory_space<vmem>>, vector<1x1x8x128xf32>
    %299 = vector.shape_cast %298 : vector<1x1x8x128xf32> to vector<8x128xf32>
    %c5_532 = arith.constant 5 : index
    %c5_533 = arith.constant 5 : index
    %c0_534 = arith.constant 0 : index
    %c0_535 = arith.constant 0 : index
    %300 = vector.load %arg10[%c5_532, %c5_533, %c0_534, %c0_535] : memref<8x8x8x128xf32, #tpu.memory_space<vmem>>, vector<1x1x8x128xf32>
    %301 = vector.shape_cast %300 : vector<1x1x8x128xf32> to vector<8x128xf32>
    %c5_536 = arith.constant 5 : index
    %c7_537 = arith.constant 7 : index
    %c0_538 = arith.constant 0 : index
    %c0_539 = arith.constant 0 : index
    %302 = vector.load %arg10[%c5_536, %c7_537, %c0_538, %c0_539] : memref<8x8x8x128xf32, #tpu.memory_space<vmem>>, vector<1x1x8x128xf32>
    %303 = vector.shape_cast %302 : vector<1x1x8x128xf32> to vector<8x128xf32>
    %c7_540 = arith.constant 7 : index
    %c1_541 = arith.constant 1 : index
    %c0_542 = arith.constant 0 : index
    %c0_543 = arith.constant 0 : index
    %304 = vector.load %arg10[%c7_540, %c1_541, %c0_542, %c0_543] : memref<8x8x8x128xf32, #tpu.memory_space<vmem>>, vector<1x1x8x128xf32>
    %305 = vector.shape_cast %304 : vector<1x1x8x128xf32> to vector<8x128xf32>
    %c7_544 = arith.constant 7 : index
    %c3_545 = arith.constant 3 : index
    %c0_546 = arith.constant 0 : index
    %c0_547 = arith.constant 0 : index
    %306 = vector.load %arg10[%c7_544, %c3_545, %c0_546, %c0_547] : memref<8x8x8x128xf32, #tpu.memory_space<vmem>>, vector<1x1x8x128xf32>
    %307 = vector.shape_cast %306 : vector<1x1x8x128xf32> to vector<8x128xf32>
    %c7_548 = arith.constant 7 : index
    %c5_549 = arith.constant 5 : index
    %c0_550 = arith.constant 0 : index
    %c0_551 = arith.constant 0 : index
    %308 = vector.load %arg10[%c7_548, %c5_549, %c0_550, %c0_551] : memref<8x8x8x128xf32, #tpu.memory_space<vmem>>, vector<1x1x8x128xf32>
    %309 = vector.shape_cast %308 : vector<1x1x8x128xf32> to vector<8x128xf32>
    %c7_552 = arith.constant 7 : index
    %c7_553 = arith.constant 7 : index
    %c0_554 = arith.constant 0 : index
    %c0_555 = arith.constant 0 : index
    %310 = vector.load %arg10[%c7_552, %c7_553, %c0_554, %c0_555] : memref<8x8x8x128xf32, #tpu.memory_space<vmem>>, vector<1x1x8x128xf32>
    %311 = vector.shape_cast %310 : vector<1x1x8x128xf32> to vector<8x128xf32>
    %312 = tpu.concatenate %281, %283, %285, %287, %289, %291, %293, %295, %297, %299, %301, %303, %305, %307, %309, %311 in 0 : vector<8x128xf32>, vector<8x128xf32>, vector<8x128xf32>, vector<8x128xf32>, vector<8x128xf32>, vector<8x128xf32>, vector<8x128xf32>, vector<8x128xf32>, vector<8x128xf32>, vector<8x128xf32>, vector<8x128xf32>, vector<8x128xf32>, vector<8x128xf32>, vector<8x128xf32>, vector<8x128xf32>, vector<8x128xf32> -> vector<128x128xf32>
    %c0_556 = arith.constant 0 : index
    %c0_557 = arith.constant 0 : index
    %313 = vector.load %arg11[%c0_556, %c0_557] : memref<128x128xf32, #tpu.memory_space<vmem>>, vector<128x128xf32>
    %c8 = arith.constant 8 : index
    %c0_558 = arith.constant 0 : index
    %c0_559 = arith.constant 0 : index
    %314 = vector.load %arg4[%c8, %c0_558, %c0_559] : memref<9x128x128xf32, #tpu.memory_space<vmem>>, vector<1x128x128xf32>
    %315 = vector.shape_cast %314 : vector<1x128x128xf32> to vector<128x128xf32>
    %cst_560 = arith.constant dense<0.000000e+00> : vector<128x128xf32>
    %316 = tpu.matmul %312, %315, %cst_560 {dimension_numbers = #tpu.dot_dimension_numbers<[1], [0], [0], [1], [0, 0, 1, 1], [], []>} : vector<128x128xf32>, vector<128x128xf32>, vector<128x128xf32> -> vector<128x128xf32>
    %317 = arith.addf %313, %316 : vector<128x128xf32>
    %c0_561 = arith.constant 0 : index
    %c0_562 = arith.constant 0 : index
    %318 = vector.load %arg11[%c0_561, %c0_562] : memref<128x128xf32, #tpu.memory_space<vmem>>, vector<128x128xf32>
    tpu.vector_store %arg11[%c0_561, %c0_562], %317 {strides = array<i32>} : memref<128x128xf32, #tpu.memory_space<vmem>>, vector<128x128xf32>,
    %c0_563 = arith.constant 0 : index
    %c0_564 = arith.constant 0 : index
    %319 = vector.load %arg11[%c0_563, %c0_564] : memref<128x128xf32, #tpu.memory_space<vmem>>, vector<128x128xf32>
    %c0_565 = arith.constant 0 : index
    %c0_566 = arith.constant 0 : index
    %320 = vector.load %arg5[%c0_565, %c0_566] : memref<1x128xf32, #tpu.memory_space<vmem>>, vector<1x128xf32>
    %321 = vector.broadcast %320 : vector<1x128xf32> to vector<128x128xf32>
    %322 = arith.addf %319, %321 : vector<128x128xf32>
    %cst_567 = arith.constant 0.000000e+00 : f32
    %323 = vector.broadcast %cst_567 : f32 to vector<128x128xf32>
    %324 = arith.maximumf %322, %323 : vector<128x128xf32>
    %325 = vector.shape_cast %324 : vector<128x128xf32> to vector<16x8x128xf32>
    %cst_568 = arith.constant dense<0.000000e+00> : vector<8x128xf32>
    %326 = vector.multi_reduction <add>, %325, %cst_568 [0] : vector<16x8x128xf32> to vector<8x128xf32>
    %cst_569 = arith.constant 6.250000e-02 : f32
    %327 = vector.broadcast %cst_569 : f32 to vector<8x128xf32>
    %328 = arith.mulf %326, %327 : vector<8x128xf32>
    %c0_570 = arith.constant 0 : index
    %c0_571 = arith.constant 0 : index
    %329 = vector.load %arg6[%c0_570, %c0_571] : memref<128x128xf32, #tpu.memory_space<vmem>>, vector<128x128xf32>
    %cst_572 = arith.constant dense<0.000000e+00> : vector<8x128xf32>
    %330 = tpu.matmul %328, %329, %cst_572 {dimension_numbers = #tpu.dot_dimension_numbers<[1], [0], [0], [1], [0, 0, 1, 1], [], []>} : vector<8x128xf32>, vector<128x128xf32>, vector<8x128xf32> -> vector<8x128xf32>
    %c0_573 = arith.constant 0 : index
    %c0_574 = arith.constant 0 : index
    %331 = vector.load %arg7[%c0_573, %c0_574] : memref<1x128xf32, #tpu.memory_space<vmem>>, vector<1x128xf32>
    %332 = vector.broadcast %331 : vector<1x128xf32> to vector<8x128xf32>
    %333 = arith.addf %330, %332 : vector<8x128xf32>
    %334 = tpu.iota {dimensions = array<i32: 1>} : vector<8x128xi32>
    %c10_i32 = arith.constant 10 : i32
    %335 = vector.broadcast %c10_i32 : i32 to vector<8x128xi32>
    %336 = arith.cmpi slt, %334, %335 : vector<8x128xi32>
    %cst_575 = arith.constant 0.000000e+00 : f32
    %337 = vector.broadcast %cst_575 : f32 to vector<8x128xf32>
    %338 = arith.select %336, %333, %337 : vector<8x128xi1>, vector<8x128xf32>
    %c10_i32_576 = arith.constant 10 : i32
    %339 = vector.broadcast %c10_i32_576 : i32 to vector<8x128xi32>
    %340 = arith.cmpi slt, %334, %339 : vector<8x128xi32>
    %cst_577 = arith.constant -1.000000e+30 : f32
    %341 = vector.broadcast %cst_577 : f32 to vector<8x128xf32>
    %342 = arith.select %340, %333, %341 : vector<8x128xi1>, vector<8x128xf32>
    %cst_578 = arith.constant dense<0xFF800000> : vector<8xf32>
    %343 = vector.multi_reduction <maximumf>, %342, %cst_578 [1] : vector<8x128xf32> to vector<8xf32>
    %344 = vector.shape_cast %343 : vector<8xf32> to vector<8x1xf32>
    %345 = vector.broadcast %344 : vector<8x1xf32> to vector<8x128xf32>
    %346 = arith.subf %342, %345 : vector<8x128xf32>
    %347 = math.exp %346 : vector<8x128xf32>
    %cst_579 = arith.constant dense<0.000000e+00> : vector<8xf32>
    %348 = vector.multi_reduction <add>, %347, %cst_579 [1] : vector<8x128xf32> to vector<8xf32>
    %349 = vector.shape_cast %348 : vector<8xf32> to vector<8x1xf32>
    %350 = math.log %349 : vector<8x1xf32>
    %351 = arith.addf %344, %350 : vector<8x1xf32>
    %c0_580 = arith.constant 0 : index
    %c0_581 = arith.constant 0 : index
    %352 = vector.load %arg8[%c0_580, %c0_581] : memref<8x128xf32, #tpu.memory_space<vmem>>, vector<8x128xf32>
    %353 = vector.broadcast %351 : vector<8x1xf32> to vector<8x128xf32>
    %354 = arith.subf %333, %353 : vector<8x128xf32>
    %355 = arith.mulf %352, %354 : vector<8x128xf32>
    %cst_582 = arith.constant dense<0.000000e+00> : vector<8xf32>
    %356 = vector.multi_reduction <add>, %355, %cst_582 [1] : vector<8x128xf32> to vector<8xf32>
    %357 = vector.shape_cast %356 : vector<8xf32> to vector<8x1xf32>
    %cst_583 = arith.constant 0.000000e+00 : f32
    %358 = vector.broadcast %cst_583 : f32 to vector<8x1xf32>
    %359 = arith.subf %358, %357 : vector<8x1xf32>
    %c10_i32_584 = arith.constant 10 : i32
    %360 = vector.broadcast %c10_i32_584 : i32 to vector<8x128xi32>
    %361 = arith.cmpi eq, %334, %360 : vector<8x128xi32>
    %cst_585 = arith.constant 1.000000e+00 : f32
    %362 = vector.broadcast %cst_585 : f32 to vector<8x1xf32>
    %363 = arith.mulf %359, %362 : vector<8x1xf32>
    %364 = vector.shape_cast %363 : vector<8x1xf32> to vector<8x1xf32>
    %365 = vector.broadcast %364 : vector<8x1xf32> to vector<8x128xf32>
    %366 = arith.select %361, %365, %338 : vector<8x128xi1>, vector<8x128xf32>
    %c0_586 = arith.constant 0 : index
    %c0_587 = arith.constant 0 : index
    %367 = vector.load %arg9[%c0_586, %c0_587] : memref<8x128xf32, #tpu.memory_space<vmem>>, vector<8x128xf32>
    tpu.vector_store %arg9[%c0_586, %c0_587], %366 {strides = array<i32>} : memref<8x128xf32, #tpu.memory_space<vmem>>, vector<8x128xf32>,
    return
  }
  func.func @transform_0(%arg0: i32) -> (i32, i32, i32) {
    %c0_i32 = arith.constant 0 : i32
    %c0_i32_0 = arith.constant 0 : i32
    %c0_i32_1 = arith.constant 0 : i32
    return %c0_i32, %arg0, %c0_i32_0 : i32, i32, i32
  }
  func.func @transform_1(%arg0: i32) -> (i32, i32) {
    %c0_i32 = arith.constant 0 : i32
    %c0_i32_0 = arith.constant 0 : i32
    %c0_i32_1 = arith.constant 0 : i32
    return %c0_i32, %c0_i32_0 : i32, i32
  }
  func.func @transform_2(%arg0: i32) -> (i32, i32) {
    %c0_i32 = arith.constant 0 : i32
    %c0_i32_0 = arith.constant 0 : i32
    %c0_i32_1 = arith.constant 0 : i32
    return %c0_i32, %c0_i32_0 : i32, i32
  }
  func.func @transform_3(%arg0: i32) -> (i32, i32, i32) {
    %c0_i32 = arith.constant 0 : i32
    %c0_i32_0 = arith.constant 0 : i32
    %c0_i32_1 = arith.constant 0 : i32
    %c0_i32_2 = arith.constant 0 : i32
    return %c0_i32, %c0_i32_0, %c0_i32_1 : i32, i32, i32
  }
  func.func @transform_4(%arg0: i32) -> (i32, i32) {
    %c0_i32 = arith.constant 0 : i32
    %c0_i32_0 = arith.constant 0 : i32
    %c0_i32_1 = arith.constant 0 : i32
    return %c0_i32, %c0_i32_0 : i32, i32
  }
  func.func @transform_5(%arg0: i32) -> (i32, i32) {
    %c0_i32 = arith.constant 0 : i32
    %c0_i32_0 = arith.constant 0 : i32
    %c0_i32_1 = arith.constant 0 : i32
    return %c0_i32, %c0_i32_0 : i32, i32
  }
  func.func @transform_6(%arg0: i32) -> (i32, i32) {
    %c0_i32 = arith.constant 0 : i32
    %c0_i32_0 = arith.constant 0 : i32
    %c0_i32_1 = arith.constant 0 : i32
    return %c0_i32, %c0_i32_0 : i32, i32
  }
  func.func @transform_7(%arg0: i32) -> (i32, i32) {
    %c0_i32 = arith.constant 0 : i32
    %c0_i32_0 = arith.constant 0 : i32
    return %arg0, %c0_i32 : i32, i32
  }
  func.func @transform_8(%arg0: i32) -> (i32, i32) {
    %c0_i32 = arith.constant 0 : i32
    %c0_i32_0 = arith.constant 0 : i32
    return %arg0, %c0_i32 : i32, i32
  }
}

</mosaic_0001>

<bundles_post_ra>
// kernel: tpu_custom_call.1
= control target key start
LH: loop header
LB: loop body
LE: loop exit
PB: predicated region body
PF: predicated region fallthrough
CT: control target
= control target key end

     0   :  { %13 = vsyncpa [#allocation5], 0  ;;  %s5367_s0 = inlined_call_operand.hbm [shape: f32[64,8,128], index: 0, kind: input, shape index: {}]   ;;  %s5368_s1 = inlined_call_operand.hbm [shape: f32[128,128], index: 1, kind: input, shape index: {}]   ;;  %s5369_s2 = inlined_call_operand.vmem [shape: f32[1,128], index: 2, kind: input, shape index: {}]   ;;  %s5370_s3 = inlined_call_operand.hbm [shape: f32[9,128,128], index: 3, kind: input, shape index: {}]   ;;  %s5371_s4 = inlined_call_operand.vmem [shape: f32[1,128], index: 4, kind: input, shape index: {}]   ;;  %s5372_s5 = inlined_call_operand.hbm [shape: f32[128,128], index: 5, kind: input, shape index: {}]   ;;  %s5373_s6 = inlined_call_operand.vmem [shape: f32[1,128], index: 6, kind: input, shape index: {}]   ;;  %s5374_s7 = inlined_call_operand.vmem [shape: f32[8,128], index: 7, kind: input, shape index: {}]   ;;  %s5375_s8 = inlined_call_operand.hbm [shape: f32[8,128], index: 8, kind: output, shape index: {}]  }
   0x1   :  { %14 = vsyncpa [#allocation8], 0 }
   0x2   :  { %15 = vsyncpa [#allocation11], 0 }
   0x3   :  { %16 = vsyncpa [#allocation6], 0  ;;  %s4638_s27 = smov [#allocation7]   ;;  %s4639_s29 = smov [#allocation4]  }
   0x4   :  { %s34_s28 = sshll.u32 %s4638_s27, 4  ;;  %s22_s30 = sshll.u32 %s4639_s29, 4  ;;  %s35_s28 = int_to_ptr.vmem [resolvable:$true] %s34_s28  ;;  %s4693_s30 = int_to_ptr.vmem [resolvable:$true] %s22_s30 }
   0x5   :  { %s4520_s11 = scalar_lea.hbm %s5368_s1, 2048 }
   0x6   :  { %p4521_p0 = scmp.ne.s32.totalorder %s5368_s1, %s4520_s11  ;;  %p4524_p1 = scmp.lt.u32.totalorder %s4520_s11, %s5368_s1 }
   0x8   :  { %p4526_p2 = pnand %p4524_p1, %p4521_p0 }
   0xa   :  { %4529 = shalt.err (!%p4526_p2)
}
   0xb   :  { %s4530_s16 = scalar_lea.vmem %s35_s28, 2048  ;;  %p4535_p4 = scmp.lt.s32.totalorder %s35_s28, %s35_s28 }
   0xc   :  { %p4531_p3 = scmp.ne.s32.totalorder %s35_s28, %s4530_s16  ;;  %p4536_p5 = scmp.lt.s32.totalorder %s4530_s16, %s4530_s16 }
   0xe   :  { %p4537_p6 = por %p4536_p5, %p4535_p4 }
  0x10   :  { %p4538_p7 = pnand %p4537_p6, %p4531_p3 }
  0x12   :  { %4541 = shalt.err (!%p4538_p7)
}
  0x13   :  { %s4640_s17 = smov 128   ;;  %s4641_s18 = smov 8  }
  0x14   :  { %40 = dma.hbm_to_vmem [thread:$0]  %s5368_s1, 2048, %s35_s28, [#allocation8], %s4640_s17, %s4640_s17, %s4641_s18  }
  0x15   :  { %s4542_s23 = scalar_lea.hbm %s5367_s0, 8192 }
  0x16   :  { %p4543_p8 = scmp.ne.s32.totalorder %s5367_s0, %s4542_s23  ;;  %p4546_p9 = scmp.lt.u32.totalorder %s4542_s23, %s5367_s0 }
  0x18   :  { %p4548_p10 = pnand %p4546_p9, %p4543_p8 }
  0x1a   :  { %4551 = shalt.err (!%p4548_p10)
}
  0x1b   :  { %s4552_s29 = scalar_lea.vmem %s4693_s30, 8192  ;;  %p4557_p12 = scmp.lt.s32.totalorder %s4693_s30, %s4693_s30 }
  0x1c   :  { %p4553_p11 = scmp.ne.s32.totalorder %s4693_s30, %s4552_s29  ;;  %p4558_p13 = scmp.lt.s32.totalorder %s4552_s29, %s4552_s29 }
  0x1e   :  { %p4559_p0 = por %p4558_p13, %p4557_p12 }
  0x20   :  { %p4560_p1 = pnand %p4559_p0, %p4553_p11 }
  0x22   :  { %4563 = shalt.err (!%p4560_p1)
}
  0x23   :  { %28 = dma.hbm_to_vmem [thread:$0]  %s5367_s0, 8192, %s4693_s30, [#allocation5], %s4640_s17, %s4640_s17, %s4641_s18  }
  0x24   :  { %s4642_s9 = smov [#allocation9]   ;;  %s4643_s11 = smov [#allocation10]  }
  0x25   :  { %s48_s10 = sshll.u32 %s4642_s9, 4  ;;  %s62_s12 = sshll.u32 %s4643_s11, 4  ;;  %s49_s10 = int_to_ptr.vmem [resolvable:$true] %s48_s10  ;;  %s4730_s12 = int_to_ptr.vmem [resolvable:$true] %s62_s12 }
  0x26   :  { %s4564_s15 = scalar_lea.hbm %s5370_s3, 18432 }
  0x27   :  { %p4565_p2 = scmp.ne.s32.totalorder %s5370_s3, %s4564_s15  ;;  %p4568_p3 = scmp.lt.u32.totalorder %s4564_s15, %s5370_s3 }
  0x29   :  { %p4570_p4 = pnand %p4568_p3, %p4565_p2 }
  0x2b   :  { %4573 = shalt.err (!%p4570_p4)
}
  0x2c   :  { %s4574_s0 = scalar_lea.vmem %s49_s10, 18432  ;;  %p4579_p6 = scmp.lt.s32.totalorder %s49_s10, %s49_s10 }
  0x2d   :  { %p4575_p5 = scmp.ne.s32.totalorder %s49_s10, %s4574_s0  ;;  %p4580_p7 = scmp.lt.s32.totalorder %s4574_s0, %s4574_s0 }
  0x2f   :  { %p4581_p8 = por %p4580_p7, %p4579_p6 }
  0x31   :  { %p4582_p9 = pnand %p4581_p8, %p4575_p5 }
  0x33   :  { %4585 = shalt.err (!%p4582_p9)
}
  0x34   :  { %54 = dma.hbm_to_vmem [thread:$0]  %s5370_s3, 18432, %s49_s10, [#allocation8], %s4640_s17, %s4640_s17, %s4641_s18  }
  0x35   :  { %s4586_s25 = scalar_lea.hbm %s5372_s5, 2048 }
  0x36   :  { %p4587_p10 = scmp.ne.s32.totalorder %s5372_s5, %s4586_s25  ;;  %p4590_p11 = scmp.lt.u32.totalorder %s4586_s25, %s5372_s5 }
  0x38   :  { %p4592_p12 = pnand %p4590_p11, %p4587_p10 }
  0x3a   :  { %4595 = shalt.err (!%p4592_p12)
}
  0x3b   :  { %s4596_s28 = scalar_lea.vmem %s4730_s12, 2048  ;;  %p4601_p0 = scmp.lt.s32.totalorder %s4730_s12, %s4730_s12 }
  0x3c   :  { %p4597_p13 = scmp.ne.s32.totalorder %s4730_s12, %s4596_s28  ;;  %p4602_p1 = scmp.lt.s32.totalorder %s4596_s28, %s4596_s28 }
  0x3e   :  { %p4603_p2 = por %p4602_p1, %p4601_p0 }
  0x40   :  { %p4604_p3 = pnand %p4603_p2, %p4597_p13 }
  0x42   :  { %4607 = shalt.err (!%p4604_p3)
}
  0x43   :  { %68 = dma.hbm_to_vmem [thread:$0]  %s5372_s5, 2048, %s4730_s12, [#allocation11], %s4640_s17, %s4640_s17, %s4641_s18  }
  0x44   :  { %4630 = dma.done.wait [#allocation5], 8192  }
  0x45   :  { %4631 = vsyncadd [#allocation5], 4294959104 }
  0x46   :  { %4632 = dma.done.wait [#allocation8], 20480  }
  0x47   :  { %4633 = vsyncadd [#allocation8], 4294946816 }
  0x48   :  { %4634 = dma.done.wait [#allocation11], 2048  }
  0x49   :  { %4635 = vsyncadd [#allocation11], 4294965248  ;;  %v149_v0 = vld [vmem:[#allocation7] sm:$0xff]  ;;  %v150_v1 = vld [vmem:[#allocation7 + $0x8] sm:$0xff]  ;;  %vm4646_vm0 = vmmov 0   ;;  %s4647_s12 = smov [#allocation12]  }
  0x4a   :  { %v151_v2 = vld [vmem:[#allocation7 + $0x10] sm:$0xff]  ;;  %v4034_v3 = vpack.c.bf16 %v150_v1, %v149_v0  ;;  %v152_v4 = vld [vmem:[#allocation7 + $0x18] sm:$0xff]  ;;  %v153_v6 = vld [vmem:[#allocation7 + $0x20] sm:$0xff]  ;;  %s2968_s13 = sshll.u32 %s4647_s12, 4  ;;  %s2969_s13 = int_to_ptr.vmem [resolvable:$true] %s2968_s13 }
  0x4b   :  { %v4038_v5 = vpack.c.bf16 %v152_v4, %v151_v2  ;;  %v154_v7 = vld [vmem:[#allocation7 + $0x28] sm:$0xff]  ;;  %v85_v9 = vld [vmem:[#allocation4] sm:$0xff]  ;;  %v155_v10 = vld [vmem:[#allocation7 + $0x30] sm:$0xff]  ;;  %s4608_s14 = scalar_lea.vmem %s2969_s13, 128  ;;  %p4613_p5 = scmp.lt.s32.totalorder %s2969_s13, %s2969_s13 }
  0x4c   :  { %4035 = vmatprep.subr.bf16.mxu0 %v4034_v3  ;;  %v4042_v8 = vpack.c.bf16 %v154_v7, %v153_v6  ;;  %v156_v11 = vld [vmem:[#allocation7 + $0x38] sm:$0xff]  ;;  %3399 = vmatprep.mubr.f32.mxu0 %v85_v9  ;;  %v157_v13 = vld [vmem:[#allocation7 + $0x40] sm:$0xff]  ;;  %v158_v14 = vld [vmem:[#allocation7 + $0x48] sm:$0xff]  ;;  %p4609_p4 = scmp.ne.s32.totalorder %s2969_s13, %s4608_s14  ;;  %p4614_p6 = scmp.lt.s32.totalorder %s4608_s14, %s4608_s14 }
  0x4d   :  { %4037 = vmatpush3.bf16.msra.mxu0 %v4034_v3  ;;  %v4046_v12 = vpack.c.bf16 %v156_v11, %v155_v10  ;;  %v4050_v15 = vpack.c.bf16 %v158_v14, %v157_v13  ;;  %v159_v16 = vld [vmem:[#allocation7 + $0x50] sm:$0xff]  ;;  %v160_v17 = vld [vmem:[#allocation7 + $0x58] sm:$0xff]  ;;  %v161_v19 = vld [vmem:[#allocation7 + $0x60] sm:$0xff] }
  0x4e   :  { %4039 = vmatprep.subr.bf16.mxu0 %v4038_v5  ;;  %v4054_v18 = vpack.c.bf16 %v160_v17, %v159_v16  ;;  %v162_v20 = vld [vmem:[#allocation7 + $0x68] sm:$0xff]  ;;  %v163_v22 = vld [vmem:[#allocation7 + $0x70] sm:$0xff]  ;;  %v164_v23 = vld [vmem:[#allocation7 + $0x78] sm:$0xff]  ;;  %p4615_p7 = por %p4614_p6, %p4613_p5 }
  0x4f   :  { %v4058_v21 = vpack.c.bf16 %v162_v20, %v161_v19  ;;  %v1194_v24 = vld [vmem:[#allocation9 + $0x100] sm:$0xff]  ;;  %v4062_v25 = vpack.c.bf16 %v164_v23, %v163_v22  ;;  %v1195_v27 = vld [vmem:[#allocation9 + $0x108] sm:$0xff]  ;;  %v1196_v30 = vld [vmem:[#allocation9 + $0x110] sm:$0xff] }
  0x50   :  { %v735_v26 = vld [vmem:[#allocation9] sm:$0xff]  ;;  %v736_v28 = vld [vmem:[#allocation9 + $0x8] sm:$0xff]  ;;  %v4130_v29 = vpack.c.bf16 %v1195_v27, %v1194_v24  ;;  %v1197_v31 = vld [vmem:[#allocation9 + $0x118] sm:$0xff]  ;;  %p4616_p8 = pnand %p4615_p7, %p4609_p4 }
  0x51   :  { %4041 = vmatpush3.bf16.msra.mxu0 %v4038_v5  ;;  %v4134_v32 = vpack.c.bf16 %v1197_v31, %v1196_v30  ;;  %v1198_v33 = vld [vmem:[#allocation9 + $0x120] sm:$0xff]  ;;  %v1199_v34 = vld [vmem:[#allocation9 + $0x128] sm:$0xff]  ;;  %v4066_v35 = vpack.c.bf16 %v736_v28, %v735_v26  ;;  %v737_v36 = vld [vmem:[#allocation9 + $0x10] sm:$0xff] }
  0x52   :  { %4043 = vmatprep.subr.bf16.mxu0 %v4042_v8  ;;  %4131 = vmatprep.subr.bf16.mxu1 %v4130_v29  ;;  %v738_v37 = vld [vmem:[#allocation9 + $0x18] sm:$0xff]  ;;  %v4138_v38 = vpack.c.bf16 %v1199_v34, %v1198_v33  ;;  %v1200_v39 = vld [vmem:[#allocation9 + $0x130] sm:$0xff]  ;;  %v86_v41 = vld [vmem:[#allocation4 + $0x8] sm:$0xff] }
  0x53   :  { %4133 = vmatpush3.bf16.msra.mxu1 %v4130_v29  ;;  %v1201_v40 = vld [vmem:[#allocation9 + $0x138] sm:$0xff]  ;;  %v87_v42 = vld [vmem:[#allocation4 + $0x10] sm:$0xff]  ;;  %v4070_v43 = vpack.c.bf16 %v738_v37, %v737_v36  ;;  %v739_v44 = vld [vmem:[#allocation9 + $0x20] sm:$0xff] }
  0x54   :  { %4135 = vmatprep.subr.bf16.mxu1 %v4134_v32  ;;  %v740_v45 = vld [vmem:[#allocation9 + $0x28] sm:$0xff]  ;;  %v4142_v46 = vpack.c.bf16 %v1201_v40, %v1200_v39  ;;  %v88_v47 = vld [vmem:[#allocation4 + $0x18] sm:$0xff]  ;;  %v89_v48 = vld [vmem:[#allocation4 + $0x20] sm:$0xff] }
  0x55   :  { %4045 = vmatpush3.bf16.msra.mxu0 %v4042_v8  ;;  %v4074_v49 = vpack.c.bf16 %v740_v45, %v739_v44  ;;  %v741_v50 = vld [vmem:[#allocation9 + $0x30] sm:$0xff]  ;;  %v742_v51 = vld [vmem:[#allocation9 + $0x38] sm:$0xff]  ;;  %v90_v52 = vld [vmem:[#allocation4 + $0x28] sm:$0xff] }
  0x56   :  { %4047 = vmatprep.subr.bf16.mxu0 %v4046_v12  ;;  %v91_v53 = vld [vmem:[#allocation4 + $0x30] sm:$0xff]  ;;  %v4078_v54 = vpack.c.bf16 %v742_v51, %v741_v50  ;;  %v743_v55 = vld [vmem:[#allocation9 + $0x40] sm:$0xff]  ;;  %v744_v56 = vld [vmem:[#allocation9 + $0x48] sm:$0xff] }
  0x57   :  { %4137 = vmatpush3.bf16.msra.mxu1 %v4134_v32  ;;  %v92_v57 = vld [vmem:[#allocation4 + $0x38] sm:$0xff]  ;;  %v93_v58 = vld [vmem:[#allocation4 + $0x40] sm:$0xff]  ;;  %v4082_v59 = vpack.c.bf16 %v744_v56, %v743_v55  ;;  %v94_v60 = vld [vmem:[#allocation4 + $0x48] sm:$0xff] }
  0x58   :  { %4139 = vmatprep.subr.bf16.mxu1 %v4138_v38  ;;  %v95_v61 = vld [vmem:[#allocation4 + $0x50] sm:$0xff]  ;;  %v96_v62 = vld [vmem:[#allocation4 + $0x58] sm:$0xff]  ;;  %v97_v63 = vld [vmem:[#allocation4 + $0x60] sm:$0xff] }
  0x59   :  { %4049 = vmatpush3.bf16.msra.mxu0 %v4046_v12  ;;  %v98_v0 = vld [vmem:[#allocation4 + $0x68] sm:$0xff]  ;;  %v99_v1 = vld [vmem:[#allocation4 + $0x70] sm:$0xff]  ;;  %v100_v2 = vld [vmem:[#allocation4 + $0x78] sm:$0xff] }
  0x5a   :  { %4051 = vmatprep.subr.bf16.mxu0 %v4050_v15  ;;  %v101_v3 = vld [vmem:[#allocation4 + $0x80] sm:$0xff]  ;;  %v102_v4 = vld [vmem:[#allocation4 + $0x88] sm:$0xff]  ;;  %v103_v5 = vld [vmem:[#allocation4 + $0x90] sm:$0xff] }
  0x5b   :  { %4141 = vmatpush3.bf16.msra.mxu1 %v4138_v38  ;;  %v104_v6 = vld [vmem:[#allocation4 + $0x98] sm:$0xff]  ;;  %v105_v7 = vld [vmem:[#allocation4 + $0xa0] sm:$0xff]  ;;  %v106_v8 = vld [vmem:[#allocation4 + $0xa8] sm:$0xff] }
  0x5c   :  { %4143 = vmatprep.subr.bf16.mxu1 %v4142_v46  ;;  %v107_v9 = vld [vmem:[#allocation4 + $0xb0] sm:$0xff]  ;;  %v108_v10 = vld [vmem:[#allocation4 + $0xb8] sm:$0xff]  ;;  %v109_v11 = vld [vmem:[#allocation4 + $0xc0] sm:$0xff] }
  0x5d   :  { %4053 = vmatpush3.bf16.msra.mxu0 %v4050_v15  ;;  %v110_v12 = vld [vmem:[#allocation4 + $0xc8] sm:$0xff]  ;;  %v111_v13 = vld [vmem:[#allocation4 + $0xd0] sm:$0xff]  ;;  %v112_v14 = vld [vmem:[#allocation4 + $0xd8] sm:$0xff] }
  0x5e   :  { %4055 = vmatprep.subr.bf16.mxu0 %v4054_v18  ;;  %v113_v15 = vld [vmem:[#allocation4 + $0xe0] sm:$0xff]  ;;  %v114_v16 = vld [vmem:[#allocation4 + $0xe8] sm:$0xff]  ;;  %v115_v17 = vld [vmem:[#allocation4 + $0xf0] sm:$0xff] }
  0x5f   :  { %4145 = vmatpush3.bf16.msra.mxu1 %v4142_v46  ;;  %v117_v19 = vld [vmem:[#allocation4 + $0x100] sm:$0xff]  ;;  %v118_v20 = vld [vmem:[#allocation4 + $0x108] sm:$0xff]  ;;  %v120_v22 = vld [vmem:[#allocation4 + $0x118] sm:$0xff] }
  0x60   :  { %v121_v23 = vld [vmem:[#allocation4 + $0x120] sm:$0xff]  ;;  %v122_v24 = vld [vmem:[#allocation4 + $0x128] sm:$0xff]  ;;  %v124_v26 = vld [vmem:[#allocation4 + $0x138] sm:$0xff] }
  0x61   :  { %4057 = vmatpush3.bf16.msra.mxu0 %v4054_v18  ;;  %v116_v18 = vld [vmem:[#allocation4 + $0xf8] sm:$0xff]  ;;  %v125_v27 = vld [vmem:[#allocation4 + $0x140] sm:$0xff]  ;;  %v126_v28 = vld [vmem:[#allocation4 + $0x148] sm:$0xff] }
  0x62   :  { %4059 = vmatprep.subr.bf16.mxu0 %v4058_v21  ;;  %v127_v29 = vld [vmem:[#allocation4 + $0x150] sm:$0xff]  ;;  %v1202_v30 = vld [vmem:[#allocation9 + $0x140] sm:$0xff]  ;;  %v1203_v31 = vld [vmem:[#allocation9 + $0x148] sm:$0xff] }
  0x63   :  { %v128_v32 = vld [vmem:[#allocation4 + $0x158] sm:$0xff]  ;;  %v4146_v33 = vpack.c.bf16 %v1203_v31, %v1202_v30  ;;  %v745_v34 = vld [vmem:[#allocation9 + $0x50] sm:$0xff]  ;;  %v129_v36 = vld [vmem:[#allocation4 + $0x160] sm:$0xff] }
  0x64   :  { %v1204_v38 = vld [vmem:[#allocation9 + $0x150] sm:$0xff]  ;;  %v1205_v39 = vld [vmem:[#allocation9 + $0x158] sm:$0xff]  ;;  %v130_v40 = vld [vmem:[#allocation4 + $0x168] sm:$0xff] }
  0x65   :  { %4061 = vmatpush3.bf16.msra.mxu0 %v4058_v21  ;;  %v119_v21 = vld [vmem:[#allocation4 + $0x110] sm:$0xff]  ;;  %4147 = vmatprep.subr.bf16.mxu1 %v4146_v33  ;;  %v1206_v46 = vld [vmem:[#allocation9 + $0x160] sm:$0xff]  ;;  %v750_v51 = vld [vmem:[#allocation9 + $0x78] sm:$0xff] }
  0x66   :  { %4063 = vmatprep.subr.bf16.mxu0 %v4062_v25  ;;  %4149 = vmatpush3.bf16.msra.mxu1 %v4146_v33  ;;  %v131_v44 = vld [vmem:[#allocation4 + $0x170] sm:$0xff]  ;;  %v1209_v55 = vld [vmem:[#allocation9 + $0x178] sm:$0xff]  ;;  %v134_v56 = vld [vmem:[#allocation4 + $0x188] sm:$0xff] }
  0x67   :  { %v749_v50 = vld [vmem:[#allocation9 + $0x70] sm:$0xff]  ;;  %v1435_v31 = vld [vmem:[#allocation9 + $0x1b8] sm:$0xff] }
  0x68   :  { %v1434_v30 = vld [vmem:[#allocation9 + $0x1b0] sm:$0xff] }
  0x69   :  { %4065 = vmatpush3.bf16.msra.mxu0 %v4062_v25  ;;  %v123_v25 = vld [vmem:[#allocation4 + $0x130] sm:$0xff]  ;;  %v4174_v33 = vpack.c.bf16 %v1435_v31, %v1434_v30 }
  0x6a   :  { %4067 = vmatprep.subr.bf16.mxu0 %v4066_v35 }
  0x6c   :  { %3400 = vmatmul.mubr.f32.vlgmr.msra.gmra.mrb[0].mxu0 %v86_v41  ;;  %v4150_v41 = vpack.c.bf16 %v1205_v39, %v1204_v38  ;;  %v979_v38 = vld [vmem:[#allocation9 + $0xd0] sm:$0xff] }
  0x6d   :  { %3402 = vmatprep.mubr.f32.mxu0 %v87_v42  ;;  %4069 = vmatpush3.bf16.msra.mxu0 %v4066_v35  ;;  %v746_v35 = vld [vmem:[#allocation9 + $0x58] sm:$0xff]  ;;  %v747_v42 = vld [vmem:[#allocation9 + $0x60] sm:$0xff] }
  0x6e   :  { %4071 = vmatprep.subr.bf16.mxu0 %v4070_v43  ;;  %v4086_v37 = vpack.c.bf16 %v746_v35, %v745_v34  ;;  %4151 = vmatprep.subr.bf16.mxu1 %v4150_v41  ;;  %v978_v34 = vld [vmem:[#allocation9 + $0xc8] sm:$0xff] }
  0x6f   :  { %4153 = vmatpush3.bf16.msra.mxu1 %v4150_v41 }
  0x70   :  { %3403 = vmatmul.mubr.f32.gmra.mrb[2].mxu0 %v88_v47  ;;  %v1207_v47 = vld [vmem:[#allocation9 + $0x168] sm:$0xff] }
  0x71   :  { %3405 = vmatprep.mubr.f32.mxu0 %v89_v48  ;;  %4073 = vmatpush3.bf16.msra.mxu0 %v4070_v43  ;;  %v748_v43 = vld [vmem:[#allocation9 + $0x68] sm:$0xff]  ;;  %v132_v48 = vld [vmem:[#allocation4 + $0x178] sm:$0xff] }
  0x72   :  { %4075 = vmatprep.subr.bf16.mxu0 %v4074_v49  ;;  %v4090_v45 = vpack.c.bf16 %v748_v43, %v747_v42  ;;  %v1438_v42 = vld [vmem:[#allocation9 + $0x1d0] sm:$0xff]  ;;  %v1439_v43 = vld [vmem:[#allocation9 + $0x1d8] sm:$0xff] }
  0x74   :  { %3406 = vmatmul.mubr.f32.gmra.mrb[4].mxu0 %v90_v52  ;;  %v133_v52 = vld [vmem:[#allocation4 + $0x180] sm:$0xff] }
  0x75   :  { %3408 = vmatprep.mubr.f32.mxu0 %v91_v53  ;;  %4077 = vmatpush3.bf16.msra.mxu0 %v4074_v49  ;;  %v4154_v49 = vpack.c.bf16 %v1207_v47, %v1206_v46  ;;  %v4094_v53 = vpack.c.bf16 %v750_v51, %v749_v50  ;;  %v982_v46 = vld [vmem:[#allocation9 + $0xe8] sm:$0xff]  ;;  %v983_v50 = vld [vmem:[#allocation9 + $0xf0] sm:$0xff] }
  0x76   :  { %4079 = vmatprep.subr.bf16.mxu0 %v4078_v54 }
  0x77   :  { %4155 = vmatprep.subr.bf16.mxu1 %v4154_v49 }
  0x78   :  { %3409 = vmatmul.mubr.f32.gmra.mrb[6].mxu0 %v92_v57  ;;  %4157 = vmatpush3.bf16.msra.mxu1 %v4154_v49  ;;  %v1441_v49 = vld [vmem:[#allocation9 + $0x1e8] sm:$0xff] }
  0x79   :  { %3411 = vmatprep.mubr.f32.mxu0 %v93_v58  ;;  %4081 = vmatpush3.bf16.msra.mxu0 %v4078_v54  ;;  %v1208_v54 = vld [vmem:[#allocation9 + $0x170] sm:$0xff] }
  0x7a   :  { %4083 = vmatprep.subr.bf16.mxu0 %v4082_v59  ;;  %v4158_v57 = vpack.c.bf16 %v1209_v55, %v1208_v54  ;;  %v135_v58 = vld [vmem:[#allocation4 + $0x190] sm:$0xff]  ;;  %v1443_v55 = vld [vmem:[#allocation9 + $0x1f8] sm:$0xff] }
  0x7b   :  { %v1442_v54 = vld [vmem:[#allocation9 + $0x1f0] sm:$0xff] }
  0x7c   :  { %3412 = vmatmul.mubr.f32.gmra.mrb[8].mxu0 %v94_v60  ;;  %4159 = vmatprep.subr.bf16.mxu1 %v4158_v57  ;;  %v136_v60 = vld [vmem:[#allocation4 + $0x198] sm:$0xff] }
  0x7d   :  { %3414 = vmatprep.mubr.f32.mxu0 %v95_v61  ;;  %4085 = vmatpush3.bf16.msra.mxu0 %v4082_v59  ;;  %v5379_v59 = vmov 0.0   ;;  %v137_v61 = vld [vmem:[#allocation4 + $0x1a0] sm:$0xff] }
  0x7e   :  { %4087 = vmatprep.subr.bf16.mxu0 %v4086_v37  ;;  %3639 = vmatprep.mubr.f32.mxu1 %v5379_v59 }
  0x7f   :  { %4161 = vmatpush3.bf16.msra.mxu1 %v4158_v57  ;;  %v1669_v57 = vld [vmem:[#allocation9 + $0x200] sm:$0xff] }
  0x80   :  { %3415 = vmatmul.mubr.f32.gmra.mrb[10].mxu0 %v96_v62  ;;  %v138_v62 = vld [vmem:[#allocation4 + $0x1a8] sm:$0xff] }
  0x81   :  { %3417 = vmatprep.mubr.f32.mxu0 %v97_v63  ;;  %4089 = vmatpush3.bf16.msra.mxu0 %v4086_v37  ;;  %v139_v63 = vld [vmem:[#allocation4 + $0x1b0] sm:$0xff]  ;;  %v1437_v37 = vld [vmem:[#allocation9 + $0x1c8] sm:$0xff] }
  0x82   :  { %4091 = vmatprep.subr.bf16.mxu0 %v4090_v45  ;;  %3640 = vmatmul.mubr.f32.vlgmr.msra.gmra.mrb[0].mxu1 %v5379_v59 }
  0x83   :  { %3642 = vmatprep.mubr.f32.mxu1 %v5379_v59 }
  0x84   :  { %3418 = vmatmul.mubr.f32.gmra.mrb[12].mxu0 %v98_v0  ;;  %v140_v0 = vld [vmem:[#allocation4 + $0x1b8] sm:$0xff] }
  0x85   :  { %3420 = vmatprep.mubr.f32.mxu0 %v99_v1  ;;  %4093 = vmatpush3.bf16.msra.mxu0 %v4090_v45  ;;  %v141_v1 = vld [vmem:[#allocation4 + $0x1c0] sm:$0xff]  ;;  %v4182_v45 = vpack.c.bf16 %v1439_v43, %v1438_v42 }
  0x86   :  { %4095 = vmatprep.subr.bf16.mxu0 %v4094_v53  ;;  %3643 = vmatmul.mubr.f32.gmra.mrb[2].mxu1 %v5379_v59 }
  0x88   :  { %3421 = vmatmul.mubr.f32.gmra.mrb[14].mxu0 %v100_v2  ;;  %v142_v2 = vld [vmem:[#allocation4 + $0x1c8] sm:$0xff] }
  0x89   :  { %3423 = vmatprep.mubr.f32.mxu0 %v101_v3  ;;  %4097 = vmatpush3.bf16.msra.mxu0 %v4094_v53  ;;  %v143_v3 = vld [vmem:[#allocation4 + $0x1d0] sm:$0xff] }
  0x8c   :  { %3424 = vmatmul.mubr.f32.gmra.mrb[16].mxu0 %v102_v4  ;;  %v144_v4 = vld [vmem:[#allocation4 + $0x1d8] sm:$0xff] }
  0x8d   :  { %3426 = vmatprep.mubr.f32.mxu0 %v103_v5  ;;  %v145_v5 = vld [vmem:[#allocation4 + $0x1e0] sm:$0xff] }
  0x90   :  { %3427 = vmatmul.mubr.f32.gmra.mrb[18].mxu0 %v104_v6  ;;  %v146_v6 = vld [vmem:[#allocation4 + $0x1e8] sm:$0xff] }
  0x91   :  { %3429 = vmatprep.mubr.f32.mxu0 %v105_v7  ;;  %v147_v7 = vld [vmem:[#allocation4 + $0x1f0] sm:$0xff] }
  0x94   :  { %3430 = vmatmul.mubr.f32.gmra.mrb[20].mxu0 %v106_v8  ;;  %v148_v8 = vld [vmem:[#allocation4 + $0x1f8] sm:$0xff] }
  0x95   :  { %3432 = vmatprep.mubr.f32.mxu0 %v107_v9  ;;  %v969_v9 = vld [vmem:[#allocation9 + $0x80] sm:$0xff] }
  0x98   :  { %3433 = vmatmul.mubr.f32.gmra.mrb[22].mxu0 %v108_v10  ;;  %v970_v10 = vld [vmem:[#allocation9 + $0x88] sm:$0xff] }
  0x99   :  { %3435 = vmatprep.mubr.f32.mxu0 %v109_v11  ;;  %v4098_v11 = vpack.c.bf16 %v970_v10, %v969_v9 }
  0x9b   :  { %4099 = vmatprep.subr.bf16.mxu0 %v4098_v11 }
  0x9c   :  { %3436 = vmatmul.mubr.f32.gmra.mrb[24].mxu0 %v110_v12  ;;  %v1428_v12 = vld [vmem:[#allocation9 + $0x180] sm:$0xff] }
  0x9d   :  { %3438 = vmatprep.mubr.f32.mxu0 %v111_v13  ;;  %v1429_v13 = vld [vmem:[#allocation9 + $0x188] sm:$0xff] }
  0xa0   :  { %3439 = vmatmul.mubr.f32.gmra.mrb[26].mxu0 %v112_v14  ;;  %v971_v14 = vld [vmem:[#allocation9 + $0x90] sm:$0xff] }
  0xa1   :  { %3441 = vmatprep.mubr.f32.mxu0 %v113_v15  ;;  %v4162_v15 = vpack.c.bf16 %v1429_v13, %v1428_v12 }
  0xa3   :  { %4163 = vmatprep.subr.bf16.mxu1 %v4162_v15 }
  0xa4   :  { %3442 = vmatmul.mubr.f32.gmra.mrb[28].mxu0 %v114_v16  ;;  %v972_v16 = vld [vmem:[#allocation9 + $0x98] sm:$0xff]  ;;  %4165 = vmatpush3.bf16.msra.mxu1 %v4162_v15 }
  0xa5   :  { %3444 = vmatprep.mubr.f32.mxu0 %v115_v17  ;;  %v4102_v17 = vpack.c.bf16 %v972_v16, %v971_v14 }
  0xa8   :  { %3445 = vmatmul.mubr.f32.gmra.mrb[30].mxu0 %v116_v18  ;;  %v1430_v18 = vld [vmem:[#allocation9 + $0x190] sm:$0xff] }
  0xa9   :  { %3447 = vmatprep.mubr.f32.mxu0 %v117_v19  ;;  %v1431_v19 = vld [vmem:[#allocation9 + $0x198] sm:$0xff] }
  0xac   :  { %3448 = vmatmul.mubr.f32.gmra.mrb[32].mxu0 %v118_v20  ;;  %v973_v20 = vld [vmem:[#allocation9 + $0xa0] sm:$0xff] }
  0xad   :  { %3450 = vmatprep.mubr.f32.mxu0 %v119_v21  ;;  %v4166_v21 = vpack.c.bf16 %v1431_v19, %v1430_v18 }
  0xaf   :  { %4167 = vmatprep.subr.bf16.mxu1 %v4166_v21 }
  0xb0   :  { %3451 = vmatmul.mubr.f32.gmra.mrb[34].mxu0 %v120_v22  ;;  %v974_v22 = vld [vmem:[#allocation9 + $0xa8] sm:$0xff]  ;;  %4169 = vmatpush3.bf16.msra.mxu1 %v4166_v21 }
  0xb1   :  { %3453 = vmatprep.mubr.f32.mxu0 %v121_v23  ;;  %v4106_v23 = vpack.c.bf16 %v974_v22, %v973_v20 }
  0xb4   :  { %3454 = vmatmul.mubr.f32.gmra.mrb[36].mxu0 %v122_v24  ;;  %v1432_v24 = vld [vmem:[#allocation9 + $0x1a0] sm:$0xff] }
  0xb5   :  { %3456 = vmatprep.mubr.f32.mxu0 %v123_v25  ;;  %v1433_v25 = vld [vmem:[#allocation9 + $0x1a8] sm:$0xff] }
  0xb8   :  { %3457 = vmatmul.mubr.f32.gmra.mrb[38].mxu0 %v124_v26  ;;  %v975_v26 = vld [vmem:[#allocation9 + $0xb0] sm:$0xff] }
  0xb9   :  { %3459 = vmatprep.mubr.f32.mxu0 %v125_v27  ;;  %v4170_v27 = vpack.c.bf16 %v1433_v25, %v1432_v24 }
  0xbb   :  { %4171 = vmatprep.subr.bf16.mxu1 %v4170_v27 }
  0xbc   :  { %3460 = vmatmul.mubr.f32.gmra.mrb[40].mxu0 %v126_v28  ;;  %v976_v28 = vld [vmem:[#allocation9 + $0xb8] sm:$0xff]  ;;  %4173 = vmatpush3.bf16.msra.mxu1 %v4170_v27 }
  0xbd   :  { %3462 = vmatprep.mubr.f32.mxu0 %v127_v29  ;;  %v4110_v29 = vpack.c.bf16 %v976_v28, %v975_v26  ;;  %4175 = vmatprep.subr.bf16.mxu1 %v4174_v33 }
  0xc0   :  { %3463 = vmatmul.mubr.f32.gmra.mrb[42].mxu0 %v128_v32  ;;  %v977_v32 = vld [vmem:[#allocation9 + $0xc0] sm:$0xff]  ;;  %4177 = vmatpush3.bf16.msra.mxu1 %v4174_v33 }
  0xc1   :  { %3465 = vmatprep.mubr.f32.mxu0 %v129_v36  ;;  %v4114_v35 = vpack.c.bf16 %v978_v34, %v977_v32  ;;  %v1436_v36 = vld [vmem:[#allocation9 + $0x1c0] sm:$0xff] }
  0xc2   :  { %v4178_v39 = vpack.c.bf16 %v1437_v37, %v1436_v36 }
  0xc4   :  { %3466 = vmatmul.mubr.f32.gmra.mrb[44].mxu0 %v130_v40  ;;  %v980_v40 = vld [vmem:[#allocation9 + $0xd8] sm:$0xff]  ;;  %4179 = vmatprep.subr.bf16.mxu1 %v4178_v39 }
  0xc5   :  { %3468 = vmatprep.mubr.f32.mxu0 %v131_v44  ;;  %v4118_v41 = vpack.c.bf16 %v980_v40, %v979_v38  ;;  %4181 = vmatpush3.bf16.msra.mxu1 %v4178_v39  ;;  %v981_v44 = vld [vmem:[#allocation9 + $0xe0] sm:$0xff] }
  0xc6   :  { %v4122_v47 = vpack.c.bf16 %v982_v46, %v981_v44  ;;  %4183 = vmatprep.subr.bf16.mxu1 %v4182_v45 }
  0xc8   :  { %3469 = vmatmul.mubr.f32.gmra.mrb[46].mxu0 %v132_v48  ;;  %v1440_v48 = vld [vmem:[#allocation9 + $0x1e0] sm:$0xff] }
  0xc9   :  { %3471 = vmatprep.mubr.f32.mxu0 %v133_v52  ;;  %4185 = vmatpush3.bf16.msra.mxu1 %v4182_v45  ;;  %v4186_v51 = vpack.c.bf16 %v1441_v49, %v1440_v48  ;;  %v984_v52 = vld [vmem:[#allocation9 + $0xf8] sm:$0xff] }
  0xca   :  { %v4126_v53 = vpack.c.bf16 %v984_v52, %v983_v50 }
  0xcb   :  { %4187 = vmatprep.subr.bf16.mxu1 %v4186_v51 }
  0xcc   :  { %3472 = vmatmul.mubr.f32.gmra.mrb[48].mxu0 %v134_v56  ;;  %v4190_v56 = vpack.c.bf16 %v1443_v55, %v1442_v54 }
  0xcd   :  { %3474 = vmatprep.mubr.f32.mxu0 %v135_v58  ;;  %4189 = vmatpush3.bf16.msra.mxu1 %v4186_v51  ;;  %v1670_v58 = vld [vmem:[#allocation9 + $0x208] sm:$0xff] }
  0xce   :  { %4191 = vmatprep.subr.bf16.mxu1 %v4190_v56 }
  0xd0   :  { %3475 = vmatmul.mubr.f32.gmra.mrb[50].mxu0 %v136_v60  ;;  %v4776_v60 = vpack.c.bf16 %v1670_v58, %v1669_v57 }
  0xd1   :  { %3477 = vmatprep.mubr.f32.mxu0 %v137_v61  ;;  %4193 = vmatpush3.bf16.msra.mxu1 %v4190_v56 }
  0xd2   :  { %4195 = vmatprep.subr.bf16.mxu1 %v4776_v60 }
  0xd4   :  { %3478 = vmatmul.mubr.f32.gmra.mrb[52].mxu0 %v138_v62 }
  0xd5   :  { %3480 = vmatprep.mubr.f32.mxu0 %v139_v63 }
  0xd8   :  { %3481 = vmatmul.mubr.f32.gmra.mrb[54].mxu0 %v140_v0 }
  0xd9   :  { %3483 = vmatprep.mubr.f32.mxu0 %v141_v1 }
  0xdc   :  { %3484 = vmatmul.mubr.f32.gmra.mrb[56].mxu0 %v142_v2 }
  0xdd   :  { %3486 = vmatprep.mubr.f32.mxu0 %v143_v3 }
  0xe0   :  { %3487 = vmatmul.mubr.f32.gmra.mrb[58].mxu0 %v144_v4 }
  0xe1   :  { %3489 = vmatprep.mubr.f32.mxu0 %v145_v5  ;;  %v4798_v5 = vld [vmem:[%s5369_s2] ss:$0 sm:$0xff] }
  0xe4   :  { %3490 = vmatmul.mubr.f32.gmra.mrb[60].mxu0 %v146_v6 }
  0xe5   :  { %3492 = vmatprep.mubr.f32.mxu0 %v147_v7 }
  0xe8   :  { %3493 = vmatmul.mubr.f32.gmra.mrb[62].mxu0 %v148_v8 }
  0xe9   :  { %3527 = vmatprep.mubr.f32.mxu0 %v5379_v59 }
  0xec   :  { %3528 = vmatmul.mubr.f32.vlgmr.msra.gmra.mrb[64].mxu0 %v5379_v59 }
  0xed   :  { %3530 = vmatprep.mubr.f32.mxu0 %v5379_v59  ;;  %4101 = vmatpush3.bf16.msra.mxu0 %v4098_v11 }
  0xee   :  { %4103 = vmatprep.subr.bf16.mxu0 %v4102_v17 }
  0xf0   :  { %3531 = vmatmul.mubr.f32.gmra.mrb[66].mxu0 %v5379_v59 }
  0xf1   :  { %3533 = vmatprep.mubr.f32.mxu0 %v5379_v59  ;;  %4105 = vmatpush3.bf16.msra.mxu0 %v4102_v17 }
  0xf2   :  { %4107 = vmatprep.subr.bf16.mxu0 %v4106_v23 }
  0xf5   :  { %4109 = vmatpush3.bf16.msra.mxu0 %v4106_v23 }
  0xf6   :  { %4111 = vmatprep.subr.bf16.mxu0 %v4110_v29 }
  0xf9   :  { %4113 = vmatpush3.bf16.msra.mxu0 %v4110_v29 }
  0xfa   :  { %4115 = vmatprep.subr.bf16.mxu0 %v4114_v35 }
  0xfd   :  { %4117 = vmatpush3.bf16.msra.mxu0 %v4114_v35 }
  0xfe   :  { %4119 = vmatprep.subr.bf16.mxu0 %v4118_v41 }
 0x101   :  { %4121 = vmatpush3.bf16.msra.mxu0 %v4118_v41 }
 0x102   :  { %4123 = vmatprep.subr.bf16.mxu0 %v4122_v47 }
 0x105   :  { %4125 = vmatpush3.bf16.msra.mxu0 %v4122_v47 }
 0x106   :  { %4127 = vmatprep.subr.bf16.mxu0 %v4126_v53 }
 0x109   :  { %4129 = vmatpush3.bf16.msra.mxu0 %v4126_v53 }
 0x13f   :  { %v4779_v61 = vpop.f32.mrb[0].mxu0 }
 0x140   :  { %v4781_v62 = vpop.f32.mrb[1].mxu0 }
 0x143   :  { %v4783_v63 = vpop.f32.mrb[2].mxu0 }
 0x144   :  { %v4785_v0 = vpop.f32.mrb[3].mxu0 }
 0x147   :  { %v4787_v1 = vpop.f32.mrb[4].mxu0 }
 0x148   :  { %v4789_v2 = vpop.f32.mrb[5].mxu0 }
 0x14b   :  { %v4791_v3 = vpop.f32.mrb[6].mxu0 }
 0x14c   :  { %v4793_v4 = vpop.f32.mrb[7].mxu0 }
 0x14f   :  { %v3413_v6 = vpop.f32.mrb[8].mxu0 }
 0x150   :  { %v284_v7 = vadd.f32 %v3413_v6, %v4798_v5  ;;  %v4801_v8 = vpop.f32.mrb[9].mxu0 }
 0x152   :  { %v4803_v9 = vmax.f32 %v284_v7, 0.0 }
 0x153   :  { %v3416_v10 = vpop.f32.mrb[10].mxu0 }
 0x154   :  { %v294_v11 = vadd.f32 %v3416_v10, %v4798_v5  ;;  %v4806_v12 = vpop.f32.mrb[11].mxu0  ;;  %3534 = vmatmul.mubr.f32.gmra.mrb[68].mxu0 %v4803_v9  ;;  %3645 = vmatprep.mubr.f32.mxu1 %v4803_v9 }
 0x156   :  { %v4810_v13 = vmax.f32 %v294_v11, 0.0 }
 0x157   :  { %v3419_v14 = vpop.f32.mrb[12].mxu0 }
 0x158   :  { %v304_v15 = vadd.f32 %v3419_v14, %v4798_v5  ;;  %v4813_v16 = vpop.f32.mrb[13].mxu0  ;;  %3536 = vmatprep.mubr.f32.mxu0 %v4810_v13  ;;  %3646 = vmatmul.mubr.f32.gmra.mrb[4].mxu1 %v4810_v13 }
 0x15a   :  { %v4817_v17 = vmax.f32 %v304_v15, 0.0 }
 0x15b   :  { %v3422_v18 = vpop.f32.mrb[14].mxu0 }
 0x15c   :  { %v4820_v19 = vadd.f32 %v3422_v18, %v4798_v5  ;;  %v4822_v20 = vpop.f32.mrb[15].mxu0  ;;  %3537 = vmatmul.mubr.f32.gmra.mrb[70].mxu0 %v4817_v17  ;;  %3648 = vmatprep.mubr.f32.mxu1 %v4817_v17 }
 0x15d   :  { %3539 = vmatprep.mubr.f32.mxu0 %v5379_v59 }
 0x15e   :  { %5411 = vst [vmem:[#allocation17_spill] sm:$0xff] %v4820_v19  ;;  %v5378_v21 = vmax.f32 %v4820_v19, 0.0  ;;  %v1678_v19 = vld [vmem:[#allocation9 + $0x248] sm:$0xff] }
 0x15f   :  { %v4828_v22 = vpop.f32.mrb[16].mxu0 }
 0x160   :  { %v4830_v23 = vpop.f32.mrb[17].mxu0  ;;  %3649 = vmatmul.mubr.f32.gmra.mrb[6].mxu1 %v5378_v21 }
 0x163   :  { %v4834_v24 = vpop.f32.mrb[18].mxu0 }
 0x164   :  { %v4836_v25 = vpop.f32.mrb[19].mxu0 }
 0x167   :  { %v4838_v26 = vpop.f32.mrb[20].mxu0 }
 0x168   :  { %v4840_v27 = vpop.f32.mrb[21].mxu0 }
 0x16b   :  { %v4842_v28 = vpop.f32.mrb[22].mxu0 }
 0x16c   :  { %v4844_v29 = vpop.f32.mrb[23].mxu0 }
 0x16f   :  { %v3437_v30 = vpop.f32.mrb[24].mxu0 }
 0x170   :  { %v364_v31 = vadd.f32 %v3437_v30, %v4798_v5  ;;  %v4847_v32 = vpop.f32.mrb[25].mxu0 }
 0x172   :  { %v4849_v33 = vmax.f32 %v364_v31, 0.0 }
 0x173   :  { %v3440_v34 = vpop.f32.mrb[26].mxu0 }
 0x174   :  { %v374_v35 = vadd.f32 %v3440_v34, %v4798_v5  ;;  %v4852_v36 = vpop.f32.mrb[27].mxu0  ;;  %3540 = vmatmul.mubr.f32.gmra.mrb[72].mxu0 %v4849_v33  ;;  %3651 = vmatprep.mubr.f32.mxu1 %v4849_v33 }
 0x176   :  { %v4856_v37 = vmax.f32 %v374_v35, 0.0  ;;  %v4921_v35 = vadd.f32 %v4779_v61, %v4798_v5 }
 0x177   :  { %v3443_v38 = vpop.f32.mrb[28].mxu0 }
 0x178   :  { %v384_v39 = vadd.f32 %v3443_v38, %v4798_v5  ;;  %v4859_v40 = vpop.f32.mrb[29].mxu0  ;;  %3542 = vmatprep.mubr.f32.mxu0 %v4856_v37  ;;  %3652 = vmatmul.mubr.f32.gmra.mrb[8].mxu1 %v4856_v37 }
 0x17a   :  { %v4863_v41 = vmax.f32 %v384_v39, 0.0  ;;  %v4926_v39 = vadd.f32 %v4798_v5, %v4801_v8  ;;  %v4970_v8 = vadd.f32 %v4798_v5, %v4822_v20  ;;  %v4987_v20 = vadd.f32 %v4834_v24, %v4798_v5 }
 0x17b   :  { %v3446_v42 = vpop.f32.mrb[30].mxu0  ;;  %v5001_v24 = vadd.f32 %v4838_v26, %v4798_v5 }
 0x17c   :  { %v4866_v43 = vadd.f32 %v3446_v42, %v4798_v5  ;;  %v4868_v44 = vpop.f32.mrb[31].mxu0  ;;  %3543 = vmatmul.mubr.f32.gmra.mrb[74].mxu0 %v4863_v41  ;;  %3654 = vmatprep.mubr.f32.mxu1 %v4863_v41  ;;  %v1671_v42 = vld [vmem:[#allocation9 + $0x210] sm:$0xff]  ;;  %5417 = vst [vmem:[#allocation22_spill] sm:$0xff] %v4970_v8 }
 0x17d   :  { %3545 = vmatprep.mubr.f32.mxu0 %v5379_v59  ;;  %v5028_v26 = vadd.f32 %v4798_v5, %v4868_v44 }
 0x17e   :  { %5412 = vst [vmem:[#allocation18_spill] sm:$0xff] %v4866_v43  ;;  %v5377_v45 = vmax.f32 %v4866_v43, 0.0 }
 0x17f   :  { %v4874_v46 = vpop.f32.mrb[32].mxu0 }
 0x180   :  { %v4876_v47 = vpop.f32.mrb[33].mxu0  ;;  %3655 = vmatmul.mubr.f32.gmra.mrb[10].mxu1 %v5377_v45  ;;  %v4953_v45 = vadd.f32 %v4798_v5, %v4813_v16 }
 0x182   :  { %5415 = vst [vmem:[#allocation21_spill] sm:$0xff] %v4953_v45 }
 0x183   :  { %v4880_v48 = vpop.f32.mrb[34].mxu0 }
 0x184   :  { %v4882_v49 = vpop.f32.mrb[35].mxu0  ;;  %v5045_v44 = vadd.f32 %v4880_v48, %v4798_v5 }
 0x187   :  { %v4884_v50 = vpop.f32.mrb[36].mxu0 }
 0x188   :  { %v4886_v51 = vpop.f32.mrb[37].mxu0  ;;  %v5059_v48 = vadd.f32 %v4884_v50, %v4798_v5 }
 0x18b   :  { %v4888_v52 = vpop.f32.mrb[38].mxu0 }
 0x18c   :  { %v4890_v53 = vpop.f32.mrb[39].mxu0 }
 0x18f   :  { %v3461_v54 = vpop.f32.mrb[40].mxu0 }
 0x190   :  { %v444_v55 = vadd.f32 %v3461_v54, %v4798_v5  ;;  %v4893_v56 = vpop.f32.mrb[41].mxu0  ;;  %v1672_v54 = vld [vmem:[#allocation9 + $0x218] sm:$0xff] }
 0x192   :  { %v4895_v57 = vmax.f32 %v444_v55, 0.0 }
 0x193   :  { %v3464_v58 = vpop.f32.mrb[42].mxu0 }
 0x194   :  { %v454_v6 = vadd.f32 %v3464_v58, %v4798_v5  ;;  %v4898_v7 = vpop.f32.mrb[43].mxu0  ;;  %3546 = vmatmul.mubr.f32.gmra.mrb[76].mxu0 %v4895_v57  ;;  %3657 = vmatprep.mubr.f32.mxu1 %v4895_v57  ;;  %v4932_v58 = vadd.f32 %v4783_v63, %v4798_v5  ;;  %v4948_v63 = vadd.f32 %v4798_v5, %v4806_v12 }
 0x196   :  { %v4902_v10 = vmax.f32 %v454_v6, 0.0  ;;  %v4944_v6 = vadd.f32 %v4787_v1, %v4798_v5  ;;  %5414 = vst [vmem:[#allocation20_spill] sm:$0xff] %v4948_v63  ;;  %v5416_v1 = vmax.f32 %v4921_v35, 0.0 }
 0x197   :  { %v3467_v11 = vpop.f32.mrb[44].mxu0 }
 0x198   :  { %v464_v14 = vadd.f32 %v3467_v11, %v4798_v5  ;;  %v4905_v15 = vpop.f32.mrb[45].mxu0  ;;  %3548 = vmatprep.mubr.f32.mxu0 %v4902_v10  ;;  %3658 = vmatmul.mubr.f32.gmra.mrb[12].mxu1 %v4902_v10  ;;  %v4198_v11 = vpack.c.bf16 %v1672_v54, %v1671_v42  ;;  %v5385_v16 = vmax.f32 %v4944_v6, 0.0  ;;  %v5384_v54 = vmax.f32 %v4948_v63, 0.0 }
 0x19a   :  { %v4909_v18 = vmax.f32 %v464_v14, 0.0  ;;  %v1673_v14 = vld [vmem:[#allocation9 + $0x220] sm:$0xff] }
 0x19b   :  { %v3470_v30 = vpop.f32.mrb[46].mxu0 }
 0x19c   :  { %v4912_v31 = vadd.f32 %v3470_v30, %v4798_v5  ;;  %v4914_v34 = vpop.f32.mrb[47].mxu0  ;;  %3549 = vmatmul.mubr.f32.gmra.mrb[78].mxu0 %v4909_v18  ;;  %3660 = vmatprep.mubr.f32.mxu1 %v4909_v18  ;;  %v1674_v30 = vld [vmem:[#allocation9 + $0x228] sm:$0xff] }
 0x19d   :  { %3583 = vmatprep.mubr.f32.mxu0 %v5379_v59  ;;  %v4202_v42 = vpack.c.bf16 %v1674_v30, %v1673_v14  ;;  %v5387_v14 = vmax.f32 %v4953_v45, 0.0  ;;  %v4981_v30 = vadd.f32 %v4798_v5, %v4847_v32 }
 0x19e   :  { %5413 = vst [vmem:[#allocation19_spill] sm:$0xff] %v4912_v31  ;;  %v5376_v38 = vmax.f32 %v4912_v31, 0.0  ;;  %v1676_v31 = vld [vmem:[#allocation9 + $0x238] sm:$0xff] }
 0x19f   :  { %v4928_v55 = vpop.f32.mrb[48].mxu0  ;;  %5419 = vst [vmem:[#allocation23_spill] sm:$0xff] %v4981_v30 }
 0x1a0   :  { %3584 = vmatmul.mubr.f32.vlgmr.msra.gmra.mrb[64].mxu0 %v5379_v59  ;;  %3661 = vmatmul.mubr.f32.gmra.mrb[14].mxu1 %v5376_v38  ;;  %v4937_v61 = vpop.f32.mrb[49].mxu0  ;;  %v5382_v38 = vmax.f32 %v4926_v39, 0.0 }
 0x1a1   :  { %3586 = vmatprep.mubr.f32.mxu0 %v5379_v59  ;;  %3695 = vmatprep.mubr.f32.mxu1 %v5379_v59 }
 0x1a3   :  { %v4955_v21 = vpop.f32.mrb[50].mxu0 }
 0x1a4   :  { %3587 = vmatmul.mubr.f32.gmra.mrb[66].mxu0 %v5379_v59  ;;  %3696 = vmatmul.mubr.f32.vlgmr.msra.gmra.mrb[0].mxu1 %v5416_v1  ;;  %v4961_v12 = vpop.f32.mrb[51].mxu0  ;;  %v4974_v59 = vadd.f32 %v4828_v22, %v4798_v5  ;;  %v5418_v1 = vmax.f32 %v4932_v58, 0.0 }
 0x1a5   :  { %4197 = vmatpush3.bf16.msra.mxu1 %v4776_v60  ;;  %3589 = vmatprep.mubr.f32.mxu0 %v5382_v38  ;;  %v1675_v60 = vld [vmem:[#allocation9 + $0x230] sm:$0xff] }
 0x1a6   :  { %3698 = vmatprep.mubr.f32.mxu1 %v5418_v1  ;;  %4199 = vmatprep.subr.bf16.mxu1 %v4198_v11  ;;  %v4206_v32 = vpack.c.bf16 %v1676_v31, %v1675_v60  ;;  %v5390_v1 = vmax.f32 %v4970_v8, 0.0  ;;  %v5391_v43 = vmax.f32 %v4974_v59, 0.0  ;;  %v5011_v31 = vadd.f32 %v4798_v5, %v4859_v40 }
 0x1a7   :  { %v4983_v38 = vpop.f32.mrb[52].mxu0  ;;  %v5396_v40 = vmax.f32 %v5001_v24, 0.0 }
 0x1a8   :  { %3590 = vmatmul.mubr.f32.gmra.mrb[68].mxu0 %v5384_v54  ;;  %3699 = vmatmul.mubr.f32.gmra.mrb[2].mxu1 %v5385_v16  ;;  %v4993_v22 = vpop.f32.mrb[53].mxu0  ;;  %v5005_v54 = vadd.f32 %v4798_v5, %v4852_v36  ;;  %v5420_v16 = vmov 0.0   ;;  %5421 = vst [vmem:[#allocation24_spill] sm:$0xff] %v5011_v31 }
 0x1a9   :  { %4201 = vmatpush3.bf16.msra.mxu1 %v4198_v11  ;;  %3592 = vmatprep.mubr.f32.mxu0 %v5387_v14  ;;  %v1677_v11 = vld [vmem:[#allocation9 + $0x240] sm:$0xff]  ;;  %v5393_v14 = vmax.f32 %v4981_v30, 0.0  ;;  %v1680_v30 = vld [vmem:[#allocation9 + $0x258] sm:$0xff] }
 0x1aa   :  { %3701 = vmatprep.mubr.f32.mxu1 %v5420_v16  ;;  %4203 = vmatprep.subr.bf16.mxu1 %v4202_v42  ;;  %v4210_v45 = vpack.c.bf16 %v1678_v19, %v1677_v11  ;;  %v5395_v63 = vmax.f32 %v5005_v54, 0.0  ;;  %v5397_v19 = vmax.f32 %v5011_v31, 0.0  ;;  %v5039_v11 = vadd.f32 %v4798_v5, %v4893_v56 }
 0x1ab   :  { %v5013_v60 = vpop.f32.mrb[54].mxu0  ;;  %v5399_v56 = vmax.f32 %v5028_v26, 0.0  ;;  %v5404_v31 = vmax.f32 %v5059_v48, 0.0 }
 0x1ac   :  { %3593 = vmatmul.mubr.f32.gmra.mrb[70].mxu0 %v5390_v1  ;;  %3702 = vmatmul.mubr.f32.gmra.mrb[4].mxu1 %v5391_v43  ;;  %v5020_v36 = vpop.f32.mrb[55].mxu0  ;;  %v5032_v1 = vadd.f32 %v4874_v46, %v4798_v5  ;;  %v5422_v43 = vmax.f32 %v4987_v20, 0.0  ;;  %5423 = vst [vmem:[#allocation25_spill] sm:$0xff] %v5039_v11 }
 0x1ad   :  { %4205 = vmatpush3.bf16.msra.mxu1 %v4202_v42  ;;  %3595 = vmatprep.mubr.f32.mxu0 %v5393_v14  ;;  %v1679_v42 = vld [vmem:[#allocation9 + $0x250] sm:$0xff] }
 0x1ae   :  { %3704 = vmatprep.mubr.f32.mxu1 %v5422_v43  ;;  %4207 = vmatprep.subr.bf16.mxu1 %v4206_v32  ;;  %v4214_v46 = vpack.c.bf16 %v1680_v30, %v1679_v42  ;;  %v5400_v8 = vmax.f32 %v5032_v1, 0.0  ;;  %v5069_v30 = vadd.f32 %v4798_v5, %v4905_v15  ;;  %v5084_v15 = vadd.f32 %v4955_v21, %v4798_v5 }
 0x1af   :  { %v5041_v14 = vpop.f32.mrb[56].mxu0 }
 0x1b0   :  { %3596 = vmatmul.mubr.f32.gmra.mrb[72].mxu0 %v5395_v63  ;;  %3705 = vmatmul.mubr.f32.gmra.mrb[6].mxu1 %v5396_v40  ;;  %v5051_v43 = vpop.f32.mrb[57].mxu0  ;;  %v5063_v63 = vadd.f32 %v4798_v5, %v4898_v7  ;;  %v1682_v40 = vld [vmem:[#allocation9 + $0x268] sm:$0xff]  ;;  %v5406_v21 = vmax.f32 %v5069_v30, 0.0 }
 0x1b1   :  { %5424 = vst [vmem:[#allocation26_spill] sm:$0xff] %v5051_v43  ;;  %4209 = vmatpush3.bf16.msra.mxu1 %v4206_v32  ;;  %3598 = vmatprep.mubr.f32.mxu0 %v5397_v19  ;;  %v1681_v32 = vld [vmem:[#allocation9 + $0x260] sm:$0xff]  ;;  %v5401_v19 = vmax.f32 %v5039_v11, 0.0  ;;  %v1900_v11 = vld [vmem:[#allocation9 + $0x288] sm:$0xff] }
 0x1b2   :  { %5425 = vst [vmem:[#allocation27_spill] sm:$0xff] %v5063_v63  ;;  %3707 = vmatprep.mubr.f32.mxu1 %v5420_v16  ;;  %4211 = vmatprep.subr.bf16.mxu1 %v4210_v45  ;;  %v4218_v43 = vpack.c.bf16 %v1682_v40, %v1681_v32  ;;  %v5403_v50 = vmax.f32 %v5063_v63, 0.0  ;;  %v1684_v40 = vld [vmem:[#allocation9 + $0x278] sm:$0xff] }
 0x1b3   :  { %v5071_v42 = vpop.f32.mrb[58].mxu0 }
 0x1b4   :  { %3599 = vmatmul.mubr.f32.gmra.mrb[74].mxu0 %v5399_v56  ;;  %3708 = vmatmul.mubr.f32.gmra.mrb[8].mxu1 %v5400_v8  ;;  %v5078_v7 = vpop.f32.mrb[59].mxu0  ;;  %v5090_v56 = vadd.f32 %v4798_v5, %v4914_v34  ;;  %v5094_v8 = vadd.f32 %v4928_v55, %v4798_v5  ;;  %v5107_v34 = vadd.f32 %v4983_v38, %v4798_v5 }
 0x1b5   :  { %5426 = vst [vmem:[#allocation28_spill] sm:$0xff] %v5078_v7  ;;  %4213 = vmatpush3.bf16.msra.mxu1 %v4210_v45  ;;  %3601 = vmatprep.mubr.f32.mxu0 %v5401_v19  ;;  %v5428_v45 = vmax.f32 %v5045_v44, 0.0  ;;  %v1683_v19 = vld [vmem:[#allocation9 + $0x270] sm:$0xff]  ;;  %v239_v38 = vadd.f32 %v4798_v5, %v4781_v62  ;;  %v249_v62 = vadd.f32 %v4798_v5, %v4785_v0 }
 0x1b6   :  { %5427 = vst [vmem:[#allocation29_spill] sm:$0xff] %v5090_v56  ;;  %4215 = vmatprep.subr.bf16.mxu1 %v4214_v46  ;;  %v5407_v7 = vmax.f32 %v5090_v56, 0.0  ;;  %v5410_v63 = vmax.f32 %v5094_v8, 0.0  ;;  %v5431_v56 = vmax.f32 %v5107_v34, 0.0 }
 0x1b7   :  { %3710 = vmatprep.mubr.f32.mxu1 %v5428_v45  ;;  %v5099_v32 = vpop.f32.mrb[60].mxu0  ;;  %v5409_v45 = vmax.f32 %v5084_v15, 0.0 }
 0x1b8   :  { %3602 = vmatmul.mubr.f32.gmra.mrb[76].mxu0 %v5403_v50  ;;  %3711 = vmatmul.mubr.f32.gmra.mrb[10].mxu1 %v5404_v31  ;;  %v5109_v55 = vpop.f32.mrb[61].mxu0  ;;  %v4222_v50 = vpack.c.bf16 %v1684_v40, %v1683_v19  ;;  %v1899_v31 = vld [vmem:[#allocation9 + $0x280] sm:$0xff]  ;;  %v557_v40 = vmax.f32 %v239_v38, 0.0  ;;  %v1904_v38 = vld [vmem:[#allocation9 + $0x2a8] sm:$0xff] }
 0x1b9   :  { %5429 = vst [vmem:[#allocation30_spill] sm:$0xff] %v5109_v55  ;;  %4217 = vmatpush3.bf16.msra.mxu1 %v4214_v46  ;;  %3604 = vmatprep.mubr.f32.mxu0 %v5406_v21  ;;  %v4226_v19 = vpack.c.bf16 %v1900_v11, %v1899_v31  ;;  %v259_v46 = vadd.f32 %v4798_v5, %v4789_v2  ;;  %v1903_v11 = vld [vmem:[#allocation9 + $0x2a0] sm:$0xff] }
 0x1ba   :  { %3713 = vmatprep.mubr.f32.mxu1 %v5420_v16  ;;  %4219 = vmatprep.subr.bf16.mxu1 %v4218_v43  ;;  %v319_v31 = vadd.f32 %v4798_v5, %v4830_v23 }
 0x1bb   :  { %v5119_v55 = vpop.f32.mrb[62].mxu0  ;;  %v561_v0 = vmax.f32 %v259_v46, 0.0  ;;  %v349_v46 = vadd.f32 %v4798_v5, %v4844_v29  ;;  %v419_v29 = vadd.f32 %v4798_v5, %v4886_v51 }
 0x1bc   :  { %5430 = vst [vmem:[#allocation31_spill] sm:$0xff] %v5119_v55  ;;  %3605 = vmatmul.mubr.f32.gmra.mrb[78].mxu0 %v5407_v7  ;;  %3714 = vmatmul.mubr.f32.gmra.mrb[12].mxu1 %v5410_v63  ;;  %v5126_v21 = vpop.f32.mrb[63].mxu0  ;;  %v1901_v55 = vld [vmem:[#allocation9 + $0x290] sm:$0xff]  ;;  %v1902_v7 = vld [vmem:[#allocation9 + $0x298] sm:$0xff] }
 0x1bd   :  { %4221 = vmatpush3.bf16.msra.mxu1 %v4218_v43  ;;  %3716 = vmatprep.mubr.f32.mxu1 %v5409_v45  ;;  %v559_v43 = vmax.f32 %v249_v62, 0.0  ;;  %v269_v45 = vadd.f32 %v4798_v5, %v4793_v4  ;;  %v4230_v63 = vpack.c.bf16 %v1902_v7, %v1901_v55  ;;  %v573_v62 = vmax.f32 %v319_v31, 0.0  ;;  %v1905_v7 = vld [vmem:[#allocation9 + $0x2b0] sm:$0xff]  ;;  %v1906_v55 = vld [vmem:[#allocation9 + $0x2b8] sm:$0xff] }
 0x1be   :  { %4223 = vmatprep.subr.bf16.mxu1 %v4222_v50  ;;  %v339_v4 = vadd.f32 %v4798_v5, %v4840_v27  ;;  %v579_v27 = vmax.f32 %v349_v46, 0.0  ;;  %v1913_v46 = vld [vmem:[#allocation9 + $0x2f0] sm:$0xff]  ;;  %4031 = vmatprep.mubr.msk.f32.mxu0 %vm4646_vm0, %v5420_v16 }
 0x1bf   :  { %v563_v2 = vmax.f32 %v269_v45, 0.0  ;;  %v4238_v45 = vpack.c.bf16 %v1906_v55, %v1905_v7  ;;  %v489_v7 = vadd.f32 %v4798_v5, %v4961_v12  ;;  %v2125_v12 = vld [vmem:[#allocation9 + $0x308] sm:$0xff] }
 0x1c0   :  { %3717 = vmatmul.mubr.f32.gmra.mrb[14].mxu1 %v5431_v56  ;;  %v329_v56 = vadd.f32 %v4798_v5, %v4836_v25  ;;  %v399_v25 = vadd.f32 %v4798_v5, %v4876_v47 }
 0x1c1   :  { %4225 = vmatpush3.bf16.msra.mxu1 %v4222_v50  ;;  %3751 = vmatprep.mubr.f32.mxu1 %v557_v40  ;;  %v4234_v50 = vpack.c.bf16 %v1904_v38, %v1903_v11  ;;  %v1907_v40 = vld [vmem:[#allocation9 + $0x2c0] sm:$0xff]  ;;  %v1909_v11 = vld [vmem:[#allocation9 + $0x2d0] sm:$0xff]  ;;  %v1910_v38 = vld [vmem:[#allocation9 + $0x2d8] sm:$0xff] }
 0x1c2   :  { %4227 = vmatprep.subr.bf16.mxu1 %v4226_v19  ;;  %v575_v23 = vmax.f32 %v329_v56, 0.0  ;;  %v589_v31 = vmax.f32 %v399_v25, 0.0  ;;  %v4246_v56 = vpack.c.bf16 %v1910_v38, %v1909_v11  ;;  %v2128_v11 = vld [vmem:[#allocation9 + $0x320] sm:$0xff]  ;;  %v2129_v38 = vld [vmem:[#allocation9 + $0x328] sm:$0xff] }
 0x1c4   :  { %3752 = vmatmul.mubr.f32.vlgmr.msra.gmra.mrb[0].mxu1 %v559_v43  ;;  %v1908_v43 = vld [vmem:[#allocation9 + $0x2c8] sm:$0xff] }
 0x1c5   :  { %4229 = vmatpush3.bf16.msra.mxu1 %v4226_v19  ;;  %3754 = vmatprep.mubr.f32.mxu1 %v561_v0  ;;  %v577_v19 = vmax.f32 %v339_v4, 0.0  ;;  %v4242_v0 = vpack.c.bf16 %v1908_v43, %v1907_v40  ;;  %v1912_v4 = vld [vmem:[#allocation9 + $0x2e8] sm:$0xff]  ;;  %v2124_v43 = vld [vmem:[#allocation9 + $0x300] sm:$0xff] }
 0x1c6   :  { %4231 = vmatprep.subr.bf16.mxu1 %v4230_v63 }
 0x1c8   :  { %3755 = vmatmul.mubr.f32.gmra.mrb[2].mxu1 %v563_v2  ;;  %v429_v2 = vadd.f32 %v4798_v5, %v4890_v53  ;;  %v499_v53 = vadd.f32 %v4798_v5, %v4993_v22  ;;  %v4258_v22 = vpack.c.bf16 %v2125_v12, %v2124_v43  ;;  %v2138_v43 = vld [vmem:[#allocation9 + $0x370] sm:$0xff]  ;;  %v514_v12 = vadd.f32 %v5013_v60, %v4798_v5 }
 0x1c9   :  { %4233 = vmatpush3.bf16.msra.mxu1 %v4230_v63  ;;  %3757 = vmatprep.mubr.f32.mxu1 %v573_v62  ;;  %v409_v63 = vadd.f32 %v4798_v5, %v4882_v49  ;;  %v479_v49 = vadd.f32 %v4798_v5, %v4937_v61  ;;  %v1911_v62 = vld [vmem:[#allocation9 + $0x2e0] sm:$0xff]  ;;  %v509_v61 = vadd.f32 %v4798_v5, %v5020_v36  ;;  %v5432_v36 = vmax.f32 %v4921_v35, 0.0  ;;  %v2131_v35 = vld [vmem:[#allocation9 + $0x338] sm:$0xff] }
 0x1ca   :  { %4235 = vmatprep.subr.bf16.mxu1 %v4234_v50  ;;  %v595_v51 = vmax.f32 %v429_v2, 0.0  ;;  %v4250_v55 = vpack.c.bf16 %v1912_v4, %v1911_v62  ;;  %v609_v40 = vmax.f32 %v499_v53, 0.0  ;;  %v5434_v2 = vmax.f32 %v4944_v6, 0.0  ;;  %v2132_v4 = vld [vmem:[#allocation9 + $0x340] sm:$0xff]  ;;  %v2134_v53 = vld [vmem:[#allocation9 + $0x350] sm:$0xff] }
 0x1cb   :  { %v591_v47 = vmax.f32 %v409_v63, 0.0  ;;  %v2126_v63 = vld [vmem:[#allocation9 + $0x310] sm:$0xff]  ;;  %v354_v62 = vadd.f32 %v4842_v28, %v4798_v5  ;;  %v5436_v6 = vmax.f32 %v4987_v20, 0.0  ;;  %v5438_v28 = vmax.f32 %v5032_v1, 0.0  ;;  %v2139_v1 = vld [vmem:[#allocation9 + $0x378] sm:$0xff] }
 0x1cc   :  { %3758 = vmatmul.mubr.f32.gmra.mrb[4].mxu1 %v575_v23  ;;  %v605_v23 = vmax.f32 %v479_v49, 0.0  ;;  %v2130_v49 = vld [vmem:[#allocation9 + $0x330] sm:$0xff] }
 0x1cd   :  { %4237 = vmatpush3.bf16.msra.mxu1 %v4234_v50  ;;  %3760 = vmatprep.mubr.f32.mxu1 %v577_v19  ;;  %v593_v50 = vmax.f32 %v419_v29, 0.0  ;;  %v607_v19 = vmax.f32 %v489_v7, 0.0  ;;  %v5437_v7 = vmax.f32 %v5001_v24, 0.0  ;;  %v5439_v24 = vmax.f32 %v5045_v44, 0.0 }
 0x1ce   :  { %4239 = vmatprep.subr.bf16.mxu1 %v4238_v45  ;;  %v4286_v44 = vpack.c.bf16 %v2139_v1, %v2138_v43  ;;  %v5447_v1 = vld [vmem:[#allocation21_spill] sm:$0xff] }
 0x1d0   :  { %3761 = vmatmul.mubr.f32.gmra.mrb[6].mxu1 %v579_v27  ;;  %v611_v27 = vmax.f32 %v509_v61, 0.0  ;;  %v2137_v61 = vld [vmem:[#allocation9 + $0x368] sm:$0xff] }
 0x1d1   :  { %4241 = vmatpush3.bf16.msra.mxu1 %v4238_v45  ;;  %3763 = vmatprep.mubr.f32.mxu1 %v589_v31  ;;  %v1914_v45 = vld [vmem:[#allocation9 + $0x2f8] sm:$0xff]  ;;  %v274_v31 = vadd.f32 %v4791_v3, %v4798_v5  ;;  %v5435_v3 = vmax.f32 %v4974_v59, 0.0 }
 0x1d2   :  { %4243 = vmatprep.subr.bf16.mxu1 %v4242_v0  ;;  %v4254_v25 = vpack.c.bf16 %v1914_v45, %v1913_v46  ;;  %v2135_v59 = vld [vmem:[#allocation9 + $0x358] sm:$0xff]  ;;  %v434_v46 = vadd.f32 %v4888_v52, %v4798_v5  ;;  %v2136_v45 = vld [vmem:[#allocation9 + $0x360] sm:$0xff]  ;;  %v5441_v52 = vmax.f32 %v5094_v8, 0.0 }
 0x1d3   :  { %v4278_v20 = vpack.c.bf16 %v2135_v59, %v2134_v53  ;;  %v2357_v8 = vld [vmem:[#allocation9 + $0x398] sm:$0xff]  ;;  %v2581_v59 = vld [vmem:[#allocation9 + $0x400] sm:$0xff] }
 0x1d4   :  { %3764 = vmatmul.mubr.f32.gmra.mrb[8].mxu1 %v591_v47  ;;  %v5433_v47 = vmax.f32 %v4932_v58, 0.0  ;;  %v4270_v58 = vpack.c.bf16 %v2131_v35, %v2130_v49  ;;  %v2364_v49 = vld [vmem:[#allocation9 + $0x3d0] sm:$0xff]  ;;  %v2365_v35 = vld [vmem:[#allocation9 + $0x3d8] sm:$0xff] }
 0x1d5   :  { %4245 = vmatpush3.bf16.msra.mxu1 %v4242_v0  ;;  %3766 = vmatprep.mubr.f32.mxu1 %v593_v50  ;;  %v2127_v0 = vld [vmem:[#allocation9 + $0x318] sm:$0xff]  ;;  %v4266_v50 = vpack.c.bf16 %v2129_v38, %v2128_v11  ;;  %v2359_v11 = vld [vmem:[#allocation9 + $0x3a8] sm:$0xff] }
 0x1d6   :  { %4247 = vmatprep.subr.bf16.mxu1 %v4246_v56  ;;  %v4262_v29 = vpack.c.bf16 %v2127_v0, %v2126_v63  ;;  %v5443_v63 = vmax.f32 %v5107_v34, 0.0  ;;  %v612_v0 = vmax.f32 %v514_v12, 0.0  ;;  %v2360_v34 = vld [vmem:[#allocation9 + $0x3b0] sm:$0xff]  ;;  %v2361_v38 = vld [vmem:[#allocation9 + $0x3b8] sm:$0xff] }
 0x1d8   :  { %3767 = vmatmul.mubr.f32.gmra.mrb[10].mxu1 %v595_v51  ;;  %v2133_v51 = vld [vmem:[#allocation9 + $0x348] sm:$0xff] }
 0x1d9   :  { %4249 = vmatpush3.bf16.msra.mxu1 %v4246_v56  ;;  %3769 = vmatprep.mubr.f32.mxu1 %v605_v23  ;;  %v564_v56 = vmax.f32 %v274_v31, 0.0  ;;  %v4274_v23 = vpack.c.bf16 %v2133_v51, %v2132_v4  ;;  %v2356_v31 = vld [vmem:[#allocation9 + $0x390] sm:$0xff]  ;;  %v5207_v4 = vadd.f32 %v5071_v42, %v4798_v5  ;;  %v5211_v51 = vadd.f32 %v5041_v14, %v4798_v5 }
 0x1da   :  { %4251 = vmatprep.subr.bf16.mxu1 %v4250_v55  ;;  %v4294_v60 = vpack.c.bf16 %v2357_v8, %v2356_v31  ;;  %v2590_v31 = vld [vmem:[#allocation9 + $0x448] sm:$0xff]  ;;  %v5453_v8 = vmax.f32 %v5005_v54, 0.0 }
 0x1db   :  { %v616_v53 = vmax.f32 %v5207_v4, 0.0  ;;  %v614_v42 = vmax.f32 %v5211_v51, 0.0 }
 0x1dc   :  { %3770 = vmatmul.mubr.f32.gmra.mrb[12].mxu1 %v607_v19  ;;  %v5440_v19 = vmax.f32 %v5059_v48, 0.0  ;;  %v5442_v48 = vmax.f32 %v5084_v15, 0.0 }
 0x1dd   :  { %4253 = vmatpush3.bf16.msra.mxu1 %v4250_v55  ;;  %3772 = vmatprep.mubr.f32.mxu1 %v609_v40  ;;  %v580_v55 = vmax.f32 %v354_v62, 0.0  ;;  %v4282_v40 = vpack.c.bf16 %v2137_v61, %v2136_v45  ;;  %v2366_v62 = vld [vmem:[#allocation9 + $0x3e0] sm:$0xff]  ;;  %v2584_v45 = vld [vmem:[#allocation9 + $0x418] sm:$0xff]  ;;  %v5444_v61 = vmax.f32 %v4926_v39, 0.0 }
 0x1de   :  { %4255 = vmatprep.subr.bf16.mxu1 %v4254_v25  ;;  %v5451_v39 = vld [vmem:[#allocation23_spill] sm:$0xff] }
 0x1e0   :  { %3773 = vmatmul.mubr.f32.gmra.mrb[14].mxu1 %v611_v27  ;;  %v2354_v27 = vld [vmem:[#allocation9 + $0x380] sm:$0xff] }
 0x1e1   :  { %4257 = vmatpush3.bf16.msra.mxu1 %v4254_v25  ;;  %3807 = vmatprep.mubr.f32.mxu1 %v5432_v36  ;;  %v596_v25 = vmax.f32 %v434_v46, 0.0 }
 0x1e2   :  { %4259 = vmatprep.subr.bf16.mxu1 %v4258_v22 }
 0x1e4   :  { %3808 = vmatmul.mubr.f32.vlgmr.msra.gmra.mrb[0].mxu1 %v5433_v47  ;;  %v4302_v47 = vpack.c.bf16 %v2361_v38, %v2360_v34  ;;  %v2592_v34 = vld [vmem:[#allocation9 + $0x458] sm:$0xff]  ;;  %v5456_v38 = vmax.f32 %v5028_v26, 0.0  ;;  %v5463_v26 = vld [vmem:[#allocation28_spill] sm:$0xff] }
 0x1e5   :  { %4261 = vmatpush3.bf16.msra.mxu1 %v4258_v22  ;;  %3810 = vmatprep.mubr.f32.mxu1 %v5434_v2  ;;  %v2355_v22 = vld [vmem:[#allocation9 + $0x388] sm:$0xff]  ;;  %v2362_v2 = vld [vmem:[#allocation9 + $0x3c0] sm:$0xff] }
 0x1e6   :  { %4263 = vmatprep.subr.bf16.mxu1 %v4262_v29  ;;  %v4290_v36 = vpack.c.bf16 %v2355_v22, %v2354_v27  ;;  %v2588_v27 = vld [vmem:[#allocation9 + $0x438] sm:$0xff]  ;;  %v5449_v22 = vld [vmem:[#allocation22_spill] sm:$0xff] }
 0x1e8   :  { %3811 = vmatmul.mubr.f32.gmra.mrb[2].mxu1 %v564_v56  ;;  %v2363_v56 = vld [vmem:[#allocation9 + $0x3c8] sm:$0xff] }
 0x1e9   :  { %4265 = vmatpush3.bf16.msra.mxu1 %v4262_v29  ;;  %3813 = vmatprep.mubr.f32.mxu1 %v5435_v3  ;;  %v2358_v29 = vld [vmem:[#allocation9 + $0x3a0] sm:$0xff]  ;;  %v4310_v3 = vpack.c.bf16 %v2365_v35, %v2364_v49  ;;  %v2594_v35 = vld [vmem:[#allocation9 + $0x468] sm:$0xff] }
 0x1ea   :  { %4267 = vmatprep.subr.bf16.mxu1 %v4266_v50  ;;  %v4298_v15 = vpack.c.bf16 %v2359_v11, %v2358_v29  ;;  %v2593_v49 = vld [vmem:[#allocation9 + $0x460] sm:$0xff] }
 0x1ec   :  { %3814 = vmatmul.mubr.f32.gmra.mrb[4].mxu1 %v5436_v6 }
 0x1ed   :  { %4269 = vmatpush3.bf16.msra.mxu1 %v4266_v50  ;;  %3816 = vmatprep.mubr.f32.mxu1 %v5437_v7  ;;  %v4306_v50 = vpack.c.bf16 %v2363_v56, %v2362_v2  ;;  %v2368_v7 = vld [vmem:[#allocation9 + $0x3f0] sm:$0xff] }
 0x1ee   :  { %4271 = vmatprep.subr.bf16.mxu1 %v4270_v58 }
 0x1f0   :  { %3817 = vmatmul.mubr.f32.gmra.mrb[6].mxu1 %v580_v55  ;;  %v2369_v55 = vld [vmem:[#allocation9 + $0x3f8] sm:$0xff] }
 0x1f1   :  { %4273 = vmatpush3.bf16.msra.mxu1 %v4270_v58  ;;  %3819 = vmatprep.mubr.f32.mxu1 %v5438_v28  ;;  %v2367_v58 = vld [vmem:[#allocation9 + $0x3e8] sm:$0xff]  ;;  %v4318_v14 = vpack.c.bf16 %v2369_v55, %v2368_v7  ;;  %v4346_v7 = vpack.c.bf16 %v2594_v35, %v2593_v49  ;;  %v2857_v35 = vld [vmem:[#allocation10 + $0x60] sm:$0xff] }
 0x1f2   :  { %4275 = vmatprep.subr.bf16.mxu1 %v4274_v23  ;;  %v4314_v6 = vpack.c.bf16 %v2367_v58, %v2366_v62  ;;  %v2582_v28 = vld [vmem:[#allocation9 + $0x408] sm:$0xff]  ;;  %v5462_v58 = vmax.f32 %v5069_v30, 0.0 }
 0x1f4   :  { %3820 = vmatmul.mubr.f32.gmra.mrb[8].mxu1 %v5439_v24 }
 0x1f5   :  { %4277 = vmatpush3.bf16.msra.mxu1 %v4274_v23  ;;  %3822 = vmatprep.mubr.f32.mxu1 %v5440_v19  ;;  %v5216_v23 = vadd.f32 %v5099_v32, %v4798_v5  ;;  %v4322_v32 = vpack.c.bf16 %v2582_v28, %v2581_v59  ;;  %v2585_v19 = vld [vmem:[#allocation9 + $0x420] sm:$0xff]  ;;  %v2595_v28 = vld [vmem:[#allocation9 + $0x470] sm:$0xff] }
 0x1f6   :  { %4279 = vmatprep.subr.bf16.mxu1 %v4278_v20 }
 0x1f7   :  { %v618_v46 = vmax.f32 %v5216_v23, 0.0 }
 0x1f8   :  { %3823 = vmatmul.mubr.f32.gmra.mrb[10].mxu1 %v596_v25  ;;  %v2586_v25 = vld [vmem:[#allocation9 + $0x428] sm:$0xff] }
 0x1f9   :  { %4281 = vmatpush3.bf16.msra.mxu1 %v4278_v20  ;;  %3825 = vmatprep.mubr.f32.mxu1 %v5441_v52  ;;  %v2583_v20 = vld [vmem:[#allocation9 + $0x410] sm:$0xff]  ;;  %v5448_v52 = vmax.f32 %v5447_v1, 0.0  ;;  %v4330_v12 = vpack.c.bf16 %v2586_v25, %v2585_v19 }
 0x1fa   :  { %4283 = vmatprep.subr.bf16.mxu1 %v4282_v40  ;;  %v4326_v24 = vpack.c.bf16 %v2584_v45, %v2583_v20  ;;  %v5465_v20 = vld [vmem:[#allocation29_spill] sm:$0xff] }
 0x1fb   :  { %v5466_v45 = vmax.f32 %v5465_v20, 0.0 }
 0x1fc   :  { %3826 = vmatmul.mubr.f32.gmra.mrb[12].mxu1 %v5442_v48  ;;  %v5450_v48 = vmax.f32 %v5449_v22, 0.0 }
 0x1fd   :  { %4285 = vmatpush3.bf16.msra.mxu1 %v4282_v40  ;;  %3828 = vmatprep.mubr.f32.mxu1 %v5443_v63  ;;  %v5445_v40 = vld [vmem:[#allocation20_spill] sm:$0xff]  ;;  %v5452_v63 = vmax.f32 %v5451_v39, 0.0  ;;  %v2846_v39 = vld [vmem:[#allocation10 + $0x8] sm:$0xff] }
 0x1fe   :  { %4287 = vmatprep.subr.bf16.mxu1 %v4286_v44  ;;  %v5446_v43 = vmax.f32 %v5445_v40, 0.0 }
 0x200   :  { %3829 = vmatmul.mubr.f32.gmra.mrb[14].mxu1 %v612_v0 }
 0x201   :  { %4289 = vmatpush3.bf16.msra.mxu1 %v4286_v44  ;;  %3863 = vmatprep.mubr.f32.mxu1 %v5420_v16  ;;  %v2587_v44 = vld [vmem:[#allocation9 + $0x430] sm:$0xff] }
 0x202   :  { %4291 = vmatprep.subr.bf16.mxu1 %v4290_v36  ;;  %v4334_v0 = vpack.c.bf16 %v2588_v27, %v2587_v44 }
 0x204   :  { %3864 = vmatmul.mubr.f32.vlgmr.msra.gmra.mrb[0].mxu1 %v4803_v9 }
 0x205   :  { %4293 = vmatpush3.bf16.msra.mxu1 %v4290_v36  ;;  %3866 = vmatprep.mubr.f32.mxu1 %v4810_v13  ;;  %v2589_v36 = vld [vmem:[#allocation9 + $0x440] sm:$0xff] }
 0x206   :  { %4295 = vmatprep.subr.bf16.mxu1 %v4294_v60  ;;  %v4338_v11 = vpack.c.bf16 %v2590_v31, %v2589_v36  ;;  %v2847_v36 = vld [vmem:[#allocation10 + $0x10] sm:$0xff]  ;;  %v2848_v31 = vld [vmem:[#allocation10 + $0x18] sm:$0xff] }
 0x208   :  { %3867 = vmatmul.mubr.f32.gmra.mrb[2].mxu1 %v4817_v17 }
 0x209   :  { %4297 = vmatpush3.bf16.msra.mxu1 %v4294_v60  ;;  %3869 = vmatprep.mubr.f32.mxu1 %v5420_v16  ;;  %v5454_v60 = vld [vmem:[#allocation24_spill] sm:$0xff] }
 0x20a   :  { %4299 = vmatprep.subr.bf16.mxu1 %v4298_v15  ;;  %v5455_v29 = vmax.f32 %v5454_v60, 0.0  ;;  %v2849_v60 = vld [vmem:[#allocation10 + $0x20] sm:$0xff] }
 0x20c   :  { %3870 = vmatmul.mubr.f32.gmra.mrb[4].mxu1 %v4849_v33 }
 0x20d   :  { %4301 = vmatpush3.bf16.msra.mxu1 %v4298_v15  ;;  %3872 = vmatprep.mubr.f32.mxu1 %v4856_v37  ;;  %v2591_v15 = vld [vmem:[#allocation9 + $0x450] sm:$0xff] }
 0x20e   :  { %4303 = vmatprep.subr.bf16.mxu1 %v4302_v47  ;;  %v4342_v56 = vpack.c.bf16 %v2592_v34, %v2591_v15  ;;  %v2851_v15 = vld [vmem:[#allocation10 + $0x30] sm:$0xff]  ;;  %v2852_v34 = vld [vmem:[#allocation10 + $0x38] sm:$0xff] }
 0x210   :  { %3873 = vmatmul.mubr.f32.gmra.mrb[6].mxu1 %v4863_v41 }
 0x211   :  { %4305 = vmatpush3.bf16.msra.mxu1 %v4302_v47  ;;  %3875 = vmatprep.mubr.f32.mxu1 %v5420_v16  ;;  %v5457_v47 = vld [vmem:[#allocation25_spill] sm:$0xff] }
 0x212   :  { %4307 = vmatprep.subr.bf16.mxu1 %v4306_v50  ;;  %v5458_v2 = vmax.f32 %v5457_v47, 0.0  ;;  %v2853_v47 = vld [vmem:[#allocation10 + $0x40] sm:$0xff] }
 0x214   :  { %3876 = vmatmul.mubr.f32.gmra.mrb[8].mxu1 %v4895_v57 }
 0x215   :  { %4309 = vmatpush3.bf16.msra.mxu1 %v4306_v50  ;;  %3878 = vmatprep.mubr.f32.mxu1 %v4902_v10  ;;  %v5459_v50 = vld [vmem:[#allocation26_spill] sm:$0xff] }
 0x216   :  { %4311 = vmatprep.subr.bf16.mxu1 %v4310_v3  ;;  %v519_v54 = vadd.f32 %v4798_v5, %v5459_v50  ;;  %v2855_v50 = vld [vmem:[#allocation10 + $0x50] sm:$0xff] }
 0x218   :  { %3879 = vmatmul.mubr.f32.gmra.mrb[10].mxu1 %v4909_v18  ;;  %v613_v55 = vmax.f32 %v519_v54, 0.0  ;;  %v2856_v54 = vld [vmem:[#allocation10 + $0x58] sm:$0xff] }
 0x219   :  { %4313 = vmatpush3.bf16.msra.mxu1 %v4310_v3  ;;  %3881 = vmatprep.mubr.f32.mxu1 %v5420_v16  ;;  %v5460_v3 = vld [vmem:[#allocation27_spill] sm:$0xff]  ;;  %v4370_v49 = vpack.c.bf16 %v2856_v54, %v2855_v50 }
 0x21a   :  { %4315 = vmatprep.subr.bf16.mxu1 %v4314_v6  ;;  %v5461_v62 = vmax.f32 %v5460_v3, 0.0  ;;  %v2858_v3 = vld [vmem:[#allocation10 + $0x68] sm:$0xff] }
 0x21c   :  { %3882 = vmatmul.mubr.f32.gmra.mrb[12].mxu1 %v614_v42 }
 0x21d   :  { %4317 = vmatpush3.bf16.msra.mxu1 %v4314_v6  ;;  %3884 = vmatprep.mubr.f32.mxu1 %v616_v53  ;;  %v529_v6 = vadd.f32 %v4798_v5, %v5463_v26  ;;  %v2860_v26 = vld [vmem:[#allocation10 + $0x78] sm:$0xff] }
 0x21e   :  { %4319 = vmatprep.subr.bf16.mxu1 %v4318_v14 }
 0x21f   :  { %v615_v30 = vmax.f32 %v529_v6, 0.0 }
 0x220   :  { %3885 = vmatmul.mubr.f32.gmra.mrb[14].mxu1 %v618_v46 }
 0x221   :  { %4321 = vmatpush3.bf16.msra.mxu1 %v4318_v14  ;;  %3919 = vmatprep.mubr.f32.mxu1 %v5444_v61  ;;  %v5464_v14 = vld [vmem:[#allocation30_spill] sm:$0xff]  ;;  %v549_v61 = vadd.f32 %v4798_v5, %v5126_v21  ;;  %v5467_v21 = vld [vmem:[#allocation17_spill] sm:$0xff] }
 0x222   :  { %4323 = vmatprep.subr.bf16.mxu1 %v4322_v32  ;;  %v539_v59 = vadd.f32 %v4798_v5, %v5464_v14  ;;  %v5468_v40 = vmax.f32 %v5467_v21, 0.0 }
 0x223   :  { %v619_v25 = vmax.f32 %v549_v61, 0.0 }
 0x224   :  { %3920 = vmatmul.mubr.f32.vlgmr.msra.gmra.mrb[0].mxu1 %v5446_v43  ;;  %v617_v19 = vmax.f32 %v539_v59, 0.0  ;;  %v5469_v43 = vld [vmem:[#allocation18_spill] sm:$0xff] }
 0x225   :  { %4325 = vmatpush3.bf16.msra.mxu1 %v4322_v32  ;;  %3922 = vmatprep.mubr.f32.mxu1 %v5448_v52  ;;  %v2596_v32 = vld [vmem:[#allocation9 + $0x478] sm:$0xff]  ;;  %v5470_v1 = vmax.f32 %v5469_v43, 0.0 }
 0x226   :  { %4327 = vmatprep.subr.bf16.mxu1 %v4326_v24 }
 0x228   :  { %3923 = vmatmul.mubr.f32.gmra.mrb[2].mxu1 %v5450_v48  ;;  %v2845_v48 = vld [vmem:[#allocation10] sm:$0xff] }
 0x229   :  { %4329 = vmatpush3.bf16.msra.mxu1 %v4326_v24  ;;  %3925 = vmatprep.mubr.f32.mxu1 %v5452_v63  ;;  %v4350_v24 = vpack.c.bf16 %v2596_v32, %v2595_v28  ;;  %v4355_v63 = vpack.c.bf16 %v2846_v39, %v2845_v48 }
 0x22a   :  { %4331 = vmatprep.subr.bf16.mxu1 %v4330_v12 }
 0x22c   :  { %3926 = vmatmul.mubr.f32.gmra.mrb[4].mxu1 %v5453_v8  ;;  %v4358_v8 = vpack.c.bf16 %v2848_v31, %v2847_v36 }
 0x22d   :  { %4333 = vmatpush3.bf16.msra.mxu1 %v4330_v12  ;;  %3928 = vmatprep.mubr.f32.mxu1 %v5455_v29  ;;  %v2850_v29 = vld [vmem:[#allocation10 + $0x28] sm:$0xff] }
 0x22e   :  { %4335 = vmatprep.subr.bf16.mxu1 %v4334_v0 }
 0x230   :  { %3929 = vmatmul.mubr.f32.gmra.mrb[6].mxu1 %v5456_v38  ;;  %v4364_v38 = vpack.c.bf16 %v2852_v34, %v2851_v15 }
 0x231   :  { %4337 = vmatpush3.bf16.msra.mxu1 %v4334_v0  ;;  %3931 = vmatprep.mubr.f32.mxu1 %v5458_v2  ;;  %v4645_v0 = vmov 0.0|0.0   ;;  %v2854_v2 = vld [vmem:[#allocation10 + $0x48] sm:$0xff] }
 0x232   :  { %4339 = vmatprep.subr.bf16.mxu1 %v4338_v11  ;;  %4354 = vmatprep.subr.bf16.mxu0 %v4645_v0 }
 0x233   :  { %4356 = vmatpush3.bf16.msra.mxu0 %v4355_v63 }
 0x234   :  { %3932 = vmatmul.mubr.f32.gmra.mrb[8].mxu1 %v5461_v62  ;;  %4357 = vmatprep.subr.bf16.mxu0 %v4645_v0  ;;  %v4373_v62 = vpack.c.bf16 %v2858_v3, %v2857_v35 }
 0x235   :  { %4341 = vmatpush3.bf16.msra.mxu1 %v4338_v11  ;;  %3934 = vmatprep.mubr.f32.mxu1 %v5462_v58  ;;  %v4361_v11 = vpack.c.bf16 %v2850_v29, %v2849_v60  ;;  %v2859_v58 = vld [vmem:[#allocation10 + $0x70] sm:$0xff] }
 0x236   :  { %4343 = vmatprep.subr.bf16.mxu1 %v4342_v56  ;;  %v4376_v6 = vpack.c.bf16 %v2860_v26, %v2859_v58 }
 0x237   :  { %4359 = vmatpush3.bf16.msra.mxu0 %v4358_v8 }
 0x238   :  { %3935 = vmatmul.mubr.f32.gmra.mrb[10].mxu1 %v5466_v45  ;;  %4360 = vmatprep.subr.bf16.mxu0 %v4645_v0 }
 0x239   :  { %4345 = vmatpush3.bf16.msra.mxu1 %v4342_v56  ;;  %3937 = vmatprep.mubr.f32.mxu1 %v613_v55  ;;  %v4367_v56 = vpack.c.bf16 %v2854_v2, %v2853_v47  ;;  %v5315_v55 = vld [vmem:[%s5371_s4] ss:$0 sm:$0xff] }
 0x23a   :  { %4347 = vmatprep.subr.bf16.mxu1 %v4346_v7 }
 0x23b   :  { %4362 = vmatpush3.bf16.msra.mxu0 %v4361_v11 }
 0x23c   :  { %3938 = vmatmul.mubr.f32.gmra.mrb[12].mxu1 %v615_v30  ;;  %4363 = vmatprep.subr.bf16.mxu0 %v4645_v0 }
 0x23d   :  { %4349 = vmatpush3.bf16.msra.mxu1 %v4346_v7  ;;  %3940 = vmatprep.mubr.f32.mxu1 %v617_v19 }
 0x23e   :  { %4351 = vmatprep.subr.bf16.mxu1 %v4350_v24 }
 0x23f   :  { %4365 = vmatpush3.bf16.msra.mxu0 %v4364_v38 }
 0x240   :  { %3941 = vmatmul.mubr.f32.gmra.mrb[14].mxu1 %v619_v25  ;;  %4366 = vmatprep.subr.bf16.mxu0 %v4645_v0 }
 0x241   :  { %4353 = vmatpush3.bf16.msra.mxu1 %v4350_v24  ;;  %3975 = vmatprep.mubr.f32.mxu1 %v4803_v9  ;;  %v5471_v9 = vld [vmem:[#allocation19_spill] sm:$0xff] }
 0x243   :  { %4368 = vmatpush3.bf16.msra.mxu0 %v4367_v56 }
 0x244   :  { %3976 = vmatmul.mubr.f32.vlgmr.msra.gmra.mrb[0].mxu1 %v4810_v13  ;;  %v5472_v13 = vmax.f32 %v5471_v9, 0.0  ;;  %4369 = vmatprep.subr.bf16.mxu0 %v4645_v0 }
 0x245   :  { %3978 = vmatprep.mubr.f32.mxu1 %v4817_v17  ;;  %v5473_v17 = vld [vmem:[#allocation31_spill] sm:$0xff] }
 0x247   :  { %4371 = vmatpush3.bf16.msra.mxu0 %v4370_v49 }
 0x248   :  { %3979 = vmatmul.mubr.f32.gmra.mrb[2].mxu1 %v5468_v40  ;;  %4372 = vmatprep.subr.bf16.mxu0 %v4645_v0 }
 0x249   :  { %3981 = vmatprep.mubr.f32.mxu1 %v4849_v33  ;;  %v554_v33 = vadd.f32 %v5473_v17, %v4798_v5 }
 0x24b   :  { %4374 = vmatpush3.bf16.msra.mxu0 %v4373_v62 }
 0x24c   :  { %3982 = vmatmul.mubr.f32.gmra.mrb[4].mxu1 %v4856_v37  ;;  %v620_v37 = vmax.f32 %v554_v33, 0.0  ;;  %4375 = vmatprep.subr.bf16.mxu0 %v4645_v0 }
 0x24d   :  { %3984 = vmatprep.mubr.f32.mxu1 %v4863_v41 }
 0x24f   :  { %4377 = vmatpush3.bf16.msra.mxu0 %v4376_v6 }
 0x250   :  { %3985 = vmatmul.mubr.f32.gmra.mrb[6].mxu1 %v5470_v1 }
 0x251   :  { %3987 = vmatprep.mubr.f32.mxu1 %v4895_v57 }
 0x254   :  { %3988 = vmatmul.mubr.f32.gmra.mrb[8].mxu1 %v4902_v10 }
 0x255   :  { %3990 = vmatprep.mubr.f32.mxu1 %v4909_v18 }
 0x258   :  { %3991 = vmatmul.mubr.f32.gmra.mrb[10].mxu1 %v5472_v13 }
 0x259   :  { %3993 = vmatprep.mubr.f32.mxu1 %v614_v42 }
 0x25c   :  { %3994 = vmatmul.mubr.f32.gmra.mrb[12].mxu1 %v616_v53 }
 0x25d   :  { %3996 = vmatprep.mubr.f32.mxu1 %v618_v46 }
 0x260   :  { %3997 = vmatmul.mubr.f32.gmra.mrb[14].mxu1 %v620_v37 }
 0x273   :  { %v3585_v41 = vpop.f32.mrb[64].mxu0 }
 0x274   :  { %v1051_v57 = vpop.f32.mrb[65].mxu0 }
 0x277   :  { %v5283_v10 = vpop.f32.mrb[66].mxu0 }
 0x278   :  { %v5285_v18 = vpop.f32.mrb[67].mxu0 }
 0x27b   :  { %v5287_v52 = vpop.f32.mrb[68].mxu0 }
 0x27c   :  { %v5289_v51 = vpop.f32.mrb[69].mxu0 }
 0x27f   :  { %v5291_v42 = vpop.f32.mrb[70].mxu0 }
 0x280   :  { %v5293_v5 = vpop.f32.mrb[71].mxu0 }
 0x283   :  { %v5295_v4 = vpop.f32.mrb[72].mxu0 }
 0x284   :  { %v5297_v23 = vpop.f32.mrb[73].mxu0 }
 0x287   :  { %v5299_v53 = vpop.f32.mrb[74].mxu0 }
 0x288   :  { %v5301_v46 = vpop.f32.mrb[75].mxu0 }
 0x28b   :  { %v5303_v12 = vpop.f32.mrb[76].mxu0 }
 0x28c   :  { %v5305_v44 = vpop.f32.mrb[77].mxu0 }
 0x28f   :  { %v5307_v27 = vpop.f32.mrb[78].mxu0 }
 0x290   :  { %v5309_v22 = vpop.f32.mrb[79].mxu0 }
 0x317   :  { %v3977_v7 = vpop.f32.mrb[0].mxu1 }
 0x318   :  { %v4378_v14 = vadd.f32 %v3977_v7, %v3585_v41  ;;  %v2663_v59 = vpop.f32.mrb[1].mxu1 }
 0x319   :  { %v4379_v28 = vadd.f32 %v2663_v59, %v1051_v57 }
 0x31a   :  { %v2798_v32 = vadd.f32 %v4378_v14, %v5315_v55 }
 0x31b   :  { %v2797_v20 = vadd.f32 %v4379_v28, %v5315_v55  ;;  %v3980_v45 = vpop.f32.mrb[2].mxu1 }
 0x31c   :  { %v2814_v61 = vmax.f32 %v2798_v32, 0.0  ;;  %v4380_v30 = vadd.f32 %v3980_v45, %v5283_v10  ;;  %v2673_v24 = vpop.f32.mrb[3].mxu1 }
 0x31d   :  { %v2813_v19 = vmax.f32 %v2797_v20, 0.0  ;;  %v4381_v16 = vadd.f32 %v2673_v24, %v5285_v18 }
 0x31e   :  { %v2800_v21 = vadd.f32 %v4380_v30, %v5315_v55 }
 0x31f   :  { %v2829_v25 = vadd.f32 %v2814_v61, %v2813_v19  ;;  %v2799_v40 = vadd.f32 %v4381_v16, %v5315_v55  ;;  %v3983_v43 = vpop.f32.mrb[4].mxu1 }
 0x320   :  { %v4382_v1 = vadd.f32 %v3983_v43, %v5287_v52  ;;  %v2683_v9 = vpop.f32.mrb[5].mxu1  ;;  %v2816_v33 = vmax.f32 %v2800_v21, 0.0 }
 0x321   :  { %v2815_v13 = vmax.f32 %v2799_v40, 0.0  ;;  %v4383_v17 = vadd.f32 %v2683_v9, %v5289_v51 }
 0x322   :  { %v2802_v41 = vadd.f32 %v4382_v1, %v5315_v55 }
 0x323   :  { %v2830_v37 = vadd.f32 %v2829_v25, %v2815_v13  ;;  %v2801_v57 = vadd.f32 %v4383_v17, %v5315_v55  ;;  %v3986_v10 = vpop.f32.mrb[6].mxu1  ;;  %v2938_v17 = vlaneseq }
 0x324   :  { %v4384_v18 = vadd.f32 %v3986_v10, %v5291_v42  ;;  %v2693_v48 = vpop.f32.mrb[7].mxu1  ;;  %v2818_v36 = vmax.f32 %v2802_v41, 0.0 }
 0x325   :  { %v2817_v39 = vmax.f32 %v2801_v57, 0.0  ;;  %v2831_v63 = vadd.f32 %v2830_v37, %v2816_v33  ;;  %v4385_v0 = vadd.f32 %v2693_v48, %v5293_v5  ;;  %v2981_v33 = vld [vmem:[%s5373_s6] ss:$0 sm:$0xff] }
 0x326   :  { %v2804_v31 = vadd.f32 %v4384_v18, %v5315_v55 }
 0x327   :  { %v2832_v52 = vadd.f32 %v2831_v63, %v2817_v39  ;;  %v2803_v51 = vadd.f32 %v4385_v0, %v5315_v55  ;;  %v3989_v8 = vpop.f32.mrb[8].mxu1 }
 0x328   :  { %v4386_v60 = vadd.f32 %v3989_v8, %v5295_v4  ;;  %v2703_v29 = vpop.f32.mrb[9].mxu1  ;;  %v2820_v42 = vmax.f32 %v2804_v31, 0.0 }
 0x329   :  { %v2819_v11 = vmax.f32 %v2803_v51, 0.0  ;;  %v2833_v15 = vadd.f32 %v2832_v52, %v2818_v36  ;;  %v4387_v34 = vadd.f32 %v2703_v29, %v5297_v23  ;;  %v2953_v52 = vld [vmem:[%s5374_s7] sm:$0xff] }
 0x32a   :  { %v2806_v47 = vadd.f32 %v4386_v60, %v5315_v55 }
 0x32b   :  { %v2834_v38 = vadd.f32 %v2833_v15, %v2819_v11  ;;  %v2805_v5 = vadd.f32 %v4387_v34, %v5315_v55  ;;  %v3992_v2 = vpop.f32.mrb[10].mxu1 }
 0x32c   :  { %v4388_v56 = vadd.f32 %v3992_v2, %v5299_v53  ;;  %v2713_v50 = vpop.f32.mrb[11].mxu1  ;;  %v2822_v4 = vmax.f32 %v2806_v47, 0.0 }
 0x32d   :  { %v2821_v54 = vmax.f32 %v2805_v5, 0.0  ;;  %v2835_v49 = vadd.f32 %v2834_v38, %v2820_v42  ;;  %v4389_v35 = vadd.f32 %v2713_v50, %v5301_v46 }
 0x32e   :  { %v2808_v62 = vadd.f32 %v4388_v56, %v5315_v55 }
 0x32f   :  { %v2836_v3 = vadd.f32 %v2835_v49, %v2821_v54  ;;  %v2807_v23 = vadd.f32 %v4389_v35, %v5315_v55  ;;  %v3995_v58 = vpop.f32.mrb[12].mxu1 }
 0x330   :  { %v4390_v26 = vadd.f32 %v3995_v58, %v5303_v12  ;;  %v2723_v6 = vpop.f32.mrb[13].mxu1  ;;  %v2824_v53 = vmax.f32 %v2808_v62, 0.0 }
 0x331   :  { %v2823_v7 = vmax.f32 %v2807_v23, 0.0  ;;  %v2837_v14 = vadd.f32 %v2836_v3, %v2822_v4  ;;  %v4391_v59 = vadd.f32 %v2723_v6, %v5305_v44 }
 0x332   :  { %v2810_v32 = vadd.f32 %v4390_v26, %v5315_v55 }
 0x333   :  { %v2838_v28 = vadd.f32 %v2837_v14, %v2823_v7  ;;  %v2809_v46 = vadd.f32 %v4391_v59, %v5315_v55  ;;  %v3998_v20 = vpop.f32.mrb[14].mxu1 }
 0x334   :  { %v4392_v45 = vadd.f32 %v3998_v20, %v5307_v27  ;;  %v2733_v61 = vpop.f32.mrb[15].mxu1  ;;  %v2826_v12 = vmax.f32 %v2810_v32, 0.0  ;;  %v2939_v27 = vand.u32 127, %v2938_v17 }
 0x335   :  { %v2825_v30 = vmax.f32 %v2809_v46, 0.0  ;;  %v2839_v24 = vadd.f32 %v2838_v28, %v2824_v53  ;;  %v4393_v19 = vadd.f32 %v2733_v61, %v5309_v22 }
 0x336   :  { %v2812_v25 = vadd.f32 %v4392_v45, %v5315_v55  ;;  %vm2940_vm1 = vcmp.lt.s32.totalorder %v2939_v27, 10  ;;  %vm2959_vm2 = vcmp.eq.s32.totalorder %v2939_v27, 10 }
 0x337   :  { %v2840_v16 = vadd.f32 %v2839_v24, %v2825_v30  ;;  %v2811_v44 = vadd.f32 %v4393_v19, %v5315_v55 }
 0x338   :  { %v2828_v43 = vmax.f32 %v2812_v25, 0.0 }
 0x339   :  { %v2827_v21 = vmax.f32 %v2811_v44, 0.0  ;;  %v2841_v40 = vadd.f32 %v2840_v16, %v2826_v12 }
 0x33b   :  { %v2842_v1 = vadd.f32 %v2841_v40, %v2827_v21 }
 0x33d   :  { %v2843_v9 = vadd.f32 %v2842_v1, %v2828_v43 }
 0x33f   :  { %v2844_v13 = vmul.f32 0.0625, %v2843_v9 }
 0x341   :  { %4032 = vmatmul.mubr.f32.vlgmr.msra.gmra.mrb[80].mxu0 %v2844_v13 }
 0x414   :  { %v2934_v22 = vpop.f32.mrb[80].mxu0 }
 0x415   :  { %v2935_v37 = vadd.f32 %v2981_v33, %v2934_v22  ;;  %v4033_v41 = vpop.f32.mrb[81].mxu0 }
 0x417   :  { %v2942_v57 = vsel %vm2940_vm1, %v2935_v37, -1e+30  ;;  %v2941_v29 = vsel %vm2940_vm1, %v2935_v37, 0.0 }
 0x418   :  { %2943 = vmax.xlane.f32.xlu0 %v2942_v57 }
 0x4a5   :  { %v2944_v55 = vpop.xlane.xlu0 %2943 }
 0x4a6   :  { %v2945_v10 = vsub.f32 %v2942_v57, %v2944_v55 }
 0x4a8   :  { %v2946_v18 = vmul.f32 1.442695, %v2945_v10 }
 0x4aa   :  { %4516 = vpow2.f32 %v2946_v18 }
 0x4b4   :  { %v4517_v48 = vpop.eup %4516 }
 0x4b5   :  { %2948 = vadd.xlane.f32.xlu0 %v4517_v48 }
 0x542   :  { %v2949_v39 = vpop.xlane.xlu0 %2948 }
 0x543   :  { %4518 = vlog2.f32 %v2949_v39 }
 0x54d   :  { %v4519_v63 = vpop.eup %4518 }
 0x54e   :  { %v2951_v0 = vmul.f32 0.6931472, %v4519_v63 }
 0x550   :  { %v2952_v36 = vadd.f32 %v2951_v0, %v2944_v55 }
 0x552   :  { %v2954_v31 = vsub.f32 %v2935_v37, %v2952_v36 }
 0x554   :  { %v2955_v51 = vmul.f32 %v2954_v31, %v2953_v52 }
 0x556   :  { %2956 = vadd.xlane.f32.xlu1 %v2955_v51 }
 0x5e3   :  { %v2957_v8 = vpop.xlane.xlu1 %2956 }
 0x5e4   :  { %v2958_v60 = vsub.f32 0.0, %v2957_v8 }
 0x5e6   :  { %v2960_v11 = vsel %vm2959_vm2, %v2958_v60, %v2941_v29 }
 0x5e7   :  { %2961 = vst [vmem:[#allocation12] sm:$0xff] %v2960_v11 }
 0x5e8   :  { %4619 = shalt.err (!%p4616_p8)
}
 0x5e9   :  { %s4620_s16 = scalar_lea.hbm %s5375_s8, 128 }
 0x5ea   :  { %p4621_p9 = scmp.ne.s32.totalorder %s5375_s8, %s4620_s16  ;;  %p4624_p10 = scmp.lt.u32.totalorder %s4620_s16, %s5375_s8 }
 0x5ec   :  { %p4626_p11 = pnand %p4624_p10, %p4621_p9 }
 0x5ee   :  { %4629 = shalt.err (!%p4626_p11)
}
 0x5ef   :  { %2971 = dma.vmem_to_hbm [thread:$0]  %s2969_s13, 128, %s5375_s8, [#allocation6]  }
 0x5f0   :  { %4636 = dma.done.wait [#allocation6], 128  }
 0x5f1   :  { %4637 = vsyncadd [#allocation6], 4294967168 }
 0x5f2   :  { %2975 = vsyncpa [#allocation5], 1 }
 0x5f3   :  { %2976 = vsyncpa [#allocation8], 1 }
 0x5f4   :  { %2977 = vsyncpa [#allocation11], 1 }
 0x5f5   :  { %2978 = vsyncpa [#allocation6], 1 }

</bundles_post_ra>
